<compile_context>
chip_gen: v7x
topology: tpu7x:2x2x1
jax: 0.10.0
libtpu: 0.0.40
codegen_flags: <defaults>
</compile_context>

<pallas_src>
import functools

import jax
import jax.numpy as jnp
from jax import lax
from jax.experimental import pallas as pl
from jax.experimental.pallas import tpu as pltpu

N_EM_ITERS = 20
EPS = 1e-8
V_CHUNK_MAX = 2048


def _round_up(a, b):
    return (a + b - 1) // b * b


def lda_em_kernel(x_ref, theta0_ref, beta_ref, out_ref, *,
                  num_real_topics, v_chunk, n_em_iters):
    """One doc-tile of LDA training.

    x_ref:      (tm, Vp)  bf16 doc-word counts for this tile of documents
    theta0_ref: (tm, Kp)  f32  initial doc-topic weights
    beta_ref:   (Kp, Vp)  bf16 topic-word distribution (full, resident, single-buffered)
    out_ref:    (tm, Kp)  f32  row-normalized doc-topic distribution
    """
    tm, v_pad = x_ref.shape
    k_pad = theta0_ref.shape[1]
    n_chunks = v_pad // v_chunk

    def em_step(_, theta):
        # Multiplicative EM update:
        #   theta_dk <- theta_dk * sum_w X_dw * beta_kw / (theta @ beta)_dw
        theta_b = theta.astype(jnp.bfloat16)               # MXU operand
        upd = jnp.zeros((tm, k_pad), jnp.float32)
        for c in range(n_chunks):                          # static, lane-aligned V chunks
            sl = slice(c * v_chunk, (c + 1) * v_chunk)
            beta_c = beta_ref[:, sl]                       # (Kp, tv) bf16
            x_c = x_ref[:, sl]                             # (tm, tv) bf16, stays bf16
            wt = jnp.dot(theta_b, beta_c,
                         preferred_element_type=jnp.float32)        # (tm, tv) f32
            recip = pl.reciprocal(wt + EPS, approx=True)             # EUP slot
            ratio = x_c * recip.astype(jnp.bfloat16)                 # bf16, no f32 temp
            # Contract over V on both operands (ratio @ beta^T folded into the MXU; no
            # separate transposed copy of beta and no per-iteration XLU transpose).
            upd = upd + lax.dot_general(
                ratio, beta_c,
                dimension_numbers=(((1,), (1,)), ((), ())),
                preferred_element_type=jnp.float32)                  # (tm, Kp) f32
        return theta * upd

    # Strict per-iteration dependency: unroll fully only when V is a single resident chunk.
    theta = lax.fori_loop(0, n_em_iters, em_step, theta0_ref[...],
                          unroll=True if n_chunks == 1 else 1)

    # get_doc_topic_dist(): normalize rows to a probability distribution.
    norm = jnp.sum(theta, axis=-1, keepdims=True)                    # (tm, 1)
    normalized = theta * pl.reciprocal(norm + EPS, approx=False)
    # All-zero documents (or zero-padded docs) -> uniform over the *real* topics.
    col = lax.broadcasted_iota(jnp.int32, theta.shape, 1)
    uniform = jnp.where(col < num_real_topics,
                        jnp.float32(1.0 / num_real_topics), jnp.float32(0.0))
    out_ref[...] = jnp.where(norm > EPS, normalized, uniform).astype(out_ref.dtype)


def lda_doc_topic_dist(x, theta0, beta, *, n_em_iters=N_EM_ITERS):
    """Train LDA via EM and return the [D, K] doc-topic distribution."""
    D, V = x.shape
    K = beta.shape[0]
    assert theta0.shape == (D, K) and beta.shape == (K, V)

    bf16, f32 = 2, 4

    # Lane alignment & V chunking: pad V to the chunk size so in-kernel slices are
    # lane-aligned; pad K to 128 so theta/out tiles are lane-dense (unmasked vst).
    if V > V_CHUNK_MAX:
        v_chunk = V_CHUNK_MAX
        V_pad = _round_up(V, v_chunk)
    else:
        V_pad = _round_up(V, 128)
        v_chunk = V_pad
    K_pad = _round_up(K, 128)

    # Generation-aware VMEM budget.
    try:
        vmem_cap = int(pltpu.get_tpu_info().vmem_capacity_bytes)
        if vmem_cap <= 0:
            vmem_cap = 64 * 2**20
    except Exception:
        vmem_cap = 64 * 2**20          # conservative (v7x per-TC)
    budget = int(0.85 * vmem_cap)

    # Tile height: cap at 256 on big-VMEM chips (v5e/v6e), 128 on v7x; footprint-checked.
    beta_resident = K_pad * V_pad * bf16           # single-buffered resident copy
    tm_cap = 256 if vmem_cap >= (96 << 20) else 128
    tm = 8
    for cand in (256, 128, 64, 32, 16, 8):
        if cand > tm_cap:
            continue
        io = 2 * cand * V_pad * bf16 + 2 * 2 * cand * K_pad * f32   # dbl-buffered x, theta0, out
        temps = 3 * cand * v_chunk * f32 + 3 * cand * K_pad * f32
        if beta_resident + io + temps <= budget:
            tm = cand
            break

    # Clamp for small doc counts; keep >=2 grid steps so both v7x TensorCores get work.
    tm = max(8, min(tm, _round_up(D, 8)))
    if _round_up(D, tm) // tm < 2 and D > 8:
        tm = max(8, _round_up(max(tm // 2, 8), 8))
    D_pad = _round_up(D, tm)

    # Zero padding is mathematically inert for the EM update (padded beta rows/cols and padded
    # docs contribute nothing; padded word columns have x==0 so ratio there is exactly 0).
    x_p = jnp.zeros((D_pad, V_pad), jnp.bfloat16).at[:D, :V].set(x.astype(jnp.bfloat16))
    theta_p = jnp.zeros((D_pad, K_pad), jnp.float32).at[:D, :K].set(theta0.astype(jnp.float32))
    beta_p = jnp.zeros((K_pad, V_pad), jnp.bfloat16).at[:K, :V].set(beta.astype(jnp.bfloat16))

    vmem_limit = max(32 * 2**20, budget)

    kernel = functools.partial(lda_em_kernel, num_real_topics=K,
                               v_chunk=v_chunk, n_em_iters=n_em_iters)

    def _call(single_buffer_beta):
        beta_spec_kwargs = {}
        if single_buffer_beta:
            # Constant block index is never re-DMA'd; a double buffer would be pure VMEM waste.
            beta_spec_kwargs = dict(pipeline_mode=pl.Buffered(1))
        grid_spec = pltpu.PrefetchScalarGridSpec(
            num_scalar_prefetch=0,
            grid=(D_pad // tm,),
            in_specs=[
                pl.BlockSpec((tm, V_pad), lambda i: (i, 0)),                     # X tile
                pl.BlockSpec((tm, K_pad), lambda i: (i, 0)),                     # theta0 tile
                pl.BlockSpec((K_pad, V_pad), lambda i: (0, 0), **beta_spec_kwargs),  # beta resident
            ],
            out_specs=pl.BlockSpec((tm, K_pad), lambda i: (i, 0)),
        )
        fn = pl.pallas_call(
            kernel,
            out_shape=jax.ShapeDtypeStruct((D_pad, K_pad), jnp.float32),
            grid_spec=grid_spec,
            compiler_params=pltpu.CompilerParams(
                dimension_semantics=("parallel",),
                vmem_limit_bytes=vmem_limit),
        )
        return fn(x_p, theta_p, beta_p)

    try:
        out = jax.block_until_ready(_call(True))
    except Exception:
        # Stricter lowerings may reject Buffered(1); fall back to default double buffering.
        out = jax.block_until_ready(_call(False))

    return out[:D, :K]


class CuLDAWrapper:
    """JAX/Pallas analogue of the PyTorch CuLDAWrapper nn.Module."""

    def __init__(self, opt, key):
        self.num_docs = opt["num_docs"]
        self.num_topics = opt["num_topics"]
        self.vocab_size = opt["vocab_size"]

        k_x, k_theta, k_beta = jax.random.split(key, 3)
        # Synthetic corpus: small integer word counts per document, stored bf16
        # (exact for 0..4, halves HBM/DMA traffic for the X tiles).
        self.x = jax.random.randint(
            k_x, (self.num_docs, self.vocab_size), 0, 5).astype(jnp.bfloat16)
        # Deterministic positive initializations.
        self.theta0 = jax.random.uniform(
            k_theta, (self.num_docs, self.num_topics),
            minval=0.5, maxval=1.5, dtype=jnp.float32)
        beta_raw = jax.random.uniform(
            k_beta, (self.num_topics, self.vocab_size),
            minval=0.1, maxval=1.0, dtype=jnp.float32)
        self.beta = beta_raw / jnp.sum(beta_raw, axis=-1, keepdims=True)

        self._doc_topic = None

    def train_model(self):
        self._doc_topic = lda_doc_topic_dist(self.x, self.theta0, self.beta)

    def get_doc_topic_dist(self):
        return self._doc_topic

    def __call__(self):
        # Mirrors forward(): train, then return the doc-topic distribution.
        self.train_model()
        return self.get_doc_topic_dist()


if __name__ == "__main__":
    opt = {"num_docs": 16, "num_topics": 16, "vocab_size": 128}
    key = jax.random.PRNGKey(0)

    model = CuLDAWrapper(opt, key)
    doc_topic = model()
    doc_topic = jax.block_until_ready(doc_topic)

    # Sanity: correct shape, rows sum to ~1, all non-negative.
    assert doc_topic.shape == (opt["num_docs"], opt["num_topics"])
    row_sums = jnp.sum(doc_topic, axis=-1)
    assert bool(jnp.all(jnp.abs(row_sums - 1.0) < 1e-3))
    assert bool(jnp.all(doc_topic >= 0.0))

    print("KERNEL_OK")
</pallas_src>

<mosaic_0001>
module attributes {stable_mosaic.version = 11 : i64} {
  func.func @lda_em_kernel(%arg0: i32, %arg1: memref<8x128xbf16, #tpu.memory_space<vmem>>, %arg2: memref<8x128xf32, #tpu.memory_space<vmem>>, %arg3: memref<128x128xbf16, #tpu.memory_space<vmem>>, %arg4: memref<8x128xf32, #tpu.memory_space<vmem>>) attributes {dimension_semantics = [#tpu.dimension_semantics<parallel>], iteration_bounds = array<i64: 2>, scalar_prefetch = 0 : i64, scratch_operands = 0 : i64, tpu.core_type = #tpu.core_type<tc>, window_params = [{transform_indices = @transform_0, window_bounds = array<i64: 8, 128>}, {transform_indices = @transform_1, window_bounds = array<i64: 8, 128>}, {pipeline_mode = #tpu.pipeline_mode<synchronous>, transform_indices = @transform_2, window_bounds = array<i64: 128, 128>}, {transform_indices = @transform_3, window_bounds = array<i64: 8, 128>}]} {
    %c0 = arith.constant 0 : index
    %c0_0 = arith.constant 0 : index
    %0 = vector.load %arg2[%c0, %c0_0] : memref<8x128xf32, #tpu.memory_space<vmem>>, vector<8x128xf32>
    %c0_i32 = arith.constant 0 : i32
    %1 = arith.truncf %0 : vector<8x128xf32> to vector<8x128xbf16>
    %cst = arith.constant 0.000000e+00 : f32
    %2 = vector.broadcast %cst : f32 to vector<8x128xf32>
    %c0_1 = arith.constant 0 : index
    %c0_2 = arith.constant 0 : index
    %3 = vector.load %arg3[%c0_1, %c0_2] : memref<128x128xbf16, #tpu.memory_space<vmem>>, vector<128x128xbf16>
    %c0_3 = arith.constant 0 : index
    %c0_4 = arith.constant 0 : index
    %4 = vector.load %arg1[%c0_3, %c0_4] : memref<8x128xbf16, #tpu.memory_space<vmem>>, vector<8x128xbf16>
    %cst_5 = arith.constant dense<0.000000e+00> : vector<8x128xf32>
    %5 = tpu.matmul %1, %3, %cst_5 {dimension_numbers = #tpu.dot_dimension_numbers<[1], [0], [0], [1], [0, 0, 1, 1], [], []>} : vector<8x128xbf16>, vector<128x128xbf16>, vector<8x128xf32> -> vector<8x128xf32>
    %cst_6 = arith.constant 9.99999993E-9 : f32
    %6 = vector.broadcast %cst_6 : f32 to vector<8x128xf32>
    %7 = arith.addf %5, %6 : vector<8x128xf32>
    %8 = tpu.reciprocal %7 {approx = true} : vector<8x128xf32> -> vector<8x128xf32>
    %9 = arith.truncf %8 : vector<8x128xf32> to vector<8x128xbf16>
    %10 = arith.mulf %4, %9 : vector<8x128xbf16>
    %cst_7 = arith.constant dense<0.000000e+00> : vector<8x128xf32>
    %11 = tpu.matmul %10, %3, %cst_7 {dimension_numbers = #tpu.dot_dimension_numbers<[1], [1], [0], [0], [0, 0, 1, 0], [], []>} : vector<8x128xbf16>, vector<128x128xbf16>, vector<8x128xf32> -> vector<8x128xf32>
    %12 = arith.addf %2, %11 : vector<8x128xf32>
    %13 = arith.mulf %0, %12 : vector<8x128xf32>
    %c1_i32 = arith.constant 1 : i32
    %14 = arith.truncf %13 : vector<8x128xf32> to vector<8x128xbf16>
    %cst_8 = arith.constant 0.000000e+00 : f32
    %15 = vector.broadcast %cst_8 : f32 to vector<8x128xf32>
    %c0_9 = arith.constant 0 : index
    %c0_10 = arith.constant 0 : index
    %16 = vector.load %arg3[%c0_9, %c0_10] : memref<128x128xbf16, #tpu.memory_space<vmem>>, vector<128x128xbf16>
    %c0_11 = arith.constant 0 : index
    %c0_12 = arith.constant 0 : index
    %17 = vector.load %arg1[%c0_11, %c0_12] : memref<8x128xbf16, #tpu.memory_space<vmem>>, vector<8x128xbf16>
    %cst_13 = arith.constant dense<0.000000e+00> : vector<8x128xf32>
    %18 = tpu.matmul %14, %16, %cst_13 {dimension_numbers = #tpu.dot_dimension_numbers<[1], [0], [0], [1], [0, 0, 1, 1], [], []>} : vector<8x128xbf16>, vector<128x128xbf16>, vector<8x128xf32> -> vector<8x128xf32>
    %cst_14 = arith.constant 9.99999993E-9 : f32
    %19 = vector.broadcast %cst_14 : f32 to vector<8x128xf32>
    %20 = arith.addf %18, %19 : vector<8x128xf32>
    %21 = tpu.reciprocal %20 {approx = true} : vector<8x128xf32> -> vector<8x128xf32>
    %22 = arith.truncf %21 : vector<8x128xf32> to vector<8x128xbf16>
    %23 = arith.mulf %17, %22 : vector<8x128xbf16>
    %cst_15 = arith.constant dense<0.000000e+00> : vector<8x128xf32>
    %24 = tpu.matmul %23, %16, %cst_15 {dimension_numbers = #tpu.dot_dimension_numbers<[1], [1], [0], [0], [0, 0, 1, 0], [], []>} : vector<8x128xbf16>, vector<128x128xbf16>, vector<8x128xf32> -> vector<8x128xf32>
    %25 = arith.addf %15, %24 : vector<8x128xf32>
    %26 = arith.mulf %13, %25 : vector<8x128xf32>
    %c2_i32 = arith.constant 2 : i32
    %27 = arith.truncf %26 : vector<8x128xf32> to vector<8x128xbf16>
    %cst_16 = arith.constant 0.000000e+00 : f32
    %28 = vector.broadcast %cst_16 : f32 to vector<8x128xf32>
    %c0_17 = arith.constant 0 : index
    %c0_18 = arith.constant 0 : index
    %29 = vector.load %arg3[%c0_17, %c0_18] : memref<128x128xbf16, #tpu.memory_space<vmem>>, vector<128x128xbf16>
    %c0_19 = arith.constant 0 : index
    %c0_20 = arith.constant 0 : index
    %30 = vector.load %arg1[%c0_19, %c0_20] : memref<8x128xbf16, #tpu.memory_space<vmem>>, vector<8x128xbf16>
    %cst_21 = arith.constant dense<0.000000e+00> : vector<8x128xf32>
    %31 = tpu.matmul %27, %29, %cst_21 {dimension_numbers = #tpu.dot_dimension_numbers<[1], [0], [0], [1], [0, 0, 1, 1], [], []>} : vector<8x128xbf16>, vector<128x128xbf16>, vector<8x128xf32> -> vector<8x128xf32>
    %cst_22 = arith.constant 9.99999993E-9 : f32
    %32 = vector.broadcast %cst_22 : f32 to vector<8x128xf32>
    %33 = arith.addf %31, %32 : vector<8x128xf32>
    %34 = tpu.reciprocal %33 {approx = true} : vector<8x128xf32> -> vector<8x128xf32>
    %35 = arith.truncf %34 : vector<8x128xf32> to vector<8x128xbf16>
    %36 = arith.mulf %30, %35 : vector<8x128xbf16>
    %cst_23 = arith.constant dense<0.000000e+00> : vector<8x128xf32>
    %37 = tpu.matmul %36, %29, %cst_23 {dimension_numbers = #tpu.dot_dimension_numbers<[1], [1], [0], [0], [0, 0, 1, 0], [], []>} : vector<8x128xbf16>, vector<128x128xbf16>, vector<8x128xf32> -> vector<8x128xf32>
    %38 = arith.addf %28, %37 : vector<8x128xf32>
    %39 = arith.mulf %26, %38 : vector<8x128xf32>
    %c3_i32 = arith.constant 3 : i32
    %40 = arith.truncf %39 : vector<8x128xf32> to vector<8x128xbf16>
    %cst_24 = arith.constant 0.000000e+00 : f32
    %41 = vector.broadcast %cst_24 : f32 to vector<8x128xf32>
    %c0_25 = arith.constant 0 : index
    %c0_26 = arith.constant 0 : index
    %42 = vector.load %arg3[%c0_25, %c0_26] : memref<128x128xbf16, #tpu.memory_space<vmem>>, vector<128x128xbf16>
    %c0_27 = arith.constant 0 : index
    %c0_28 = arith.constant 0 : index
    %43 = vector.load %arg1[%c0_27, %c0_28] : memref<8x128xbf16, #tpu.memory_space<vmem>>, vector<8x128xbf16>
    %cst_29 = arith.constant dense<0.000000e+00> : vector<8x128xf32>
    %44 = tpu.matmul %40, %42, %cst_29 {dimension_numbers = #tpu.dot_dimension_numbers<[1], [0], [0], [1], [0, 0, 1, 1], [], []>} : vector<8x128xbf16>, vector<128x128xbf16>, vector<8x128xf32> -> vector<8x128xf32>
    %cst_30 = arith.constant 9.99999993E-9 : f32
    %45 = vector.broadcast %cst_30 : f32 to vector<8x128xf32>
    %46 = arith.addf %44, %45 : vector<8x128xf32>
    %47 = tpu.reciprocal %46 {approx = true} : vector<8x128xf32> -> vector<8x128xf32>
    %48 = arith.truncf %47 : vector<8x128xf32> to vector<8x128xbf16>
    %49 = arith.mulf %43, %48 : vector<8x128xbf16>
    %cst_31 = arith.constant dense<0.000000e+00> : vector<8x128xf32>
    %50 = tpu.matmul %49, %42, %cst_31 {dimension_numbers = #tpu.dot_dimension_numbers<[1], [1], [0], [0], [0, 0, 1, 0], [], []>} : vector<8x128xbf16>, vector<128x128xbf16>, vector<8x128xf32> -> vector<8x128xf32>
    %51 = arith.addf %41, %50 : vector<8x128xf32>
    %52 = arith.mulf %39, %51 : vector<8x128xf32>
    %c4_i32 = arith.constant 4 : i32
    %53 = arith.truncf %52 : vector<8x128xf32> to vector<8x128xbf16>
    %cst_32 = arith.constant 0.000000e+00 : f32
    %54 = vector.broadcast %cst_32 : f32 to vector<8x128xf32>
    %c0_33 = arith.constant 0 : index
    %c0_34 = arith.constant 0 : index
    %55 = vector.load %arg3[%c0_33, %c0_34] : memref<128x128xbf16, #tpu.memory_space<vmem>>, vector<128x128xbf16>
    %c0_35 = arith.constant 0 : index
    %c0_36 = arith.constant 0 : index
    %56 = vector.load %arg1[%c0_35, %c0_36] : memref<8x128xbf16, #tpu.memory_space<vmem>>, vector<8x128xbf16>
    %cst_37 = arith.constant dense<0.000000e+00> : vector<8x128xf32>
    %57 = tpu.matmul %53, %55, %cst_37 {dimension_numbers = #tpu.dot_dimension_numbers<[1], [0], [0], [1], [0, 0, 1, 1], [], []>} : vector<8x128xbf16>, vector<128x128xbf16>, vector<8x128xf32> -> vector<8x128xf32>
    %cst_38 = arith.constant 9.99999993E-9 : f32
    %58 = vector.broadcast %cst_38 : f32 to vector<8x128xf32>
    %59 = arith.addf %57, %58 : vector<8x128xf32>
    %60 = tpu.reciprocal %59 {approx = true} : vector<8x128xf32> -> vector<8x128xf32>
    %61 = arith.truncf %60 : vector<8x128xf32> to vector<8x128xbf16>
    %62 = arith.mulf %56, %61 : vector<8x128xbf16>
    %cst_39 = arith.constant dense<0.000000e+00> : vector<8x128xf32>
    %63 = tpu.matmul %62, %55, %cst_39 {dimension_numbers = #tpu.dot_dimension_numbers<[1], [1], [0], [0], [0, 0, 1, 0], [], []>} : vector<8x128xbf16>, vector<128x128xbf16>, vector<8x128xf32> -> vector<8x128xf32>
    %64 = arith.addf %54, %63 : vector<8x128xf32>
    %65 = arith.mulf %52, %64 : vector<8x128xf32>
    %c5_i32 = arith.constant 5 : i32
    %66 = arith.truncf %65 : vector<8x128xf32> to vector<8x128xbf16>
    %cst_40 = arith.constant 0.000000e+00 : f32
    %67 = vector.broadcast %cst_40 : f32 to vector<8x128xf32>
    %c0_41 = arith.constant 0 : index
    %c0_42 = arith.constant 0 : index
    %68 = vector.load %arg3[%c0_41, %c0_42] : memref<128x128xbf16, #tpu.memory_space<vmem>>, vector<128x128xbf16>
    %c0_43 = arith.constant 0 : index
    %c0_44 = arith.constant 0 : index
    %69 = vector.load %arg1[%c0_43, %c0_44] : memref<8x128xbf16, #tpu.memory_space<vmem>>, vector<8x128xbf16>
    %cst_45 = arith.constant dense<0.000000e+00> : vector<8x128xf32>
    %70 = tpu.matmul %66, %68, %cst_45 {dimension_numbers = #tpu.dot_dimension_numbers<[1], [0], [0], [1], [0, 0, 1, 1], [], []>} : vector<8x128xbf16>, vector<128x128xbf16>, vector<8x128xf32> -> vector<8x128xf32>
    %cst_46 = arith.constant 9.99999993E-9 : f32
    %71 = vector.broadcast %cst_46 : f32 to vector<8x128xf32>
    %72 = arith.addf %70, %71 : vector<8x128xf32>
    %73 = tpu.reciprocal %72 {approx = true} : vector<8x128xf32> -> vector<8x128xf32>
    %74 = arith.truncf %73 : vector<8x128xf32> to vector<8x128xbf16>
    %75 = arith.mulf %69, %74 : vector<8x128xbf16>
    %cst_47 = arith.constant dense<0.000000e+00> : vector<8x128xf32>
    %76 = tpu.matmul %75, %68, %cst_47 {dimension_numbers = #tpu.dot_dimension_numbers<[1], [1], [0], [0], [0, 0, 1, 0], [], []>} : vector<8x128xbf16>, vector<128x128xbf16>, vector<8x128xf32> -> vector<8x128xf32>
    %77 = arith.addf %67, %76 : vector<8x128xf32>
    %78 = arith.mulf %65, %77 : vector<8x128xf32>
    %c6_i32 = arith.constant 6 : i32
    %79 = arith.truncf %78 : vector<8x128xf32> to vector<8x128xbf16>
    %cst_48 = arith.constant 0.000000e+00 : f32
    %80 = vector.broadcast %cst_48 : f32 to vector<8x128xf32>
    %c0_49 = arith.constant 0 : index
    %c0_50 = arith.constant 0 : index
    %81 = vector.load %arg3[%c0_49, %c0_50] : memref<128x128xbf16, #tpu.memory_space<vmem>>, vector<128x128xbf16>
    %c0_51 = arith.constant 0 : index
    %c0_52 = arith.constant 0 : index
    %82 = vector.load %arg1[%c0_51, %c0_52] : memref<8x128xbf16, #tpu.memory_space<vmem>>, vector<8x128xbf16>
    %cst_53 = arith.constant dense<0.000000e+00> : vector<8x128xf32>
    %83 = tpu.matmul %79, %81, %cst_53 {dimension_numbers = #tpu.dot_dimension_numbers<[1], [0], [0], [1], [0, 0, 1, 1], [], []>} : vector<8x128xbf16>, vector<128x128xbf16>, vector<8x128xf32> -> vector<8x128xf32>
    %cst_54 = arith.constant 9.99999993E-9 : f32
    %84 = vector.broadcast %cst_54 : f32 to vector<8x128xf32>
    %85 = arith.addf %83, %84 : vector<8x128xf32>
    %86 = tpu.reciprocal %85 {approx = true} : vector<8x128xf32> -> vector<8x128xf32>
    %87 = arith.truncf %86 : vector<8x128xf32> to vector<8x128xbf16>
    %88 = arith.mulf %82, %87 : vector<8x128xbf16>
    %cst_55 = arith.constant dense<0.000000e+00> : vector<8x128xf32>
    %89 = tpu.matmul %88, %81, %cst_55 {dimension_numbers = #tpu.dot_dimension_numbers<[1], [1], [0], [0], [0, 0, 1, 0], [], []>} : vector<8x128xbf16>, vector<128x128xbf16>, vector<8x128xf32> -> vector<8x128xf32>
    %90 = arith.addf %80, %89 : vector<8x128xf32>
    %91 = arith.mulf %78, %90 : vector<8x128xf32>
    %c7_i32 = arith.constant 7 : i32
    %92 = arith.truncf %91 : vector<8x128xf32> to vector<8x128xbf16>
    %cst_56 = arith.constant 0.000000e+00 : f32
    %93 = vector.broadcast %cst_56 : f32 to vector<8x128xf32>
    %c0_57 = arith.constant 0 : index
    %c0_58 = arith.constant 0 : index
    %94 = vector.load %arg3[%c0_57, %c0_58] : memref<128x128xbf16, #tpu.memory_space<vmem>>, vector<128x128xbf16>
    %c0_59 = arith.constant 0 : index
    %c0_60 = arith.constant 0 : index
    %95 = vector.load %arg1[%c0_59, %c0_60] : memref<8x128xbf16, #tpu.memory_space<vmem>>, vector<8x128xbf16>
    %cst_61 = arith.constant dense<0.000000e+00> : vector<8x128xf32>
    %96 = tpu.matmul %92, %94, %cst_61 {dimension_numbers = #tpu.dot_dimension_numbers<[1], [0], [0], [1], [0, 0, 1, 1], [], []>} : vector<8x128xbf16>, vector<128x128xbf16>, vector<8x128xf32> -> vector<8x128xf32>
    %cst_62 = arith.constant 9.99999993E-9 : f32
    %97 = vector.broadcast %cst_62 : f32 to vector<8x128xf32>
    %98 = arith.addf %96, %97 : vector<8x128xf32>
    %99 = tpu.reciprocal %98 {approx = true} : vector<8x128xf32> -> vector<8x128xf32>
    %100 = arith.truncf %99 : vector<8x128xf32> to vector<8x128xbf16>
    %101 = arith.mulf %95, %100 : vector<8x128xbf16>
    %cst_63 = arith.constant dense<0.000000e+00> : vector<8x128xf32>
    %102 = tpu.matmul %101, %94, %cst_63 {dimension_numbers = #tpu.dot_dimension_numbers<[1], [1], [0], [0], [0, 0, 1, 0], [], []>} : vector<8x128xbf16>, vector<128x128xbf16>, vector<8x128xf32> -> vector<8x128xf32>
    %103 = arith.addf %93, %102 : vector<8x128xf32>
    %104 = arith.mulf %91, %103 : vector<8x128xf32>
    %c8_i32 = arith.constant 8 : i32
    %105 = arith.truncf %104 : vector<8x128xf32> to vector<8x128xbf16>
    %cst_64 = arith.constant 0.000000e+00 : f32
    %106 = vector.broadcast %cst_64 : f32 to vector<8x128xf32>
    %c0_65 = arith.constant 0 : index
    %c0_66 = arith.constant 0 : index
    %107 = vector.load %arg3[%c0_65, %c0_66] : memref<128x128xbf16, #tpu.memory_space<vmem>>, vector<128x128xbf16>
    %c0_67 = arith.constant 0 : index
    %c0_68 = arith.constant 0 : index
    %108 = vector.load %arg1[%c0_67, %c0_68] : memref<8x128xbf16, #tpu.memory_space<vmem>>, vector<8x128xbf16>
    %cst_69 = arith.constant dense<0.000000e+00> : vector<8x128xf32>
    %109 = tpu.matmul %105, %107, %cst_69 {dimension_numbers = #tpu.dot_dimension_numbers<[1], [0], [0], [1], [0, 0, 1, 1], [], []>} : vector<8x128xbf16>, vector<128x128xbf16>, vector<8x128xf32> -> vector<8x128xf32>
    %cst_70 = arith.constant 9.99999993E-9 : f32
    %110 = vector.broadcast %cst_70 : f32 to vector<8x128xf32>
    %111 = arith.addf %109, %110 : vector<8x128xf32>
    %112 = tpu.reciprocal %111 {approx = true} : vector<8x128xf32> -> vector<8x128xf32>
    %113 = arith.truncf %112 : vector<8x128xf32> to vector<8x128xbf16>
    %114 = arith.mulf %108, %113 : vector<8x128xbf16>
    %cst_71 = arith.constant dense<0.000000e+00> : vector<8x128xf32>
    %115 = tpu.matmul %114, %107, %cst_71 {dimension_numbers = #tpu.dot_dimension_numbers<[1], [1], [0], [0], [0, 0, 1, 0], [], []>} : vector<8x128xbf16>, vector<128x128xbf16>, vector<8x128xf32> -> vector<8x128xf32>
    %116 = arith.addf %106, %115 : vector<8x128xf32>
    %117 = arith.mulf %104, %116 : vector<8x128xf32>
    %c9_i32 = arith.constant 9 : i32
    %118 = arith.truncf %117 : vector<8x128xf32> to vector<8x128xbf16>
    %cst_72 = arith.constant 0.000000e+00 : f32
    %119 = vector.broadcast %cst_72 : f32 to vector<8x128xf32>
    %c0_73 = arith.constant 0 : index
    %c0_74 = arith.constant 0 : index
    %120 = vector.load %arg3[%c0_73, %c0_74] : memref<128x128xbf16, #tpu.memory_space<vmem>>, vector<128x128xbf16>
    %c0_75 = arith.constant 0 : index
    %c0_76 = arith.constant 0 : index
    %121 = vector.load %arg1[%c0_75, %c0_76] : memref<8x128xbf16, #tpu.memory_space<vmem>>, vector<8x128xbf16>
    %cst_77 = arith.constant dense<0.000000e+00> : vector<8x128xf32>
    %122 = tpu.matmul %118, %120, %cst_77 {dimension_numbers = #tpu.dot_dimension_numbers<[1], [0], [0], [1], [0, 0, 1, 1], [], []>} : vector<8x128xbf16>, vector<128x128xbf16>, vector<8x128xf32> -> vector<8x128xf32>
    %cst_78 = arith.constant 9.99999993E-9 : f32
    %123 = vector.broadcast %cst_78 : f32 to vector<8x128xf32>
    %124 = arith.addf %122, %123 : vector<8x128xf32>
    %125 = tpu.reciprocal %124 {approx = true} : vector<8x128xf32> -> vector<8x128xf32>
    %126 = arith.truncf %125 : vector<8x128xf32> to vector<8x128xbf16>
    %127 = arith.mulf %121, %126 : vector<8x128xbf16>
    %cst_79 = arith.constant dense<0.000000e+00> : vector<8x128xf32>
    %128 = tpu.matmul %127, %120, %cst_79 {dimension_numbers = #tpu.dot_dimension_numbers<[1], [1], [0], [0], [0, 0, 1, 0], [], []>} : vector<8x128xbf16>, vector<128x128xbf16>, vector<8x128xf32> -> vector<8x128xf32>
    %129 = arith.addf %119, %128 : vector<8x128xf32>
    %130 = arith.mulf %117, %129 : vector<8x128xf32>
    %c10_i32 = arith.constant 10 : i32
    %131 = arith.truncf %130 : vector<8x128xf32> to vector<8x128xbf16>
    %cst_80 = arith.constant 0.000000e+00 : f32
    %132 = vector.broadcast %cst_80 : f32 to vector<8x128xf32>
    %c0_81 = arith.constant 0 : index
    %c0_82 = arith.constant 0 : index
    %133 = vector.load %arg3[%c0_81, %c0_82] : memref<128x128xbf16, #tpu.memory_space<vmem>>, vector<128x128xbf16>
    %c0_83 = arith.constant 0 : index
    %c0_84 = arith.constant 0 : index
    %134 = vector.load %arg1[%c0_83, %c0_84] : memref<8x128xbf16, #tpu.memory_space<vmem>>, vector<8x128xbf16>
    %cst_85 = arith.constant dense<0.000000e+00> : vector<8x128xf32>
    %135 = tpu.matmul %131, %133, %cst_85 {dimension_numbers = #tpu.dot_dimension_numbers<[1], [0], [0], [1], [0, 0, 1, 1], [], []>} : vector<8x128xbf16>, vector<128x128xbf16>, vector<8x128xf32> -> vector<8x128xf32>
    %cst_86 = arith.constant 9.99999993E-9 : f32
    %136 = vector.broadcast %cst_86 : f32 to vector<8x128xf32>
    %137 = arith.addf %135, %136 : vector<8x128xf32>
    %138 = tpu.reciprocal %137 {approx = true} : vector<8x128xf32> -> vector<8x128xf32>
    %139 = arith.truncf %138 : vector<8x128xf32> to vector<8x128xbf16>
    %140 = arith.mulf %134, %139 : vector<8x128xbf16>
    %cst_87 = arith.constant dense<0.000000e+00> : vector<8x128xf32>
    %141 = tpu.matmul %140, %133, %cst_87 {dimension_numbers = #tpu.dot_dimension_numbers<[1], [1], [0], [0], [0, 0, 1, 0], [], []>} : vector<8x128xbf16>, vector<128x128xbf16>, vector<8x128xf32> -> vector<8x128xf32>
    %142 = arith.addf %132, %141 : vector<8x128xf32>
    %143 = arith.mulf %130, %142 : vector<8x128xf32>
    %c11_i32 = arith.constant 11 : i32
    %144 = arith.truncf %143 : vector<8x128xf32> to vector<8x128xbf16>
    %cst_88 = arith.constant 0.000000e+00 : f32
    %145 = vector.broadcast %cst_88 : f32 to vector<8x128xf32>
    %c0_89 = arith.constant 0 : index
    %c0_90 = arith.constant 0 : index
    %146 = vector.load %arg3[%c0_89, %c0_90] : memref<128x128xbf16, #tpu.memory_space<vmem>>, vector<128x128xbf16>
    %c0_91 = arith.constant 0 : index
    %c0_92 = arith.constant 0 : index
    %147 = vector.load %arg1[%c0_91, %c0_92] : memref<8x128xbf16, #tpu.memory_space<vmem>>, vector<8x128xbf16>
    %cst_93 = arith.constant dense<0.000000e+00> : vector<8x128xf32>
    %148 = tpu.matmul %144, %146, %cst_93 {dimension_numbers = #tpu.dot_dimension_numbers<[1], [0], [0], [1], [0, 0, 1, 1], [], []>} : vector<8x128xbf16>, vector<128x128xbf16>, vector<8x128xf32> -> vector<8x128xf32>
    %cst_94 = arith.constant 9.99999993E-9 : f32
    %149 = vector.broadcast %cst_94 : f32 to vector<8x128xf32>
    %150 = arith.addf %148, %149 : vector<8x128xf32>
    %151 = tpu.reciprocal %150 {approx = true} : vector<8x128xf32> -> vector<8x128xf32>
    %152 = arith.truncf %151 : vector<8x128xf32> to vector<8x128xbf16>
    %153 = arith.mulf %147, %152 : vector<8x128xbf16>
    %cst_95 = arith.constant dense<0.000000e+00> : vector<8x128xf32>
    %154 = tpu.matmul %153, %146, %cst_95 {dimension_numbers = #tpu.dot_dimension_numbers<[1], [1], [0], [0], [0, 0, 1, 0], [], []>} : vector<8x128xbf16>, vector<128x128xbf16>, vector<8x128xf32> -> vector<8x128xf32>
    %155 = arith.addf %145, %154 : vector<8x128xf32>
    %156 = arith.mulf %143, %155 : vector<8x128xf32>
    %c12_i32 = arith.constant 12 : i32
    %157 = arith.truncf %156 : vector<8x128xf32> to vector<8x128xbf16>
    %cst_96 = arith.constant 0.000000e+00 : f32
    %158 = vector.broadcast %cst_96 : f32 to vector<8x128xf32>
    %c0_97 = arith.constant 0 : index
    %c0_98 = arith.constant 0 : index
    %159 = vector.load %arg3[%c0_97, %c0_98] : memref<128x128xbf16, #tpu.memory_space<vmem>>, vector<128x128xbf16>
    %c0_99 = arith.constant 0 : index
    %c0_100 = arith.constant 0 : index
    %160 = vector.load %arg1[%c0_99, %c0_100] : memref<8x128xbf16, #tpu.memory_space<vmem>>, vector<8x128xbf16>
    %cst_101 = arith.constant dense<0.000000e+00> : vector<8x128xf32>
    %161 = tpu.matmul %157, %159, %cst_101 {dimension_numbers = #tpu.dot_dimension_numbers<[1], [0], [0], [1], [0, 0, 1, 1], [], []>} : vector<8x128xbf16>, vector<128x128xbf16>, vector<8x128xf32> -> vector<8x128xf32>
    %cst_102 = arith.constant 9.99999993E-9 : f32
    %162 = vector.broadcast %cst_102 : f32 to vector<8x128xf32>
    %163 = arith.addf %161, %162 : vector<8x128xf32>
    %164 = tpu.reciprocal %163 {approx = true} : vector<8x128xf32> -> vector<8x128xf32>
    %165 = arith.truncf %164 : vector<8x128xf32> to vector<8x128xbf16>
    %166 = arith.mulf %160, %165 : vector<8x128xbf16>
    %cst_103 = arith.constant dense<0.000000e+00> : vector<8x128xf32>
    %167 = tpu.matmul %166, %159, %cst_103 {dimension_numbers = #tpu.dot_dimension_numbers<[1], [1], [0], [0], [0, 0, 1, 0], [], []>} : vector<8x128xbf16>, vector<128x128xbf16>, vector<8x128xf32> -> vector<8x128xf32>
    %168 = arith.addf %158, %167 : vector<8x128xf32>
    %169 = arith.mulf %156, %168 : vector<8x128xf32>
    %c13_i32 = arith.constant 13 : i32
    %170 = arith.truncf %169 : vector<8x128xf32> to vector<8x128xbf16>
    %cst_104 = arith.constant 0.000000e+00 : f32
    %171 = vector.broadcast %cst_104 : f32 to vector<8x128xf32>
    %c0_105 = arith.constant 0 : index
    %c0_106 = arith.constant 0 : index
    %172 = vector.load %arg3[%c0_105, %c0_106] : memref<128x128xbf16, #tpu.memory_space<vmem>>, vector<128x128xbf16>
    %c0_107 = arith.constant 0 : index
    %c0_108 = arith.constant 0 : index
    %173 = vector.load %arg1[%c0_107, %c0_108] : memref<8x128xbf16, #tpu.memory_space<vmem>>, vector<8x128xbf16>
    %cst_109 = arith.constant dense<0.000000e+00> : vector<8x128xf32>
    %174 = tpu.matmul %170, %172, %cst_109 {dimension_numbers = #tpu.dot_dimension_numbers<[1], [0], [0], [1], [0, 0, 1, 1], [], []>} : vector<8x128xbf16>, vector<128x128xbf16>, vector<8x128xf32> -> vector<8x128xf32>
    %cst_110 = arith.constant 9.99999993E-9 : f32
    %175 = vector.broadcast %cst_110 : f32 to vector<8x128xf32>
    %176 = arith.addf %174, %175 : vector<8x128xf32>
    %177 = tpu.reciprocal %176 {approx = true} : vector<8x128xf32> -> vector<8x128xf32>
    %178 = arith.truncf %177 : vector<8x128xf32> to vector<8x128xbf16>
    %179 = arith.mulf %173, %178 : vector<8x128xbf16>
    %cst_111 = arith.constant dense<0.000000e+00> : vector<8x128xf32>
    %180 = tpu.matmul %179, %172, %cst_111 {dimension_numbers = #tpu.dot_dimension_numbers<[1], [1], [0], [0], [0, 0, 1, 0], [], []>} : vector<8x128xbf16>, vector<128x128xbf16>, vector<8x128xf32> -> vector<8x128xf32>
    %181 = arith.addf %171, %180 : vector<8x128xf32>
    %182 = arith.mulf %169, %181 : vector<8x128xf32>
    %c14_i32 = arith.constant 14 : i32
    %183 = arith.truncf %182 : vector<8x128xf32> to vector<8x128xbf16>
    %cst_112 = arith.constant 0.000000e+00 : f32
    %184 = vector.broadcast %cst_112 : f32 to vector<8x128xf32>
    %c0_113 = arith.constant 0 : index
    %c0_114 = arith.constant 0 : index
    %185 = vector.load %arg3[%c0_113, %c0_114] : memref<128x128xbf16, #tpu.memory_space<vmem>>, vector<128x128xbf16>
    %c0_115 = arith.constant 0 : index
    %c0_116 = arith.constant 0 : index
    %186 = vector.load %arg1[%c0_115, %c0_116] : memref<8x128xbf16, #tpu.memory_space<vmem>>, vector<8x128xbf16>
    %cst_117 = arith.constant dense<0.000000e+00> : vector<8x128xf32>
    %187 = tpu.matmul %183, %185, %cst_117 {dimension_numbers = #tpu.dot_dimension_numbers<[1], [0], [0], [1], [0, 0, 1, 1], [], []>} : vector<8x128xbf16>, vector<128x128xbf16>, vector<8x128xf32> -> vector<8x128xf32>
    %cst_118 = arith.constant 9.99999993E-9 : f32
    %188 = vector.broadcast %cst_118 : f32 to vector<8x128xf32>
    %189 = arith.addf %187, %188 : vector<8x128xf32>
    %190 = tpu.reciprocal %189 {approx = true} : vector<8x128xf32> -> vector<8x128xf32>
    %191 = arith.truncf %190 : vector<8x128xf32> to vector<8x128xbf16>
    %192 = arith.mulf %186, %191 : vector<8x128xbf16>
    %cst_119 = arith.constant dense<0.000000e+00> : vector<8x128xf32>
    %193 = tpu.matmul %192, %185, %cst_119 {dimension_numbers = #tpu.dot_dimension_numbers<[1], [1], [0], [0], [0, 0, 1, 0], [], []>} : vector<8x128xbf16>, vector<128x128xbf16>, vector<8x128xf32> -> vector<8x128xf32>
    %194 = arith.addf %184, %193 : vector<8x128xf32>
    %195 = arith.mulf %182, %194 : vector<8x128xf32>
    %c15_i32 = arith.constant 15 : i32
    %196 = arith.truncf %195 : vector<8x128xf32> to vector<8x128xbf16>
    %cst_120 = arith.constant 0.000000e+00 : f32
    %197 = vector.broadcast %cst_120 : f32 to vector<8x128xf32>
    %c0_121 = arith.constant 0 : index
    %c0_122 = arith.constant 0 : index
    %198 = vector.load %arg3[%c0_121, %c0_122] : memref<128x128xbf16, #tpu.memory_space<vmem>>, vector<128x128xbf16>
    %c0_123 = arith.constant 0 : index
    %c0_124 = arith.constant 0 : index
    %199 = vector.load %arg1[%c0_123, %c0_124] : memref<8x128xbf16, #tpu.memory_space<vmem>>, vector<8x128xbf16>
    %cst_125 = arith.constant dense<0.000000e+00> : vector<8x128xf32>
    %200 = tpu.matmul %196, %198, %cst_125 {dimension_numbers = #tpu.dot_dimension_numbers<[1], [0], [0], [1], [0, 0, 1, 1], [], []>} : vector<8x128xbf16>, vector<128x128xbf16>, vector<8x128xf32> -> vector<8x128xf32>
    %cst_126 = arith.constant 9.99999993E-9 : f32
    %201 = vector.broadcast %cst_126 : f32 to vector<8x128xf32>
    %202 = arith.addf %200, %201 : vector<8x128xf32>
    %203 = tpu.reciprocal %202 {approx = true} : vector<8x128xf32> -> vector<8x128xf32>
    %204 = arith.truncf %203 : vector<8x128xf32> to vector<8x128xbf16>
    %205 = arith.mulf %199, %204 : vector<8x128xbf16>
    %cst_127 = arith.constant dense<0.000000e+00> : vector<8x128xf32>
    %206 = tpu.matmul %205, %198, %cst_127 {dimension_numbers = #tpu.dot_dimension_numbers<[1], [1], [0], [0], [0, 0, 1, 0], [], []>} : vector<8x128xbf16>, vector<128x128xbf16>, vector<8x128xf32> -> vector<8x128xf32>
    %207 = arith.addf %197, %206 : vector<8x128xf32>
    %208 = arith.mulf %195, %207 : vector<8x128xf32>
    %c16_i32 = arith.constant 16 : i32
    %209 = arith.truncf %208 : vector<8x128xf32> to vector<8x128xbf16>
    %cst_128 = arith.constant 0.000000e+00 : f32
    %210 = vector.broadcast %cst_128 : f32 to vector<8x128xf32>
    %c0_129 = arith.constant 0 : index
    %c0_130 = arith.constant 0 : index
    %211 = vector.load %arg3[%c0_129, %c0_130] : memref<128x128xbf16, #tpu.memory_space<vmem>>, vector<128x128xbf16>
    %c0_131 = arith.constant 0 : index
    %c0_132 = arith.constant 0 : index
    %212 = vector.load %arg1[%c0_131, %c0_132] : memref<8x128xbf16, #tpu.memory_space<vmem>>, vector<8x128xbf16>
    %cst_133 = arith.constant dense<0.000000e+00> : vector<8x128xf32>
    %213 = tpu.matmul %209, %211, %cst_133 {dimension_numbers = #tpu.dot_dimension_numbers<[1], [0], [0], [1], [0, 0, 1, 1], [], []>} : vector<8x128xbf16>, vector<128x128xbf16>, vector<8x128xf32> -> vector<8x128xf32>
    %cst_134 = arith.constant 9.99999993E-9 : f32
    %214 = vector.broadcast %cst_134 : f32 to vector<8x128xf32>
    %215 = arith.addf %213, %214 : vector<8x128xf32>
    %216 = tpu.reciprocal %215 {approx = true} : vector<8x128xf32> -> vector<8x128xf32>
    %217 = arith.truncf %216 : vector<8x128xf32> to vector<8x128xbf16>
    %218 = arith.mulf %212, %217 : vector<8x128xbf16>
    %cst_135 = arith.constant dense<0.000000e+00> : vector<8x128xf32>
    %219 = tpu.matmul %218, %211, %cst_135 {dimension_numbers = #tpu.dot_dimension_numbers<[1], [1], [0], [0], [0, 0, 1, 0], [], []>} : vector<8x128xbf16>, vector<128x128xbf16>, vector<8x128xf32> -> vector<8x128xf32>
    %220 = arith.addf %210, %219 : vector<8x128xf32>
    %221 = arith.mulf %208, %220 : vector<8x128xf32>
    %c17_i32 = arith.constant 17 : i32
    %222 = arith.truncf %221 : vector<8x128xf32> to vector<8x128xbf16>
    %cst_136 = arith.constant 0.000000e+00 : f32
    %223 = vector.broadcast %cst_136 : f32 to vector<8x128xf32>
    %c0_137 = arith.constant 0 : index
    %c0_138 = arith.constant 0 : index
    %224 = vector.load %arg3[%c0_137, %c0_138] : memref<128x128xbf16, #tpu.memory_space<vmem>>, vector<128x128xbf16>
    %c0_139 = arith.constant 0 : index
    %c0_140 = arith.constant 0 : index
    %225 = vector.load %arg1[%c0_139, %c0_140] : memref<8x128xbf16, #tpu.memory_space<vmem>>, vector<8x128xbf16>
    %cst_141 = arith.constant dense<0.000000e+00> : vector<8x128xf32>
    %226 = tpu.matmul %222, %224, %cst_141 {dimension_numbers = #tpu.dot_dimension_numbers<[1], [0], [0], [1], [0, 0, 1, 1], [], []>} : vector<8x128xbf16>, vector<128x128xbf16>, vector<8x128xf32> -> vector<8x128xf32>
    %cst_142 = arith.constant 9.99999993E-9 : f32
    %227 = vector.broadcast %cst_142 : f32 to vector<8x128xf32>
    %228 = arith.addf %226, %227 : vector<8x128xf32>
    %229 = tpu.reciprocal %228 {approx = true} : vector<8x128xf32> -> vector<8x128xf32>
    %230 = arith.truncf %229 : vector<8x128xf32> to vector<8x128xbf16>
    %231 = arith.mulf %225, %230 : vector<8x128xbf16>
    %cst_143 = arith.constant dense<0.000000e+00> : vector<8x128xf32>
    %232 = tpu.matmul %231, %224, %cst_143 {dimension_numbers = #tpu.dot_dimension_numbers<[1], [1], [0], [0], [0, 0, 1, 0], [], []>} : vector<8x128xbf16>, vector<128x128xbf16>, vector<8x128xf32> -> vector<8x128xf32>
    %233 = arith.addf %223, %232 : vector<8x128xf32>
    %234 = arith.mulf %221, %233 : vector<8x128xf32>
    %c18_i32 = arith.constant 18 : i32
    %235 = arith.truncf %234 : vector<8x128xf32> to vector<8x128xbf16>
    %cst_144 = arith.constant 0.000000e+00 : f32
    %236 = vector.broadcast %cst_144 : f32 to vector<8x128xf32>
    %c0_145 = arith.constant 0 : index
    %c0_146 = arith.constant 0 : index
    %237 = vector.load %arg3[%c0_145, %c0_146] : memref<128x128xbf16, #tpu.memory_space<vmem>>, vector<128x128xbf16>
    %c0_147 = arith.constant 0 : index
    %c0_148 = arith.constant 0 : index
    %238 = vector.load %arg1[%c0_147, %c0_148] : memref<8x128xbf16, #tpu.memory_space<vmem>>, vector<8x128xbf16>
    %cst_149 = arith.constant dense<0.000000e+00> : vector<8x128xf32>
    %239 = tpu.matmul %235, %237, %cst_149 {dimension_numbers = #tpu.dot_dimension_numbers<[1], [0], [0], [1], [0, 0, 1, 1], [], []>} : vector<8x128xbf16>, vector<128x128xbf16>, vector<8x128xf32> -> vector<8x128xf32>
    %cst_150 = arith.constant 9.99999993E-9 : f32
    %240 = vector.broadcast %cst_150 : f32 to vector<8x128xf32>
    %241 = arith.addf %239, %240 : vector<8x128xf32>
    %242 = tpu.reciprocal %241 {approx = true} : vector<8x128xf32> -> vector<8x128xf32>
    %243 = arith.truncf %242 : vector<8x128xf32> to vector<8x128xbf16>
    %244 = arith.mulf %238, %243 : vector<8x128xbf16>
    %cst_151 = arith.constant dense<0.000000e+00> : vector<8x128xf32>
    %245 = tpu.matmul %244, %237, %cst_151 {dimension_numbers = #tpu.dot_dimension_numbers<[1], [1], [0], [0], [0, 0, 1, 0], [], []>} : vector<8x128xbf16>, vector<128x128xbf16>, vector<8x128xf32> -> vector<8x128xf32>
    %246 = arith.addf %236, %245 : vector<8x128xf32>
    %247 = arith.mulf %234, %246 : vector<8x128xf32>
    %c19_i32 = arith.constant 19 : i32
    %248 = arith.truncf %247 : vector<8x128xf32> to vector<8x128xbf16>
    %cst_152 = arith.constant 0.000000e+00 : f32
    %249 = vector.broadcast %cst_152 : f32 to vector<8x128xf32>
    %c0_153 = arith.constant 0 : index
    %c0_154 = arith.constant 0 : index
    %250 = vector.load %arg3[%c0_153, %c0_154] : memref<128x128xbf16, #tpu.memory_space<vmem>>, vector<128x128xbf16>
    %c0_155 = arith.constant 0 : index
    %c0_156 = arith.constant 0 : index
    %251 = vector.load %arg1[%c0_155, %c0_156] : memref<8x128xbf16, #tpu.memory_space<vmem>>, vector<8x128xbf16>
    %cst_157 = arith.constant dense<0.000000e+00> : vector<8x128xf32>
    %252 = tpu.matmul %248, %250, %cst_157 {dimension_numbers = #tpu.dot_dimension_numbers<[1], [0], [0], [1], [0, 0, 1, 1], [], []>} : vector<8x128xbf16>, vector<128x128xbf16>, vector<8x128xf32> -> vector<8x128xf32>
    %cst_158 = arith.constant 9.99999993E-9 : f32
    %253 = vector.broadcast %cst_158 : f32 to vector<8x128xf32>
    %254 = arith.addf %252, %253 : vector<8x128xf32>
    %255 = tpu.reciprocal %254 {approx = true} : vector<8x128xf32> -> vector<8x128xf32>
    %256 = arith.truncf %255 : vector<8x128xf32> to vector<8x128xbf16>
    %257 = arith.mulf %251, %256 : vector<8x128xbf16>
    %cst_159 = arith.constant dense<0.000000e+00> : vector<8x128xf32>
    %258 = tpu.matmul %257, %250, %cst_159 {dimension_numbers = #tpu.dot_dimension_numbers<[1], [1], [0], [0], [0, 0, 1, 0], [], []>} : vector<8x128xbf16>, vector<128x128xbf16>, vector<8x128xf32> -> vector<8x128xf32>
    %259 = arith.addf %249, %258 : vector<8x128xf32>
    %260 = arith.mulf %247, %259 : vector<8x128xf32>
    %cst_160 = arith.constant dense<0.000000e+00> : vector<8xf32>
    %261 = vector.multi_reduction <add>, %260, %cst_160 [1] : vector<8x128xf32> to vector<8xf32>
    %262 = vector.shape_cast %261 : vector<8xf32> to vector<8x1xf32>
    %cst_161 = arith.constant 9.99999993E-9 : f32
    %263 = vector.broadcast %cst_161 : f32 to vector<8x1xf32>
    %264 = arith.addf %262, %263 : vector<8x1xf32>
    %265 = tpu.reciprocal %264 : vector<8x1xf32> -> vector<8x1xf32>
    %266 = vector.broadcast %265 : vector<8x1xf32> to vector<8x128xf32>
    %267 = arith.mulf %260, %266 : vector<8x128xf32>
    %268 = tpu.iota {dimensions = array<i32: 1>} : vector<8x128xi32>
    %c16_i32_162 = arith.constant 16 : i32
    %269 = vector.broadcast %c16_i32_162 : i32 to vector<8x128xi32>
    %270 = arith.cmpi slt, %268, %269 : vector<8x128xi32>
    %cst_163 = arith.constant 6.250000e-02 : f32
    %cst_164 = arith.constant 0.000000e+00 : f32
    %271 = vector.broadcast %cst_163 : f32 to vector<8x128xf32>
    %272 = vector.broadcast %cst_164 : f32 to vector<8x128xf32>
    %273 = arith.select %270, %271, %272 : vector<8x128xi1>, vector<8x128xf32>
    %cst_165 = arith.constant 9.99999993E-9 : f32
    %274 = vector.broadcast %cst_165 : f32 to vector<8x1xf32>
    %275 = arith.cmpf ogt, %262, %274 : vector<8x1xf32>
    %276 = vector.shape_cast %275 : vector<8x1xi1> to vector<8x1xi1>
    %277 = vector.broadcast %276 : vector<8x1xi1> to vector<8x128xi1>
    %278 = arith.select %277, %267, %273 : vector<8x128xi1>, vector<8x128xf32>
    %c0_166 = arith.constant 0 : index
    %c0_167 = arith.constant 0 : index
    %279 = vector.load %arg4[%c0_166, %c0_167] : memref<8x128xf32, #tpu.memory_space<vmem>>, vector<8x128xf32>
    tpu.vector_store %arg4[%c0_166, %c0_167], %278 {strides = array<i32>} : memref<8x128xf32, #tpu.memory_space<vmem>>, vector<8x128xf32>,
    return
  }
  func.func @transform_0(%arg0: i32) -> (i32, i32) {
    %c0_i32 = arith.constant 0 : i32
    %c0_i32_0 = arith.constant 0 : i32
    return %arg0, %c0_i32 : i32, i32
  }
  func.func @transform_1(%arg0: i32) -> (i32, i32) {
    %c0_i32 = arith.constant 0 : i32
    %c0_i32_0 = arith.constant 0 : i32
    return %arg0, %c0_i32 : i32, i32
  }
  func.func @transform_2(%arg0: i32) -> (i32, i32) {
    %c0_i32 = arith.constant 0 : i32
    %c0_i32_0 = arith.constant 0 : i32
    %c0_i32_1 = arith.constant 0 : i32
    return %c0_i32, %c0_i32_0 : i32, i32
  }
  func.func @transform_3(%arg0: i32) -> (i32, i32) {
    %c0_i32 = arith.constant 0 : i32
    %c0_i32_0 = arith.constant 0 : i32
    return %arg0, %c0_i32 : i32, i32
  }
}

module attributes {stable_mosaic.version = 11 : i64} {
  func.func @lda_em_kernel(%arg0: i32, %arg1: memref<8x128xbf16, #tpu.memory_space<vmem>>, %arg2: memref<8x128xf32, #tpu.memory_space<vmem>>, %arg3: memref<128x128xbf16, #tpu.memory_space<vmem>>, %arg4: memref<8x128xf32, #tpu.memory_space<vmem>>) attributes {dimension_semantics = [#tpu.dimension_semantics<parallel>], iteration_bounds = array<i64: 2>, scalar_prefetch = 0 : i64, scratch_operands = 0 : i64, tpu.core_type = #tpu.core_type<tc>, window_params = [{transform_indices = @transform_0, window_bounds = array<i64: 8, 128>}, {transform_indices = @transform_1, window_bounds = array<i64: 8, 128>}, {pipeline_mode = #tpu.pipeline_mode<synchronous>, transform_indices = @transform_2, window_bounds = array<i64: 128, 128>}, {transform_indices = @transform_3, window_bounds = array<i64: 8, 128>}]} {
    %c0 = arith.constant 0 : index
    %c0_0 = arith.constant 0 : index
    %0 = vector.load %arg2[%c0, %c0_0] : memref<8x128xf32, #tpu.memory_space<vmem>>, vector<8x128xf32>
    %c0_i32 = arith.constant 0 : i32
    %1 = arith.truncf %0 : vector<8x128xf32> to vector<8x128xbf16>
    %cst = arith.constant 0.000000e+00 : f32
    %2 = vector.broadcast %cst : f32 to vector<8x128xf32>
    %c0_1 = arith.constant 0 : index
    %c0_2 = arith.constant 0 : index
    %3 = vector.load %arg3[%c0_1, %c0_2] : memref<128x128xbf16, #tpu.memory_space<vmem>>, vector<128x128xbf16>
    %c0_3 = arith.constant 0 : index
    %c0_4 = arith.constant 0 : index
    %4 = vector.load %arg1[%c0_3, %c0_4] : memref<8x128xbf16, #tpu.memory_space<vmem>>, vector<8x128xbf16>
    %cst_5 = arith.constant dense<0.000000e+00> : vector<8x128xf32>
    %5 = tpu.matmul %1, %3, %cst_5 {dimension_numbers = #tpu.dot_dimension_numbers<[1], [0], [0], [1], [0, 0, 1, 1], [], []>} : vector<8x128xbf16>, vector<128x128xbf16>, vector<8x128xf32> -> vector<8x128xf32>
    %cst_6 = arith.constant 9.99999993E-9 : f32
    %6 = vector.broadcast %cst_6 : f32 to vector<8x128xf32>
    %7 = arith.addf %5, %6 : vector<8x128xf32>
    %8 = tpu.reciprocal %7 {approx = true} : vector<8x128xf32> -> vector<8x128xf32>
    %9 = arith.truncf %8 : vector<8x128xf32> to vector<8x128xbf16>
    %10 = arith.mulf %4, %9 : vector<8x128xbf16>
    %cst_7 = arith.constant dense<0.000000e+00> : vector<8x128xf32>
    %11 = tpu.matmul %10, %3, %cst_7 {dimension_numbers = #tpu.dot_dimension_numbers<[1], [1], [0], [0], [0, 0, 1, 0], [], []>} : vector<8x128xbf16>, vector<128x128xbf16>, vector<8x128xf32> -> vector<8x128xf32>
    %12 = arith.addf %2, %11 : vector<8x128xf32>
    %13 = arith.mulf %0, %12 : vector<8x128xf32>
    %c1_i32 = arith.constant 1 : i32
    %14 = arith.truncf %13 : vector<8x128xf32> to vector<8x128xbf16>
    %cst_8 = arith.constant 0.000000e+00 : f32
    %15 = vector.broadcast %cst_8 : f32 to vector<8x128xf32>
    %c0_9 = arith.constant 0 : index
    %c0_10 = arith.constant 0 : index
    %16 = vector.load %arg3[%c0_9, %c0_10] : memref<128x128xbf16, #tpu.memory_space<vmem>>, vector<128x128xbf16>
    %c0_11 = arith.constant 0 : index
    %c0_12 = arith.constant 0 : index
    %17 = vector.load %arg1[%c0_11, %c0_12] : memref<8x128xbf16, #tpu.memory_space<vmem>>, vector<8x128xbf16>
    %cst_13 = arith.constant dense<0.000000e+00> : vector<8x128xf32>
    %18 = tpu.matmul %14, %16, %cst_13 {dimension_numbers = #tpu.dot_dimension_numbers<[1], [0], [0], [1], [0, 0, 1, 1], [], []>} : vector<8x128xbf16>, vector<128x128xbf16>, vector<8x128xf32> -> vector<8x128xf32>
    %cst_14 = arith.constant 9.99999993E-9 : f32
    %19 = vector.broadcast %cst_14 : f32 to vector<8x128xf32>
    %20 = arith.addf %18, %19 : vector<8x128xf32>
    %21 = tpu.reciprocal %20 {approx = true} : vector<8x128xf32> -> vector<8x128xf32>
    %22 = arith.truncf %21 : vector<8x128xf32> to vector<8x128xbf16>
    %23 = arith.mulf %17, %22 : vector<8x128xbf16>
    %cst_15 = arith.constant dense<0.000000e+00> : vector<8x128xf32>
    %24 = tpu.matmul %23, %16, %cst_15 {dimension_numbers = #tpu.dot_dimension_numbers<[1], [1], [0], [0], [0, 0, 1, 0], [], []>} : vector<8x128xbf16>, vector<128x128xbf16>, vector<8x128xf32> -> vector<8x128xf32>
    %25 = arith.addf %15, %24 : vector<8x128xf32>
    %26 = arith.mulf %13, %25 : vector<8x128xf32>
    %c2_i32 = arith.constant 2 : i32
    %27 = arith.truncf %26 : vector<8x128xf32> to vector<8x128xbf16>
    %cst_16 = arith.constant 0.000000e+00 : f32
    %28 = vector.broadcast %cst_16 : f32 to vector<8x128xf32>
    %c0_17 = arith.constant 0 : index
    %c0_18 = arith.constant 0 : index
    %29 = vector.load %arg3[%c0_17, %c0_18] : memref<128x128xbf16, #tpu.memory_space<vmem>>, vector<128x128xbf16>
    %c0_19 = arith.constant 0 : index
    %c0_20 = arith.constant 0 : index
    %30 = vector.load %arg1[%c0_19, %c0_20] : memref<8x128xbf16, #tpu.memory_space<vmem>>, vector<8x128xbf16>
    %cst_21 = arith.constant dense<0.000000e+00> : vector<8x128xf32>
    %31 = tpu.matmul %27, %29, %cst_21 {dimension_numbers = #tpu.dot_dimension_numbers<[1], [0], [0], [1], [0, 0, 1, 1], [], []>} : vector<8x128xbf16>, vector<128x128xbf16>, vector<8x128xf32> -> vector<8x128xf32>
    %cst_22 = arith.constant 9.99999993E-9 : f32
    %32 = vector.broadcast %cst_22 : f32 to vector<8x128xf32>
    %33 = arith.addf %31, %32 : vector<8x128xf32>
    %34 = tpu.reciprocal %33 {approx = true} : vector<8x128xf32> -> vector<8x128xf32>
    %35 = arith.truncf %34 : vector<8x128xf32> to vector<8x128xbf16>
    %36 = arith.mulf %30, %35 : vector<8x128xbf16>
    %cst_23 = arith.constant dense<0.000000e+00> : vector<8x128xf32>
    %37 = tpu.matmul %36, %29, %cst_23 {dimension_numbers = #tpu.dot_dimension_numbers<[1], [1], [0], [0], [0, 0, 1, 0], [], []>} : vector<8x128xbf16>, vector<128x128xbf16>, vector<8x128xf32> -> vector<8x128xf32>
    %38 = arith.addf %28, %37 : vector<8x128xf32>
    %39 = arith.mulf %26, %38 : vector<8x128xf32>
    %c3_i32 = arith.constant 3 : i32
    %40 = arith.truncf %39 : vector<8x128xf32> to vector<8x128xbf16>
    %cst_24 = arith.constant 0.000000e+00 : f32
    %41 = vector.broadcast %cst_24 : f32 to vector<8x128xf32>
    %c0_25 = arith.constant 0 : index
    %c0_26 = arith.constant 0 : index
    %42 = vector.load %arg3[%c0_25, %c0_26] : memref<128x128xbf16, #tpu.memory_space<vmem>>, vector<128x128xbf16>
    %c0_27 = arith.constant 0 : index
    %c0_28 = arith.constant 0 : index
    %43 = vector.load %arg1[%c0_27, %c0_28] : memref<8x128xbf16, #tpu.memory_space<vmem>>, vector<8x128xbf16>
    %cst_29 = arith.constant dense<0.000000e+00> : vector<8x128xf32>
    %44 = tpu.matmul %40, %42, %cst_29 {dimension_numbers = #tpu.dot_dimension_numbers<[1], [0], [0], [1], [0, 0, 1, 1], [], []>} : vector<8x128xbf16>, vector<128x128xbf16>, vector<8x128xf32> -> vector<8x128xf32>
    %cst_30 = arith.constant 9.99999993E-9 : f32
    %45 = vector.broadcast %cst_30 : f32 to vector<8x128xf32>
    %46 = arith.addf %44, %45 : vector<8x128xf32>
    %47 = tpu.reciprocal %46 {approx = true} : vector<8x128xf32> -> vector<8x128xf32>
    %48 = arith.truncf %47 : vector<8x128xf32> to vector<8x128xbf16>
    %49 = arith.mulf %43, %48 : vector<8x128xbf16>
    %cst_31 = arith.constant dense<0.000000e+00> : vector<8x128xf32>
    %50 = tpu.matmul %49, %42, %cst_31 {dimension_numbers = #tpu.dot_dimension_numbers<[1], [1], [0], [0], [0, 0, 1, 0], [], []>} : vector<8x128xbf16>, vector<128x128xbf16>, vector<8x128xf32> -> vector<8x128xf32>
    %51 = arith.addf %41, %50 : vector<8x128xf32>
    %52 = arith.mulf %39, %51 : vector<8x128xf32>
    %c4_i32 = arith.constant 4 : i32
    %53 = arith.truncf %52 : vector<8x128xf32> to vector<8x128xbf16>
    %cst_32 = arith.constant 0.000000e+00 : f32
    %54 = vector.broadcast %cst_32 : f32 to vector<8x128xf32>
    %c0_33 = arith.constant 0 : index
    %c0_34 = arith.constant 0 : index
    %55 = vector.load %arg3[%c0_33, %c0_34] : memref<128x128xbf16, #tpu.memory_space<vmem>>, vector<128x128xbf16>
    %c0_35 = arith.constant 0 : index
    %c0_36 = arith.constant 0 : index
    %56 = vector.load %arg1[%c0_35, %c0_36] : memref<8x128xbf16, #tpu.memory_space<vmem>>, vector<8x128xbf16>
    %cst_37 = arith.constant dense<0.000000e+00> : vector<8x128xf32>
    %57 = tpu.matmul %53, %55, %cst_37 {dimension_numbers = #tpu.dot_dimension_numbers<[1], [0], [0], [1], [0, 0, 1, 1], [], []>} : vector<8x128xbf16>, vector<128x128xbf16>, vector<8x128xf32> -> vector<8x128xf32>
    %cst_38 = arith.constant 9.99999993E-9 : f32
    %58 = vector.broadcast %cst_38 : f32 to vector<8x128xf32>
    %59 = arith.addf %57, %58 : vector<8x128xf32>
    %60 = tpu.reciprocal %59 {approx = true} : vector<8x128xf32> -> vector<8x128xf32>
    %61 = arith.truncf %60 : vector<8x128xf32> to vector<8x128xbf16>
    %62 = arith.mulf %56, %61 : vector<8x128xbf16>
    %cst_39 = arith.constant dense<0.000000e+00> : vector<8x128xf32>
    %63 = tpu.matmul %62, %55, %cst_39 {dimension_numbers = #tpu.dot_dimension_numbers<[1], [1], [0], [0], [0, 0, 1, 0], [], []>} : vector<8x128xbf16>, vector<128x128xbf16>, vector<8x128xf32> -> vector<8x128xf32>
    %64 = arith.addf %54, %63 : vector<8x128xf32>
    %65 = arith.mulf %52, %64 : vector<8x128xf32>
    %c5_i32 = arith.constant 5 : i32
    %66 = arith.truncf %65 : vector<8x128xf32> to vector<8x128xbf16>
    %cst_40 = arith.constant 0.000000e+00 : f32
    %67 = vector.broadcast %cst_40 : f32 to vector<8x128xf32>
    %c0_41 = arith.constant 0 : index
    %c0_42 = arith.constant 0 : index
    %68 = vector.load %arg3[%c0_41, %c0_42] : memref<128x128xbf16, #tpu.memory_space<vmem>>, vector<128x128xbf16>
    %c0_43 = arith.constant 0 : index
    %c0_44 = arith.constant 0 : index
    %69 = vector.load %arg1[%c0_43, %c0_44] : memref<8x128xbf16, #tpu.memory_space<vmem>>, vector<8x128xbf16>
    %cst_45 = arith.constant dense<0.000000e+00> : vector<8x128xf32>
    %70 = tpu.matmul %66, %68, %cst_45 {dimension_numbers = #tpu.dot_dimension_numbers<[1], [0], [0], [1], [0, 0, 1, 1], [], []>} : vector<8x128xbf16>, vector<128x128xbf16>, vector<8x128xf32> -> vector<8x128xf32>
    %cst_46 = arith.constant 9.99999993E-9 : f32
    %71 = vector.broadcast %cst_46 : f32 to vector<8x128xf32>
    %72 = arith.addf %70, %71 : vector<8x128xf32>
    %73 = tpu.reciprocal %72 {approx = true} : vector<8x128xf32> -> vector<8x128xf32>
    %74 = arith.truncf %73 : vector<8x128xf32> to vector<8x128xbf16>
    %75 = arith.mulf %69, %74 : vector<8x128xbf16>
    %cst_47 = arith.constant dense<0.000000e+00> : vector<8x128xf32>
    %76 = tpu.matmul %75, %68, %cst_47 {dimension_numbers = #tpu.dot_dimension_numbers<[1], [1], [0], [0], [0, 0, 1, 0], [], []>} : vector<8x128xbf16>, vector<128x128xbf16>, vector<8x128xf32> -> vector<8x128xf32>
    %77 = arith.addf %67, %76 : vector<8x128xf32>
    %78 = arith.mulf %65, %77 : vector<8x128xf32>
    %c6_i32 = arith.constant 6 : i32
    %79 = arith.truncf %78 : vector<8x128xf32> to vector<8x128xbf16>
    %cst_48 = arith.constant 0.000000e+00 : f32
    %80 = vector.broadcast %cst_48 : f32 to vector<8x128xf32>
    %c0_49 = arith.constant 0 : index
    %c0_50 = arith.constant 0 : index
    %81 = vector.load %arg3[%c0_49, %c0_50] : memref<128x128xbf16, #tpu.memory_space<vmem>>, vector<128x128xbf16>
    %c0_51 = arith.constant 0 : index
    %c0_52 = arith.constant 0 : index
    %82 = vector.load %arg1[%c0_51, %c0_52] : memref<8x128xbf16, #tpu.memory_space<vmem>>, vector<8x128xbf16>
    %cst_53 = arith.constant dense<0.000000e+00> : vector<8x128xf32>
    %83 = tpu.matmul %79, %81, %cst_53 {dimension_numbers = #tpu.dot_dimension_numbers<[1], [0], [0], [1], [0, 0, 1, 1], [], []>} : vector<8x128xbf16>, vector<128x128xbf16>, vector<8x128xf32> -> vector<8x128xf32>
    %cst_54 = arith.constant 9.99999993E-9 : f32
    %84 = vector.broadcast %cst_54 : f32 to vector<8x128xf32>
    %85 = arith.addf %83, %84 : vector<8x128xf32>
    %86 = tpu.reciprocal %85 {approx = true} : vector<8x128xf32> -> vector<8x128xf32>
    %87 = arith.truncf %86 : vector<8x128xf32> to vector<8x128xbf16>
    %88 = arith.mulf %82, %87 : vector<8x128xbf16>
    %cst_55 = arith.constant dense<0.000000e+00> : vector<8x128xf32>
    %89 = tpu.matmul %88, %81, %cst_55 {dimension_numbers = #tpu.dot_dimension_numbers<[1], [1], [0], [0], [0, 0, 1, 0], [], []>} : vector<8x128xbf16>, vector<128x128xbf16>, vector<8x128xf32> -> vector<8x128xf32>
    %90 = arith.addf %80, %89 : vector<8x128xf32>
    %91 = arith.mulf %78, %90 : vector<8x128xf32>
    %c7_i32 = arith.constant 7 : i32
    %92 = arith.truncf %91 : vector<8x128xf32> to vector<8x128xbf16>
    %cst_56 = arith.constant 0.000000e+00 : f32
    %93 = vector.broadcast %cst_56 : f32 to vector<8x128xf32>
    %c0_57 = arith.constant 0 : index
    %c0_58 = arith.constant 0 : index
    %94 = vector.load %arg3[%c0_57, %c0_58] : memref<128x128xbf16, #tpu.memory_space<vmem>>, vector<128x128xbf16>
    %c0_59 = arith.constant 0 : index
    %c0_60 = arith.constant 0 : index
    %95 = vector.load %arg1[%c0_59, %c0_60] : memref<8x128xbf16, #tpu.memory_space<vmem>>, vector<8x128xbf16>
    %cst_61 = arith.constant dense<0.000000e+00> : vector<8x128xf32>
    %96 = tpu.matmul %92, %94, %cst_61 {dimension_numbers = #tpu.dot_dimension_numbers<[1], [0], [0], [1], [0, 0, 1, 1], [], []>} : vector<8x128xbf16>, vector<128x128xbf16>, vector<8x128xf32> -> vector<8x128xf32>
    %cst_62 = arith.constant 9.99999993E-9 : f32
    %97 = vector.broadcast %cst_62 : f32 to vector<8x128xf32>
    %98 = arith.addf %96, %97 : vector<8x128xf32>
    %99 = tpu.reciprocal %98 {approx = true} : vector<8x128xf32> -> vector<8x128xf32>
    %100 = arith.truncf %99 : vector<8x128xf32> to vector<8x128xbf16>
    %101 = arith.mulf %95, %100 : vector<8x128xbf16>
    %cst_63 = arith.constant dense<0.000000e+00> : vector<8x128xf32>
    %102 = tpu.matmul %101, %94, %cst_63 {dimension_numbers = #tpu.dot_dimension_numbers<[1], [1], [0], [0], [0, 0, 1, 0], [], []>} : vector<8x128xbf16>, vector<128x128xbf16>, vector<8x128xf32> -> vector<8x128xf32>
    %103 = arith.addf %93, %102 : vector<8x128xf32>
    %104 = arith.mulf %91, %103 : vector<8x128xf32>
    %c8_i32 = arith.constant 8 : i32
    %105 = arith.truncf %104 : vector<8x128xf32> to vector<8x128xbf16>
    %cst_64 = arith.constant 0.000000e+00 : f32
    %106 = vector.broadcast %cst_64 : f32 to vector<8x128xf32>
    %c0_65 = arith.constant 0 : index
    %c0_66 = arith.constant 0 : index
    %107 = vector.load %arg3[%c0_65, %c0_66] : memref<128x128xbf16, #tpu.memory_space<vmem>>, vector<128x128xbf16>
    %c0_67 = arith.constant 0 : index
    %c0_68 = arith.constant 0 : index
    %108 = vector.load %arg1[%c0_67, %c0_68] : memref<8x128xbf16, #tpu.memory_space<vmem>>, vector<8x128xbf16>
    %cst_69 = arith.constant dense<0.000000e+00> : vector<8x128xf32>
    %109 = tpu.matmul %105, %107, %cst_69 {dimension_numbers = #tpu.dot_dimension_numbers<[1], [0], [0], [1], [0, 0, 1, 1], [], []>} : vector<8x128xbf16>, vector<128x128xbf16>, vector<8x128xf32> -> vector<8x128xf32>
    %cst_70 = arith.constant 9.99999993E-9 : f32
    %110 = vector.broadcast %cst_70 : f32 to vector<8x128xf32>
    %111 = arith.addf %109, %110 : vector<8x128xf32>
    %112 = tpu.reciprocal %111 {approx = true} : vector<8x128xf32> -> vector<8x128xf32>
    %113 = arith.truncf %112 : vector<8x128xf32> to vector<8x128xbf16>
    %114 = arith.mulf %108, %113 : vector<8x128xbf16>
    %cst_71 = arith.constant dense<0.000000e+00> : vector<8x128xf32>
    %115 = tpu.matmul %114, %107, %cst_71 {dimension_numbers = #tpu.dot_dimension_numbers<[1], [1], [0], [0], [0, 0, 1, 0], [], []>} : vector<8x128xbf16>, vector<128x128xbf16>, vector<8x128xf32> -> vector<8x128xf32>
    %116 = arith.addf %106, %115 : vector<8x128xf32>
    %117 = arith.mulf %104, %116 : vector<8x128xf32>
    %c9_i32 = arith.constant 9 : i32
    %118 = arith.truncf %117 : vector<8x128xf32> to vector<8x128xbf16>
    %cst_72 = arith.constant 0.000000e+00 : f32
    %119 = vector.broadcast %cst_72 : f32 to vector<8x128xf32>
    %c0_73 = arith.constant 0 : index
    %c0_74 = arith.constant 0 : index
    %120 = vector.load %arg3[%c0_73, %c0_74] : memref<128x128xbf16, #tpu.memory_space<vmem>>, vector<128x128xbf16>
    %c0_75 = arith.constant 0 : index
    %c0_76 = arith.constant 0 : index
    %121 = vector.load %arg1[%c0_75, %c0_76] : memref<8x128xbf16, #tpu.memory_space<vmem>>, vector<8x128xbf16>
    %cst_77 = arith.constant dense<0.000000e+00> : vector<8x128xf32>
    %122 = tpu.matmul %118, %120, %cst_77 {dimension_numbers = #tpu.dot_dimension_numbers<[1], [0], [0], [1], [0, 0, 1, 1], [], []>} : vector<8x128xbf16>, vector<128x128xbf16>, vector<8x128xf32> -> vector<8x128xf32>
    %cst_78 = arith.constant 9.99999993E-9 : f32
    %123 = vector.broadcast %cst_78 : f32 to vector<8x128xf32>
    %124 = arith.addf %122, %123 : vector<8x128xf32>
    %125 = tpu.reciprocal %124 {approx = true} : vector<8x128xf32> -> vector<8x128xf32>
    %126 = arith.truncf %125 : vector<8x128xf32> to vector<8x128xbf16>
    %127 = arith.mulf %121, %126 : vector<8x128xbf16>
    %cst_79 = arith.constant dense<0.000000e+00> : vector<8x128xf32>
    %128 = tpu.matmul %127, %120, %cst_79 {dimension_numbers = #tpu.dot_dimension_numbers<[1], [1], [0], [0], [0, 0, 1, 0], [], []>} : vector<8x128xbf16>, vector<128x128xbf16>, vector<8x128xf32> -> vector<8x128xf32>
    %129 = arith.addf %119, %128 : vector<8x128xf32>
    %130 = arith.mulf %117, %129 : vector<8x128xf32>
    %c10_i32 = arith.constant 10 : i32
    %131 = arith.truncf %130 : vector<8x128xf32> to vector<8x128xbf16>
    %cst_80 = arith.constant 0.000000e+00 : f32
    %132 = vector.broadcast %cst_80 : f32 to vector<8x128xf32>
    %c0_81 = arith.constant 0 : index
    %c0_82 = arith.constant 0 : index
    %133 = vector.load %arg3[%c0_81, %c0_82] : memref<128x128xbf16, #tpu.memory_space<vmem>>, vector<128x128xbf16>
    %c0_83 = arith.constant 0 : index
    %c0_84 = arith.constant 0 : index
    %134 = vector.load %arg1[%c0_83, %c0_84] : memref<8x128xbf16, #tpu.memory_space<vmem>>, vector<8x128xbf16>
    %cst_85 = arith.constant dense<0.000000e+00> : vector<8x128xf32>
    %135 = tpu.matmul %131, %133, %cst_85 {dimension_numbers = #tpu.dot_dimension_numbers<[1], [0], [0], [1], [0, 0, 1, 1], [], []>} : vector<8x128xbf16>, vector<128x128xbf16>, vector<8x128xf32> -> vector<8x128xf32>
    %cst_86 = arith.constant 9.99999993E-9 : f32
    %136 = vector.broadcast %cst_86 : f32 to vector<8x128xf32>
    %137 = arith.addf %135, %136 : vector<8x128xf32>
    %138 = tpu.reciprocal %137 {approx = true} : vector<8x128xf32> -> vector<8x128xf32>
    %139 = arith.truncf %138 : vector<8x128xf32> to vector<8x128xbf16>
    %140 = arith.mulf %134, %139 : vector<8x128xbf16>
    %cst_87 = arith.constant dense<0.000000e+00> : vector<8x128xf32>
    %141 = tpu.matmul %140, %133, %cst_87 {dimension_numbers = #tpu.dot_dimension_numbers<[1], [1], [0], [0], [0, 0, 1, 0], [], []>} : vector<8x128xbf16>, vector<128x128xbf16>, vector<8x128xf32> -> vector<8x128xf32>
    %142 = arith.addf %132, %141 : vector<8x128xf32>
    %143 = arith.mulf %130, %142 : vector<8x128xf32>
    %c11_i32 = arith.constant 11 : i32
    %144 = arith.truncf %143 : vector<8x128xf32> to vector<8x128xbf16>
    %cst_88 = arith.constant 0.000000e+00 : f32
    %145 = vector.broadcast %cst_88 : f32 to vector<8x128xf32>
    %c0_89 = arith.constant 0 : index
    %c0_90 = arith.constant 0 : index
    %146 = vector.load %arg3[%c0_89, %c0_90] : memref<128x128xbf16, #tpu.memory_space<vmem>>, vector<128x128xbf16>
    %c0_91 = arith.constant 0 : index
    %c0_92 = arith.constant 0 : index
    %147 = vector.load %arg1[%c0_91, %c0_92] : memref<8x128xbf16, #tpu.memory_space<vmem>>, vector<8x128xbf16>
    %cst_93 = arith.constant dense<0.000000e+00> : vector<8x128xf32>
    %148 = tpu.matmul %144, %146, %cst_93 {dimension_numbers = #tpu.dot_dimension_numbers<[1], [0], [0], [1], [0, 0, 1, 1], [], []>} : vector<8x128xbf16>, vector<128x128xbf16>, vector<8x128xf32> -> vector<8x128xf32>
    %cst_94 = arith.constant 9.99999993E-9 : f32
    %149 = vector.broadcast %cst_94 : f32 to vector<8x128xf32>
    %150 = arith.addf %148, %149 : vector<8x128xf32>
    %151 = tpu.reciprocal %150 {approx = true} : vector<8x128xf32> -> vector<8x128xf32>
    %152 = arith.truncf %151 : vector<8x128xf32> to vector<8x128xbf16>
    %153 = arith.mulf %147, %152 : vector<8x128xbf16>
    %cst_95 = arith.constant dense<0.000000e+00> : vector<8x128xf32>
    %154 = tpu.matmul %153, %146, %cst_95 {dimension_numbers = #tpu.dot_dimension_numbers<[1], [1], [0], [0], [0, 0, 1, 0], [], []>} : vector<8x128xbf16>, vector<128x128xbf16>, vector<8x128xf32> -> vector<8x128xf32>
    %155 = arith.addf %145, %154 : vector<8x128xf32>
    %156 = arith.mulf %143, %155 : vector<8x128xf32>
    %c12_i32 = arith.constant 12 : i32
    %157 = arith.truncf %156 : vector<8x128xf32> to vector<8x128xbf16>
    %cst_96 = arith.constant 0.000000e+00 : f32
    %158 = vector.broadcast %cst_96 : f32 to vector<8x128xf32>
    %c0_97 = arith.constant 0 : index
    %c0_98 = arith.constant 0 : index
    %159 = vector.load %arg3[%c0_97, %c0_98] : memref<128x128xbf16, #tpu.memory_space<vmem>>, vector<128x128xbf16>
    %c0_99 = arith.constant 0 : index
    %c0_100 = arith.constant 0 : index
    %160 = vector.load %arg1[%c0_99, %c0_100] : memref<8x128xbf16, #tpu.memory_space<vmem>>, vector<8x128xbf16>
    %cst_101 = arith.constant dense<0.000000e+00> : vector<8x128xf32>
    %161 = tpu.matmul %157, %159, %cst_101 {dimension_numbers = #tpu.dot_dimension_numbers<[1], [0], [0], [1], [0, 0, 1, 1], [], []>} : vector<8x128xbf16>, vector<128x128xbf16>, vector<8x128xf32> -> vector<8x128xf32>
    %cst_102 = arith.constant 9.99999993E-9 : f32
    %162 = vector.broadcast %cst_102 : f32 to vector<8x128xf32>
    %163 = arith.addf %161, %162 : vector<8x128xf32>
    %164 = tpu.reciprocal %163 {approx = true} : vector<8x128xf32> -> vector<8x128xf32>
    %165 = arith.truncf %164 : vector<8x128xf32> to vector<8x128xbf16>
    %166 = arith.mulf %160, %165 : vector<8x128xbf16>
    %cst_103 = arith.constant dense<0.000000e+00> : vector<8x128xf32>
    %167 = tpu.matmul %166, %159, %cst_103 {dimension_numbers = #tpu.dot_dimension_numbers<[1], [1], [0], [0], [0, 0, 1, 0], [], []>} : vector<8x128xbf16>, vector<128x128xbf16>, vector<8x128xf32> -> vector<8x128xf32>
    %168 = arith.addf %158, %167 : vector<8x128xf32>
    %169 = arith.mulf %156, %168 : vector<8x128xf32>
    %c13_i32 = arith.constant 13 : i32
    %170 = arith.truncf %169 : vector<8x128xf32> to vector<8x128xbf16>
    %cst_104 = arith.constant 0.000000e+00 : f32
    %171 = vector.broadcast %cst_104 : f32 to vector<8x128xf32>
    %c0_105 = arith.constant 0 : index
    %c0_106 = arith.constant 0 : index
    %172 = vector.load %arg3[%c0_105, %c0_106] : memref<128x128xbf16, #tpu.memory_space<vmem>>, vector<128x128xbf16>
    %c0_107 = arith.constant 0 : index
    %c0_108 = arith.constant 0 : index
    %173 = vector.load %arg1[%c0_107, %c0_108] : memref<8x128xbf16, #tpu.memory_space<vmem>>, vector<8x128xbf16>
    %cst_109 = arith.constant dense<0.000000e+00> : vector<8x128xf32>
    %174 = tpu.matmul %170, %172, %cst_109 {dimension_numbers = #tpu.dot_dimension_numbers<[1], [0], [0], [1], [0, 0, 1, 1], [], []>} : vector<8x128xbf16>, vector<128x128xbf16>, vector<8x128xf32> -> vector<8x128xf32>
    %cst_110 = arith.constant 9.99999993E-9 : f32
    %175 = vector.broadcast %cst_110 : f32 to vector<8x128xf32>
    %176 = arith.addf %174, %175 : vector<8x128xf32>
    %177 = tpu.reciprocal %176 {approx = true} : vector<8x128xf32> -> vector<8x128xf32>
    %178 = arith.truncf %177 : vector<8x128xf32> to vector<8x128xbf16>
    %179 = arith.mulf %173, %178 : vector<8x128xbf16>
    %cst_111 = arith.constant dense<0.000000e+00> : vector<8x128xf32>
    %180 = tpu.matmul %179, %172, %cst_111 {dimension_numbers = #tpu.dot_dimension_numbers<[1], [1], [0], [0], [0, 0, 1, 0], [], []>} : vector<8x128xbf16>, vector<128x128xbf16>, vector<8x128xf32> -> vector<8x128xf32>
    %181 = arith.addf %171, %180 : vector<8x128xf32>
    %182 = arith.mulf %169, %181 : vector<8x128xf32>
    %c14_i32 = arith.constant 14 : i32
    %183 = arith.truncf %182 : vector<8x128xf32> to vector<8x128xbf16>
    %cst_112 = arith.constant 0.000000e+00 : f32
    %184 = vector.broadcast %cst_112 : f32 to vector<8x128xf32>
    %c0_113 = arith.constant 0 : index
    %c0_114 = arith.constant 0 : index
    %185 = vector.load %arg3[%c0_113, %c0_114] : memref<128x128xbf16, #tpu.memory_space<vmem>>, vector<128x128xbf16>
    %c0_115 = arith.constant 0 : index
    %c0_116 = arith.constant 0 : index
    %186 = vector.load %arg1[%c0_115, %c0_116] : memref<8x128xbf16, #tpu.memory_space<vmem>>, vector<8x128xbf16>
    %cst_117 = arith.constant dense<0.000000e+00> : vector<8x128xf32>
    %187 = tpu.matmul %183, %185, %cst_117 {dimension_numbers = #tpu.dot_dimension_numbers<[1], [0], [0], [1], [0, 0, 1, 1], [], []>} : vector<8x128xbf16>, vector<128x128xbf16>, vector<8x128xf32> -> vector<8x128xf32>
    %cst_118 = arith.constant 9.99999993E-9 : f32
    %188 = vector.broadcast %cst_118 : f32 to vector<8x128xf32>
    %189 = arith.addf %187, %188 : vector<8x128xf32>
    %190 = tpu.reciprocal %189 {approx = true} : vector<8x128xf32> -> vector<8x128xf32>
    %191 = arith.truncf %190 : vector<8x128xf32> to vector<8x128xbf16>
    %192 = arith.mulf %186, %191 : vector<8x128xbf16>
    %cst_119 = arith.constant dense<0.000000e+00> : vector<8x128xf32>
    %193 = tpu.matmul %192, %185, %cst_119 {dimension_numbers = #tpu.dot_dimension_numbers<[1], [1], [0], [0], [0, 0, 1, 0], [], []>} : vector<8x128xbf16>, vector<128x128xbf16>, vector<8x128xf32> -> vector<8x128xf32>
    %194 = arith.addf %184, %193 : vector<8x128xf32>
    %195 = arith.mulf %182, %194 : vector<8x128xf32>
    %c15_i32 = arith.constant 15 : i32
    %196 = arith.truncf %195 : vector<8x128xf32> to vector<8x128xbf16>
    %cst_120 = arith.constant 0.000000e+00 : f32
    %197 = vector.broadcast %cst_120 : f32 to vector<8x128xf32>
    %c0_121 = arith.constant 0 : index
    %c0_122 = arith.constant 0 : index
    %198 = vector.load %arg3[%c0_121, %c0_122] : memref<128x128xbf16, #tpu.memory_space<vmem>>, vector<128x128xbf16>
    %c0_123 = arith.constant 0 : index
    %c0_124 = arith.constant 0 : index
    %199 = vector.load %arg1[%c0_123, %c0_124] : memref<8x128xbf16, #tpu.memory_space<vmem>>, vector<8x128xbf16>
    %cst_125 = arith.constant dense<0.000000e+00> : vector<8x128xf32>
    %200 = tpu.matmul %196, %198, %cst_125 {dimension_numbers = #tpu.dot_dimension_numbers<[1], [0], [0], [1], [0, 0, 1, 1], [], []>} : vector<8x128xbf16>, vector<128x128xbf16>, vector<8x128xf32> -> vector<8x128xf32>
    %cst_126 = arith.constant 9.99999993E-9 : f32
    %201 = vector.broadcast %cst_126 : f32 to vector<8x128xf32>
    %202 = arith.addf %200, %201 : vector<8x128xf32>
    %203 = tpu.reciprocal %202 {approx = true} : vector<8x128xf32> -> vector<8x128xf32>
    %204 = arith.truncf %203 : vector<8x128xf32> to vector<8x128xbf16>
    %205 = arith.mulf %199, %204 : vector<8x128xbf16>
    %cst_127 = arith.constant dense<0.000000e+00> : vector<8x128xf32>
    %206 = tpu.matmul %205, %198, %cst_127 {dimension_numbers = #tpu.dot_dimension_numbers<[1], [1], [0], [0], [0, 0, 1, 0], [], []>} : vector<8x128xbf16>, vector<128x128xbf16>, vector<8x128xf32> -> vector<8x128xf32>
    %207 = arith.addf %197, %206 : vector<8x128xf32>
    %208 = arith.mulf %195, %207 : vector<8x128xf32>
    %c16_i32 = arith.constant 16 : i32
    %209 = arith.truncf %208 : vector<8x128xf32> to vector<8x128xbf16>
    %cst_128 = arith.constant 0.000000e+00 : f32
    %210 = vector.broadcast %cst_128 : f32 to vector<8x128xf32>
    %c0_129 = arith.constant 0 : index
    %c0_130 = arith.constant 0 : index
    %211 = vector.load %arg3[%c0_129, %c0_130] : memref<128x128xbf16, #tpu.memory_space<vmem>>, vector<128x128xbf16>
    %c0_131 = arith.constant 0 : index
    %c0_132 = arith.constant 0 : index
    %212 = vector.load %arg1[%c0_131, %c0_132] : memref<8x128xbf16, #tpu.memory_space<vmem>>, vector<8x128xbf16>
    %cst_133 = arith.constant dense<0.000000e+00> : vector<8x128xf32>
    %213 = tpu.matmul %209, %211, %cst_133 {dimension_numbers = #tpu.dot_dimension_numbers<[1], [0], [0], [1], [0, 0, 1, 1], [], []>} : vector<8x128xbf16>, vector<128x128xbf16>, vector<8x128xf32> -> vector<8x128xf32>
    %cst_134 = arith.constant 9.99999993E-9 : f32
    %214 = vector.broadcast %cst_134 : f32 to vector<8x128xf32>
    %215 = arith.addf %213, %214 : vector<8x128xf32>
    %216 = tpu.reciprocal %215 {approx = true} : vector<8x128xf32> -> vector<8x128xf32>
    %217 = arith.truncf %216 : vector<8x128xf32> to vector<8x128xbf16>
    %218 = arith.mulf %212, %217 : vector<8x128xbf16>
    %cst_135 = arith.constant dense<0.000000e+00> : vector<8x128xf32>
    %219 = tpu.matmul %218, %211, %cst_135 {dimension_numbers = #tpu.dot_dimension_numbers<[1], [1], [0], [0], [0, 0, 1, 0], [], []>} : vector<8x128xbf16>, vector<128x128xbf16>, vector<8x128xf32> -> vector<8x128xf32>
    %220 = arith.addf %210, %219 : vector<8x128xf32>
    %221 = arith.mulf %208, %220 : vector<8x128xf32>
    %c17_i32 = arith.constant 17 : i32
    %222 = arith.truncf %221 : vector<8x128xf32> to vector<8x128xbf16>
    %cst_136 = arith.constant 0.000000e+00 : f32
    %223 = vector.broadcast %cst_136 : f32 to vector<8x128xf32>
    %c0_137 = arith.constant 0 : index
    %c0_138 = arith.constant 0 : index
    %224 = vector.load %arg3[%c0_137, %c0_138] : memref<128x128xbf16, #tpu.memory_space<vmem>>, vector<128x128xbf16>
    %c0_139 = arith.constant 0 : index
    %c0_140 = arith.constant 0 : index
    %225 = vector.load %arg1[%c0_139, %c0_140] : memref<8x128xbf16, #tpu.memory_space<vmem>>, vector<8x128xbf16>
    %cst_141 = arith.constant dense<0.000000e+00> : vector<8x128xf32>
    %226 = tpu.matmul %222, %224, %cst_141 {dimension_numbers = #tpu.dot_dimension_numbers<[1], [0], [0], [1], [0, 0, 1, 1], [], []>} : vector<8x128xbf16>, vector<128x128xbf16>, vector<8x128xf32> -> vector<8x128xf32>
    %cst_142 = arith.constant 9.99999993E-9 : f32
    %227 = vector.broadcast %cst_142 : f32 to vector<8x128xf32>
    %228 = arith.addf %226, %227 : vector<8x128xf32>
    %229 = tpu.reciprocal %228 {approx = true} : vector<8x128xf32> -> vector<8x128xf32>
    %230 = arith.truncf %229 : vector<8x128xf32> to vector<8x128xbf16>
    %231 = arith.mulf %225, %230 : vector<8x128xbf16>
    %cst_143 = arith.constant dense<0.000000e+00> : vector<8x128xf32>
    %232 = tpu.matmul %231, %224, %cst_143 {dimension_numbers = #tpu.dot_dimension_numbers<[1], [1], [0], [0], [0, 0, 1, 0], [], []>} : vector<8x128xbf16>, vector<128x128xbf16>, vector<8x128xf32> -> vector<8x128xf32>
    %233 = arith.addf %223, %232 : vector<8x128xf32>
    %234 = arith.mulf %221, %233 : vector<8x128xf32>
    %c18_i32 = arith.constant 18 : i32
    %235 = arith.truncf %234 : vector<8x128xf32> to vector<8x128xbf16>
    %cst_144 = arith.constant 0.000000e+00 : f32
    %236 = vector.broadcast %cst_144 : f32 to vector<8x128xf32>
    %c0_145 = arith.constant 0 : index
    %c0_146 = arith.constant 0 : index
    %237 = vector.load %arg3[%c0_145, %c0_146] : memref<128x128xbf16, #tpu.memory_space<vmem>>, vector<128x128xbf16>
    %c0_147 = arith.constant 0 : index
    %c0_148 = arith.constant 0 : index
    %238 = vector.load %arg1[%c0_147, %c0_148] : memref<8x128xbf16, #tpu.memory_space<vmem>>, vector<8x128xbf16>
    %cst_149 = arith.constant dense<0.000000e+00> : vector<8x128xf32>
    %239 = tpu.matmul %235, %237, %cst_149 {dimension_numbers = #tpu.dot_dimension_numbers<[1], [0], [0], [1], [0, 0, 1, 1], [], []>} : vector<8x128xbf16>, vector<128x128xbf16>, vector<8x128xf32> -> vector<8x128xf32>
    %cst_150 = arith.constant 9.99999993E-9 : f32
    %240 = vector.broadcast %cst_150 : f32 to vector<8x128xf32>
    %241 = arith.addf %239, %240 : vector<8x128xf32>
    %242 = tpu.reciprocal %241 {approx = true} : vector<8x128xf32> -> vector<8x128xf32>
    %243 = arith.truncf %242 : vector<8x128xf32> to vector<8x128xbf16>
    %244 = arith.mulf %238, %243 : vector<8x128xbf16>
    %cst_151 = arith.constant dense<0.000000e+00> : vector<8x128xf32>
    %245 = tpu.matmul %244, %237, %cst_151 {dimension_numbers = #tpu.dot_dimension_numbers<[1], [1], [0], [0], [0, 0, 1, 0], [], []>} : vector<8x128xbf16>, vector<128x128xbf16>, vector<8x128xf32> -> vector<8x128xf32>
    %246 = arith.addf %236, %245 : vector<8x128xf32>
    %247 = arith.mulf %234, %246 : vector<8x128xf32>
    %c19_i32 = arith.constant 19 : i32
    %248 = arith.truncf %247 : vector<8x128xf32> to vector<8x128xbf16>
    %cst_152 = arith.constant 0.000000e+00 : f32
    %249 = vector.broadcast %cst_152 : f32 to vector<8x128xf32>
    %c0_153 = arith.constant 0 : index
    %c0_154 = arith.constant 0 : index
    %250 = vector.load %arg3[%c0_153, %c0_154] : memref<128x128xbf16, #tpu.memory_space<vmem>>, vector<128x128xbf16>
    %c0_155 = arith.constant 0 : index
    %c0_156 = arith.constant 0 : index
    %251 = vector.load %arg1[%c0_155, %c0_156] : memref<8x128xbf16, #tpu.memory_space<vmem>>, vector<8x128xbf16>
    %cst_157 = arith.constant dense<0.000000e+00> : vector<8x128xf32>
    %252 = tpu.matmul %248, %250, %cst_157 {dimension_numbers = #tpu.dot_dimension_numbers<[1], [0], [0], [1], [0, 0, 1, 1], [], []>} : vector<8x128xbf16>, vector<128x128xbf16>, vector<8x128xf32> -> vector<8x128xf32>
    %cst_158 = arith.constant 9.99999993E-9 : f32
    %253 = vector.broadcast %cst_158 : f32 to vector<8x128xf32>
    %254 = arith.addf %252, %253 : vector<8x128xf32>
    %255 = tpu.reciprocal %254 {approx = true} : vector<8x128xf32> -> vector<8x128xf32>
    %256 = arith.truncf %255 : vector<8x128xf32> to vector<8x128xbf16>
    %257 = arith.mulf %251, %256 : vector<8x128xbf16>
    %cst_159 = arith.constant dense<0.000000e+00> : vector<8x128xf32>
    %258 = tpu.matmul %257, %250, %cst_159 {dimension_numbers = #tpu.dot_dimension_numbers<[1], [1], [0], [0], [0, 0, 1, 0], [], []>} : vector<8x128xbf16>, vector<128x128xbf16>, vector<8x128xf32> -> vector<8x128xf32>
    %259 = arith.addf %249, %258 : vector<8x128xf32>
    %260 = arith.mulf %247, %259 : vector<8x128xf32>
    %cst_160 = arith.constant dense<0.000000e+00> : vector<8xf32>
    %261 = vector.multi_reduction <add>, %260, %cst_160 [1] : vector<8x128xf32> to vector<8xf32>
    %262 = vector.shape_cast %261 : vector<8xf32> to vector<8x1xf32>
    %cst_161 = arith.constant 9.99999993E-9 : f32
    %263 = vector.broadcast %cst_161 : f32 to vector<8x1xf32>
    %264 = arith.addf %262, %263 : vector<8x1xf32>
    %265 = tpu.reciprocal %264 : vector<8x1xf32> -> vector<8x1xf32>
    %266 = vector.broadcast %265 : vector<8x1xf32> to vector<8x128xf32>
    %267 = arith.mulf %260, %266 : vector<8x128xf32>
    %268 = tpu.iota {dimensions = array<i32: 1>} : vector<8x128xi32>
    %c16_i32_162 = arith.constant 16 : i32
    %269 = vector.broadcast %c16_i32_162 : i32 to vector<8x128xi32>
    %270 = arith.cmpi slt, %268, %269 : vector<8x128xi32>
    %cst_163 = arith.constant 6.250000e-02 : f32
    %cst_164 = arith.constant 0.000000e+00 : f32
    %271 = vector.broadcast %cst_163 : f32 to vector<8x128xf32>
    %272 = vector.broadcast %cst_164 : f32 to vector<8x128xf32>
    %273 = arith.select %270, %271, %272 : vector<8x128xi1>, vector<8x128xf32>
    %cst_165 = arith.constant 9.99999993E-9 : f32
    %274 = vector.broadcast %cst_165 : f32 to vector<8x1xf32>
    %275 = arith.cmpf ogt, %262, %274 : vector<8x1xf32>
    %276 = vector.shape_cast %275 : vector<8x1xi1> to vector<8x1xi1>
    %277 = vector.broadcast %276 : vector<8x1xi1> to vector<8x128xi1>
    %278 = arith.select %277, %267, %273 : vector<8x128xi1>, vector<8x128xf32>
    %c0_166 = arith.constant 0 : index
    %c0_167 = arith.constant 0 : index
    %279 = vector.load %arg4[%c0_166, %c0_167] : memref<8x128xf32, #tpu.memory_space<vmem>>, vector<8x128xf32>
    tpu.vector_store %arg4[%c0_166, %c0_167], %278 {strides = array<i32>} : memref<8x128xf32, #tpu.memory_space<vmem>>, vector<8x128xf32>,
    return
  }
  func.func @transform_0(%arg0: i32) -> (i32, i32) {
    %c0_i32 = arith.constant 0 : i32
    %c0_i32_0 = arith.constant 0 : i32
    return %arg0, %c0_i32 : i32, i32
  }
  func.func @transform_1(%arg0: i32) -> (i32, i32) {
    %c0_i32 = arith.constant 0 : i32
    %c0_i32_0 = arith.constant 0 : i32
    return %arg0, %c0_i32 : i32, i32
  }
  func.func @transform_2(%arg0: i32) -> (i32, i32) {
    %c0_i32 = arith.constant 0 : i32
    %c0_i32_0 = arith.constant 0 : i32
    %c0_i32_1 = arith.constant 0 : i32
    return %c0_i32, %c0_i32_0 : i32, i32
  }
  func.func @transform_3(%arg0: i32) -> (i32, i32) {
    %c0_i32 = arith.constant 0 : i32
    %c0_i32_0 = arith.constant 0 : i32
    return %arg0, %c0_i32 : i32, i32
  }
}

</mosaic_0001>

<bundles_post_ra>
// kernel: tpu_custom_call.1
= control target key start
LH: loop header
LB: loop body
LE: loop exit
PB: predicated region body
PF: predicated region fallthrough
CT: control target
= control target key end

     0   :  { %8 = vsyncpa [#allocation3], 0  ;;  %s4659_s0 = inlined_call_operand.hbm [shape: bf16[16,128], index: 0, kind: input, shape index: {}]   ;;  %s4660_s1 = inlined_call_operand.hbm [shape: f32[16,128], index: 1, kind: input, shape index: {}]   ;;  %s4661_s2 = inlined_call_operand.hbm [shape: bf16[128,128], index: 2, kind: input, shape index: {}]   ;;  %s4662_s3 = inlined_call_operand.hbm [shape: f32[16,128], index: 3, kind: output, shape index: {}]  }
   0x1   :  { %10 = vsyncpa [#allocation3 + $0x1], 0 }
   0x2   :  { %11 = vsyncpa [#allocation6], 0 }
   0x3   :  { %13 = vsyncpa [#allocation6 + $0x1], 0 }
   0x4   :  { %14 = vsyncpa [#allocation4], 0 }
   0x5   :  { %16 = vsyncpa [#allocation4 + $0x1], 0  ;;  %s3636_s12 = smov 0   ;;  %s3638_s13 = smov 0  }
   0x6   :  { %s3640_s14 = smov 0   ;;  %s3642_s15 = smov 0  }
   0x7 LB: > { %s3657_s16 = sadd.s32 4294967295, %s3606_s15   ;;  %s2134_s17 = sadd.s32 4294967294, %s3606_s15   ;;  %s3606_s15 = sphi %s3642_s15, %s4684_s15   ;;  %s3602_s14 = sphi %s3640_s14, %s4683_s14   ;;  %s3598_s13 = sphi %s3638_s13, %s4682_s13   ;;  %s3594_s12 = sphi %s3636_s12, %s4681_s12  }
   0x8   : > { %p42_p0 = scmp.ne.s32.totalorder %s3598_s13, %s3594_s12  ;;  %p4663_p1 = scmp.eq.s32.totalorder %s3657_s16, 0 }
   0x9   : > { %p119_p3 = scmp.eq.s32.totalorder %s2134_s17, 1  ;;  %p2135_p5 = scmp.ge.s32.totalorder %s3606_s15, 1 }
   0xa   : > { %p3666_p4 = por %p4663_p1, %p42_p0  ;;  %p126_p7 = scmp.lt.s32.totalorder %s3606_s15, 3 }
   0xb   : > { %p3671_p6 = por %p119_p3, %p42_p0  ;;  %s3608_s21 = smov [#allocation7]  }
   0xc   : > { %s4667_s18 = scalar_select %p3666_p4, 1, 0 }
   0xd   : > { %s4668_s19 = scalar_select %p3671_p6, 1, 0 }
   0xe   : > { %p3676_p8 = pnand %p2135_p5, %p126_p7  ;;  %s138_s22 = sshll.u32 %s3608_s21, 4  ;;  %s3680_s22 = int_to_ptr.vmem [resolvable:$true] %s138_s22 }
   0xf   : > { %s3692_s24 = sadd.s32 1, %s3606_s15   ;;  %s29_s25 = sadd.s32 1, %s3602_s14 }
  0x10   : > { %s4669_s20 = scalar_select %p3676_p8, 1, 0 }
  0x11   : > { %p3329_p9 = pneg %p3676_p8  ;;  %s26_s26 = ssub.s32 %s3606_s15, %s3692_s24 }
  0x12   : > { %s3444_s29 = scalar_lea.hbm %s4661_s2, 1024 }
  0x13   : > { %p3687_p11 = pnand %p3329_p9, %p4663_p1  ;;  %p3445_p12 = scmp.ne.s32.totalorder %s4661_s2, %s3444_s29 }
  0x14   : > { %p3451_p5 = scmp.lt.u32.totalorder %s3444_s29, %s4661_s2 }
  0x15   : > { %p3446_p13 = pneg %p3687_p11 }
  0x17   : > { %p3447_p0 = pnand %p3446_p13, %p3445_p12 }
  0x19   : > { %p3448_p3 = pneg %p3447_p0 }
  0x1b   : > { %p3453_p7 = pnand %p3451_p5, %p3448_p3 }
  0x1d   : > { %3456 = shalt.err (!%p3453_p7)
}
  0x1e   : > { %s3457_s7 = scalar_lea.vmem %s3680_s22, 1024  ;;  %p3465_p2 = scmp.lt.s32.totalorder %s3680_s22, %s3680_s22 }
  0x1f   : > { %p3458_p9 = scmp.ne.s32.totalorder %s3680_s22, %s3457_s7  ;;  %p3466_p6 = scmp.lt.s32.totalorder %s3457_s7, %s3457_s7 }
  0x21   : > { %p3460_p10 = pnand %p3458_p9, %p3446_p13  ;;  %p3467_p4 = por %p3466_p6, %p3465_p2 }
  0x23   : > { %p3461_p1 = pneg %p3460_p10 }
  0x25   : > { %p3468_p8 = pnand %p3467_p4, %p3461_p1 }
  0x27   : > { %3471 = shalt.err (!%p3468_p8)
}
  0x28   : > { %s3609_s8 = smov 64   ;;  %s3610_s9 = smov 4  }
  0x29   : > { %3332 = dma.hbm_to_vmem [thread:$0]  (!%p3687_p11), %s4661_s2, 1024, %s3680_s22, [#allocation6], %s3609_s8, %s3609_s8, %s3610_s9  }
  0x2a   : > { %p27_p1 = scmp.eq.s32.totalorder %s26_s26, 0  ;;  %p36_p2 = scmp.ne.s32.totalorder %s3602_s14, %s3598_s13 }
  0x2b   : > { %p37_p4 = scmp.eq.s32.totalorder %s3606_s15, 0  ;;  %p3345_p6 = scmp.lt.s32.totalorder %s3606_s15, 2 }
  0x2c   : > { %s3723_s17 = scalar_select %p27_p1, %s3602_s14, %s29_s25  }
  0x2d   : > { %p38_p8 = por %p37_p4, %p36_p2  ;;  %p4671_p10 = scmp.eq.s32.totalorder %s3657_s16, 1 }
  0x2e   : > { %s3732_s27 = sand.u32 1, %s3602_s14   ;;  %s2139_s23 = sshll.u32 %s3606_s15, 6 }
  0x2f   : > { %p3727_p12 = por %p4671_p10, %p36_p2  ;;  %s2138_s28 = sshll.u32 %s3732_s27, 2 }
  0x30   : > { %s3739_s26 = scalar_lea.hbm %s4659_s0, %s2139_s23  ;;  %s156_s25 = scalar_lea.vmem [#allocation2], %s2138_s28 }
  0x31   : > { %s4672_s21 = scalar_select %p3727_p12, 1, 0 }
  0x32   : > { %s163_s30 = sshll.u32 %s156_s25, 4  ;;  %p3741_p11 = pnand %p3345_p6, %p38_p8  ;;  %s3745_s30 = int_to_ptr.vmem [resolvable:$true] %s163_s30 }
  0x33   : > { %s170_s5 = sand.u32 1, %s3606_s15   ;;  %s153_s6 = scalar_lea.sflag [#allocation3], %s3732_s27 }
  0x34   : > { %s3472_s7 = scalar_lea.hbm %s3739_s26, 64  ;;  %p3474_p0 = pneg %p3741_p11 }
  0x35   : > { %p3473_p13 = scmp.ne.s32.totalorder %s3739_s26, %s3472_s7  ;;  %s3477_s10 = scalar_lea.hbm %s4659_s0, 128 }
  0x36   : > { %p3478_p7 = scmp.lt.u32.totalorder %s3739_s26, %s4659_s0  ;;  %p3479_p9 = scmp.lt.u32.totalorder %s3477_s10, %s3472_s7 }
  0x37   : > { %p3475_p3 = pnand %p3474_p0, %p3473_p13  ;;  %p3481_p2 = scmp.lt.u32.totalorder %s3472_s7, %s3739_s26 }
  0x38   : > { %p3480_p1 = por %p3479_p9, %p3478_p7 }
  0x39   : > { %p3476_p5 = pneg %p3475_p3 }
  0x3a   : > { %p3482_p4 = por %p3481_p2, %p3480_p1 }
  0x3c   : > { %p3483_p6 = pnand %p3482_p4, %p3476_p5 }
  0x3e   : > { %3486 = shalt.err (!%p3483_p6)
}
  0x3f   : > { %s3487_s28 = scalar_lea.vmem %s3745_s30, 64  ;;  %s3611_s22 = smov [#allocation2]  }
  0x40   : > { %p3488_p8 = scmp.ne.s32.totalorder %s3745_s30, %s3487_s28  ;;  %s3492_s29 = sshll.u32 %s3611_s22, 4  ;;  %s3493_s29 = int_to_ptr.vmem [resolvable:$false] %s3492_s29 }
  0x41   : > { %s3494_s25 = scalar_lea.vmem %s3493_s29, 128  ;;  %p3495_p3 = scmp.lt.s32.totalorder %s3745_s30, %s3493_s29 }
  0x42   : > { %p3490_p10 = pnand %p3488_p8, %p3474_p0  ;;  %p3496_p7 = scmp.lt.s32.totalorder %s3494_s25, %s3487_s28 }
  0x44   : > { %p3491_p13 = pneg %p3490_p10  ;;  %p3497_p9 = por %p3496_p7, %p3495_p3 }
  0x46   : > { %p3498_p1 = pnand %p3497_p9, %p3491_p13 }
  0x48   : > { %3501 = shalt.err (!%p3498_p1)
}
  0x49   : > { %3336 = dma.hbm_to_vmem [thread:$0]  (!%p3741_p11), %s3739_s26, 64, %s3745_s30, %s153_s6  }
  0x4a   : > { %s2140_s7 = sshll.u32 %s3732_s27, 3  ;;  %s2141_s8 = sshll.u32 %s3606_s15, 7 }
  0x4b   : > { %s3779_s11 = scalar_lea.hbm %s4660_s1, %s2141_s8  ;;  %s174_s23 = scalar_lea.vmem [#allocation5], %s2140_s7 }
  0x4c   : > { %s181_s28 = sshll.u32 %s174_s23, 4  ;;  %s171_s22 = scalar_lea.sflag [#allocation6], %s170_s5  ;;  %s182_s28 = int_to_ptr.vmem [resolvable:$true] %s181_s28 }
  0x4d   : > { %s3502_s29 = scalar_lea.hbm %s3779_s11, 128  ;;  %s3507_s30 = scalar_lea.hbm %s4660_s1, 256 }
  0x4e   : > { %p3503_p5 = scmp.ne.s32.totalorder %s3779_s11, %s3502_s29  ;;  %p3508_p6 = scmp.lt.u32.totalorder %s3779_s11, %s4660_s1 }
  0x4f   : > { %p3509_p8 = scmp.lt.u32.totalorder %s3507_s30, %s3502_s29  ;;  %p3511_p13 = scmp.lt.u32.totalorder %s3502_s29, %s3779_s11 }
  0x50   : > { %p3505_p2 = pnand %p3503_p5, %p3474_p0 }
  0x51   : > { %p3510_p10 = por %p3509_p8, %p3508_p6 }
  0x52   : > { %p3506_p4 = pneg %p3505_p2 }
  0x53   : > { %p3512_p3 = por %p3511_p13, %p3510_p10 }
  0x55   : > { %p3513_p7 = pnand %p3512_p3, %p3506_p4 }
  0x57   : > { %3516 = shalt.err (!%p3513_p7)
}
  0x58   : > { %s3517_s5 = scalar_lea.vmem %s182_s28, 128  ;;  %s3612_s7 = smov [#allocation5]  }
  0x59   : > { %p3518_p9 = scmp.ne.s32.totalorder %s182_s28, %s3517_s5  ;;  %s3522_s8 = sshll.u32 %s3612_s7, 4  ;;  %s3523_s8 = int_to_ptr.vmem [resolvable:$false] %s3522_s8 }
  0x5a   : > { %s3524_s9 = scalar_lea.vmem %s3523_s8, 256  ;;  %p3525_p2 = scmp.lt.s32.totalorder %s182_s28, %s3523_s8 }
  0x5b   : > { %p3520_p1 = pnand %p3518_p9, %p3474_p0  ;;  %p3526_p12 = scmp.lt.s32.totalorder %s3524_s9, %s3517_s5 }
  0x5d   : > { %p3521_p5 = pneg %p3520_p1  ;;  %p3527_p6 = por %p3526_p12, %p3525_p2 }
  0x5f   : > { %p3528_p8 = pnand %p3527_p6, %p3521_p5 }
  0x61   : > { %3531 = shalt.err (!%p3528_p8)
}
  0x62   : > { %3339 = dma.hbm_to_vmem [thread:$0]  (!%p3741_p11), %s3779_s11, 128, %s182_s28, %s171_s22  }
  0x63   : > { %p4674_p4 = scmp.ne.s32.totalorder %s4669_s20, 0 }
  0x64   : > { %s3805_s10 = sand.u32 (!%p4674_p4), 1, %s3598_s13   ;;  %p4675_p12 = scmp.ne.s32.totalorder (!%p4674_p4), %s4667_s18, 0 }
  0x65   : > { %190 = sbr.rel (%p4674_p4) target bundleno = 9219 (0x2403), region = 32  ;;  %s2143_s23 = sshll.u32 (!%p4674_p4), %s3805_s10, 2 }
  0x66   : > { %s193_s29 = scalar_lea.sflag (!%p4674_p4), [#allocation3], %s3805_s10  ;;  %s3809_s27 = scalar_lea.vmem (!%p4674_p4), [#allocation2], %s2143_s23 }
  0x6c   : > { %3577 = dma.done.wait (%p4675_p12), %s193_s29, 64  }
  0x6d   : > { %3579 = vsyncadd (%p4675_p12), %s193_s29, 4294967232  ;;  %s201_s20 = sand.u32 1, %s3657_s16   ;;  %s2144_s4 = sshll.u32 %s3805_s10, 3 }
  0x6e   : > { %s202_s11 = scalar_lea.sflag [#allocation6], %s201_s20  ;;  %s3819_s28 = scalar_lea.vmem [#allocation5], %s2144_s4 }
  0x6f   : > { %3581 = dma.done.wait (%p4675_p12), %s202_s11, 128  }
  0x70   : > { %3583 = vsyncadd (%p4675_p12), %s202_s11, 4294967168  ;;  %p4676_p11 = scmp.eq.s32.totalorder %s3657_s16, 0 }
  0x72   : > { %3585 = dma.done.wait (%p4676_p11), [#allocation6], 1024   ;;  %p4677_p0 = pmov %p4676_p11 }
  0x73   : > { %v3613_v0 = vmov 0.0   ;;  %vm3614_vm0 = vmmov 0   ;;  %v3835_v1 = vld [vmem:[#allocation7] sm:$0xff]   ;;  %v3837_v2 = vld [vmem:[#allocation7 + $0x8] sm:$0xff]   ;;  %v3843_v3 = vld [vmem:[#allocation7 + $0x10] sm:$0xff]   ;;  %s2156_s18 = sshll.u32 %s3657_s16, 7 }
  0x74   : > { %3587 = vsyncadd (%p4677_p0), [#allocation6], 4294966272  ;;  %2519 = vmatprep.subr.bf16.mxu1 %v3613_v0  ;;  %2535 = vmatprep.mubr.msk.bf16.mxu1 %vm3614_vm0, %v3613_v0  ;;  %v3849_v4 = vld [vmem:[#allocation7 + $0x18] sm:$0xff]   ;;  %v3855_v5 = vld [vmem:[#allocation7 + $0x20] sm:$0xff]   ;;  %s236_s22 = scalar_lea.vmem [#allocation8], %s2144_s4  ;;  %s4615_s25 = scalar_lea.hbm %s4662_s3, %s2156_s18 }
  0x75   : > { %2559 = vmatprep.subr.bf16.mxu0 %v3613_v0  ;;  %2575 = vmatprep.mubr.msk.bf16.mxu0 %vm3614_vm0, %v3613_v0  ;;  %v3861_v6 = vld [vmem:[#allocation7 + $0x28] sm:$0xff]   ;;  %v3867_v7 = vld [vmem:[#allocation7 + $0x30] sm:$0xff]   ;;  %v3873_v8 = vld [vmem:[#allocation7 + $0x38] sm:$0xff]   ;;  %s2032_s26 = sshll.u32 %s236_s22, 4  ;;  %s2019_s16 = scalar_lea.sflag [#allocation4], %s3805_s10  ;;  %s4617_s26 = int_to_ptr.vmem [resolvable:$true] %s2032_s26 }
  0x76   : > { %2520 = vmatpush3.bf16.msra.mxu1 %v3835_v1  ;;  %2560 = vmatpush3.bf16.msra.mxu0 %v3835_v1  ;;  %v238_v9 = vld [vmem:[%s3819_s28] sm:$0xff]  ;;  %v3903_v17 = vld [vmem:[%s3809_s27] sm:$0xf]  ;;  %s3532_s5 = scalar_lea.vmem %s4617_s26, 128  ;;  %p4678_p13 = scmp.ne.s32.totalorder %s4672_s21, 0 }
  0x77   : > { %2521 = vmatprep.subr.bf16.mxu1 %v3613_v0  ;;  %2561 = vmatprep.subr.bf16.mxu0 %v3613_v0  ;;  %v239_v10 = vpack.c.bf16 %v238_v9, %v238_v9  ;;  %p3533_p10 = scmp.ne.s32.totalorder %s4617_s26, %s3532_s5  ;;  %s3615_s7 = smov [#allocation8]  }
  0x78   : > { %s3536_s8 = sshll.u32 %s3615_s7, 4  ;;  %s3537_s8 = int_to_ptr.vmem [resolvable:$false] %s3536_s8 }
  0x79   : > { %p3534_p3 = pnand %p3533_p10, %p4678_p13  ;;  %s3538_s9 = scalar_lea.vmem %s3537_s8, 256 }
  0x7a   : > { %2522 = vmatpush3.bf16.msra.mxu1 %v3837_v2  ;;  %2562 = vmatpush3.bf16.msra.mxu0 %v3837_v2  ;;  %p3539_p9 = scmp.lt.s32.totalorder %s4617_s26, %s3537_s8  ;;  %p3540_p1 = scmp.lt.s32.totalorder %s3538_s9, %s3532_s5 }
  0x7b   : > { %2523 = vmatprep.subr.bf16.mxu1 %v3613_v0  ;;  %2563 = vmatprep.subr.bf16.mxu0 %v3613_v0  ;;  %p3535_p7 = pneg %p3534_p3 }
  0x7c   : > { %p3541_p5 = por %p3540_p1, %p3539_p9 }
  0x7e   : > { %2524 = vmatpush3.bf16.msra.mxu1 %v3843_v3  ;;  %2564 = vmatpush3.bf16.msra.mxu0 %v3843_v3  ;;  %p3542_p2 = pnand %p3541_p5, %p3535_p7 }
  0x7f   : > { %2525 = vmatprep.subr.bf16.mxu1 %v3613_v0  ;;  %2565 = vmatprep.subr.bf16.mxu0 %v3613_v0 }
  0x82   : > { %2526 = vmatpush3.bf16.msra.mxu1 %v3849_v4  ;;  %2566 = vmatpush3.bf16.msra.mxu0 %v3849_v4 }
  0x83   : > { %2527 = vmatprep.subr.bf16.mxu1 %v3613_v0  ;;  %2567 = vmatprep.subr.bf16.mxu0 %v3613_v0 }
  0x86   : > { %2528 = vmatpush3.bf16.msra.mxu1 %v3855_v5  ;;  %2568 = vmatpush3.bf16.msra.mxu0 %v3855_v5 }
  0x87   : > { %2529 = vmatprep.subr.bf16.mxu1 %v3613_v0  ;;  %2569 = vmatprep.subr.bf16.mxu0 %v3613_v0 }
  0x8a   : > { %2530 = vmatpush3.bf16.msra.mxu1 %v3861_v6  ;;  %2570 = vmatpush3.bf16.msra.mxu0 %v3861_v6 }
  0x8b   : > { %2531 = vmatprep.subr.bf16.mxu1 %v3613_v0  ;;  %2571 = vmatprep.subr.bf16.mxu0 %v3613_v0 }
  0x8e   : > { %2532 = vmatpush3.bf16.msra.mxu1 %v3867_v7  ;;  %2572 = vmatpush3.bf16.msra.mxu0 %v3867_v7 }
  0x8f   : > { %2533 = vmatprep.subr.bf16.mxu1 %v3613_v0  ;;  %2573 = vmatprep.subr.bf16.mxu0 %v3613_v0 }
  0x92   : > { %2534 = vmatpush3.bf16.msra.mxu1 %v3873_v8  ;;  %2574 = vmatpush3.bf16.msra.mxu0 %v3873_v8 }
  0x93   : > { %2539 = vmatprep.subr.bf16.mxu1 %v3613_v0  ;;  %2579 = vmatprep.subr.bf16.mxu0 %v3613_v0 }
  0x95   : > { %2536 = vmatmul.mubr.bf16.vlgmr.msra.gmra.mrb[0].mxu1 %v239_v10 }
  0x96   : > { %2555 = vmatprep.mubr.msk.bf16.mxu1 %vm3614_vm0, %v3613_v0 }
  0x9b   : > { %2540 = vmatpush3.bf16.xpose.msra.mxu1 %v3835_v1 }
  0x9c   : > { %2541 = vmatprep.subr.bf16.mxu1 %v3613_v0 }
  0xa3   : > { %2542 = vmatpush3.bf16.xpose.msra.mxu1 %v3837_v2 }
  0xa4   : > { %2543 = vmatprep.subr.bf16.mxu1 %v3613_v0 }
  0xab   : > { %2544 = vmatpush3.bf16.xpose.msra.mxu1 %v3843_v3 }
  0xac   : > { %2545 = vmatprep.subr.bf16.mxu1 %v3613_v0 }
  0xb3   : > { %2546 = vmatpush3.bf16.xpose.msra.mxu1 %v3849_v4 }
  0xb4   : > { %2547 = vmatprep.subr.bf16.mxu1 %v3613_v0 }
  0xbb   : > { %2548 = vmatpush3.bf16.xpose.msra.mxu1 %v3855_v5 }
  0xbc   : > { %2549 = vmatprep.subr.bf16.mxu1 %v3613_v0 }
  0xc3   : > { %2550 = vmatpush3.bf16.xpose.msra.mxu1 %v3861_v6 }
  0xc4   : > { %2551 = vmatprep.subr.bf16.mxu1 %v3613_v0 }
  0xcb   : > { %2552 = vmatpush3.bf16.xpose.msra.mxu1 %v3867_v7 }
  0xcc   : > { %2553 = vmatprep.subr.bf16.mxu1 %v3613_v0 }
  0xd3   : > { %2554 = vmatpush3.bf16.xpose.msra.mxu1 %v3873_v8 }
  0xd4   : > { %2599 = vmatprep.subr.bf16.mxu1 %v3613_v0 }
 0x168   : > { %v339_v11 = vpop.f32.mrb[0].mxu1 }
 0x169   : > { %v340_v12 = vadd.f32 1e-08, %v339_v11  ;;  %v2537_v13 = vpop.f32.mrb[1].mxu1 }
 0x16a   : > { %v342_v14 = vpop.f32.mrb[2].mxu1 }
 0x16b   : > { %3393 = vrcp.f32 %v340_v12  ;;  %v2538_v15 = vpop.f32.mrb[3].mxu1 }
 0x175   : > { %v3394_v16 = vpop.eup %3393 }
 0x176   : > { %v346_v18 = vpack.c.bf16 %v3394_v16, %v3394_v16 }
 0x178   : > { %v347_v19 = vmul.bf16 %v346_v18, %v3903_v17 }
 0x17a   : > { %2556 = vmatmul.mubr.bf16.vlgmr.msra.gmra.mrb[4].mxu1 %v347_v19 }
 0x17b   : > { %2600 = vmatpush3.bf16.msra.mxu1 %v3835_v1  ;;  %2615 = vmatprep.mubr.msk.bf16.mxu1 %vm3614_vm0, %v3613_v0 }
 0x17c   : > { %2601 = vmatprep.subr.bf16.mxu1 %v3613_v0 }
 0x17f   : > { %2602 = vmatpush3.bf16.msra.mxu1 %v3837_v2 }
 0x180   : > { %2603 = vmatprep.subr.bf16.mxu1 %v3613_v0 }
 0x183   : > { %2604 = vmatpush3.bf16.msra.mxu1 %v3843_v3 }
 0x184   : > { %2605 = vmatprep.subr.bf16.mxu1 %v3613_v0 }
 0x187   : > { %2606 = vmatpush3.bf16.msra.mxu1 %v3849_v4 }
 0x188   : > { %2607 = vmatprep.subr.bf16.mxu1 %v3613_v0 }
 0x18b   : > { %2608 = vmatpush3.bf16.msra.mxu1 %v3855_v5 }
 0x18c   : > { %2609 = vmatprep.subr.bf16.mxu1 %v3613_v0 }
 0x18f   : > { %2610 = vmatpush3.bf16.msra.mxu1 %v3861_v6 }
 0x190   : > { %2611 = vmatprep.subr.bf16.mxu1 %v3613_v0 }
 0x193   : > { %2612 = vmatpush3.bf16.msra.mxu1 %v3867_v7 }
 0x194   : > { %2613 = vmatprep.subr.bf16.mxu1 %v3613_v0 }
 0x197   : > { %2614 = vmatpush3.bf16.msra.mxu1 %v3873_v8 }
 0x198   : > { %2619 = vmatprep.subr.bf16.mxu1 %v3613_v0 }
 0x24d   : > { %v382_v20 = vpop.f32.mrb[4].mxu1 }
 0x24e   : > { %v388_v21 = vmul.f32 %v382_v20, %v238_v9  ;;  %v2557_v22 = vpop.f32.mrb[5].mxu1 }
 0x24f   : > { %v385_v23 = vpop.f32.mrb[6].mxu1 }
 0x250   : > { %v389_v24 = vpack.c.bf16 %v388_v21, %v388_v21  ;;  %v2558_v25 = vpop.f32.mrb[7].mxu1 }
 0x252   : > { %2576 = vmatmul.mubr.bf16.vlgmr.msra.gmra.mrb[0].mxu0 %v389_v24 }
 0x253   : > { %2580 = vmatpush3.bf16.xpose.msra.mxu0 %v3835_v1  ;;  %2595 = vmatprep.mubr.msk.bf16.mxu0 %vm3614_vm0, %v3613_v0 }
 0x254   : > { %2581 = vmatprep.subr.bf16.mxu0 %v3613_v0 }
 0x25b   : > { %2582 = vmatpush3.bf16.xpose.msra.mxu0 %v3837_v2 }
 0x25c   : > { %2583 = vmatprep.subr.bf16.mxu0 %v3613_v0 }
 0x263   : > { %2584 = vmatpush3.bf16.xpose.msra.mxu0 %v3843_v3 }
 0x264   : > { %2585 = vmatprep.subr.bf16.mxu0 %v3613_v0 }
 0x26b   : > { %2586 = vmatpush3.bf16.xpose.msra.mxu0 %v3849_v4 }
 0x26c   : > { %2587 = vmatprep.subr.bf16.mxu0 %v3613_v0 }
 0x273   : > { %2588 = vmatpush3.bf16.xpose.msra.mxu0 %v3855_v5 }
 0x274   : > { %2589 = vmatprep.subr.bf16.mxu0 %v3613_v0 }
 0x27b   : > { %2590 = vmatpush3.bf16.xpose.msra.mxu0 %v3861_v6 }
 0x27c   : > { %2591 = vmatprep.subr.bf16.mxu0 %v3613_v0 }
 0x283   : > { %2592 = vmatpush3.bf16.xpose.msra.mxu0 %v3867_v7 }
 0x284   : > { %2593 = vmatprep.subr.bf16.mxu0 %v3613_v0 }
 0x28b   : > { %2594 = vmatpush3.bf16.xpose.msra.mxu0 %v3873_v8 }
 0x28c   : > { %2639 = vmatprep.subr.bf16.mxu0 %v3613_v0 }
 0x325   : > { %v424_v26 = vpop.f32.mrb[0].mxu0 }
 0x326   : > { %v425_v27 = vadd.f32 1e-08, %v424_v26  ;;  %v2577_v28 = vpop.f32.mrb[1].mxu0 }
 0x327   : > { %v427_v29 = vpop.f32.mrb[2].mxu0 }
 0x328   : > { %3395 = vrcp.f32 %v425_v27  ;;  %v2578_v30 = vpop.f32.mrb[3].mxu0 }
 0x332   : > { %v3396_v31 = vpop.eup %3395 }
 0x333   : > { %v431_v32 = vpack.c.bf16 %v3396_v31, %v3396_v31 }
 0x335   : > { %v432_v33 = vmul.bf16 %v431_v32, %v3903_v17 }
 0x337   : > { %2596 = vmatmul.mubr.bf16.vlgmr.msra.gmra.mrb[4].mxu0 %v432_v33 }
 0x338   : > { %2640 = vmatpush3.bf16.msra.mxu0 %v3835_v1  ;;  %2655 = vmatprep.mubr.msk.bf16.mxu0 %vm3614_vm0, %v3613_v0 }
 0x339   : > { %2641 = vmatprep.subr.bf16.mxu0 %v3613_v0 }
 0x33c   : > { %2642 = vmatpush3.bf16.msra.mxu0 %v3837_v2 }
 0x33d   : > { %2643 = vmatprep.subr.bf16.mxu0 %v3613_v0 }
 0x340   : > { %2644 = vmatpush3.bf16.msra.mxu0 %v3843_v3 }
 0x341   : > { %2645 = vmatprep.subr.bf16.mxu0 %v3613_v0 }
 0x344   : > { %2646 = vmatpush3.bf16.msra.mxu0 %v3849_v4 }
 0x345   : > { %2647 = vmatprep.subr.bf16.mxu0 %v3613_v0 }
 0x348   : > { %2648 = vmatpush3.bf16.msra.mxu0 %v3855_v5 }
 0x349   : > { %2649 = vmatprep.subr.bf16.mxu0 %v3613_v0 }
 0x34c   : > { %2650 = vmatpush3.bf16.msra.mxu0 %v3861_v6 }
 0x34d   : > { %2651 = vmatprep.subr.bf16.mxu0 %v3613_v0 }
 0x350   : > { %2652 = vmatpush3.bf16.msra.mxu0 %v3867_v7 }
 0x351   : > { %2653 = vmatprep.subr.bf16.mxu0 %v3613_v0 }
 0x354   : > { %2654 = vmatpush3.bf16.msra.mxu0 %v3873_v8 }
 0x355   : > { %2659 = vmatprep.subr.bf16.mxu0 %v3613_v0 }
 0x40a   : > { %v467_v34 = vpop.f32.mrb[4].mxu0 }
 0x40b   : > { %v473_v35 = vmul.f32 %v467_v34, %v388_v21  ;;  %v2597_v36 = vpop.f32.mrb[5].mxu0 }
 0x40c   : > { %v470_v37 = vpop.f32.mrb[6].mxu0 }
 0x40d   : > { %v474_v38 = vpack.c.bf16 %v473_v35, %v473_v35  ;;  %v2598_v39 = vpop.f32.mrb[7].mxu0 }
 0x40f   : > { %2616 = vmatmul.mubr.bf16.vlgmr.msra.gmra.mrb[8].mxu1 %v474_v38 }
 0x410   : > { %2620 = vmatpush3.bf16.xpose.msra.mxu1 %v3835_v1  ;;  %2635 = vmatprep.mubr.msk.bf16.mxu1 %vm3614_vm0, %v3613_v0 }
 0x411   : > { %2621 = vmatprep.subr.bf16.mxu1 %v3613_v0 }
 0x418   : > { %2622 = vmatpush3.bf16.xpose.msra.mxu1 %v3837_v2 }
 0x419   : > { %2623 = vmatprep.subr.bf16.mxu1 %v3613_v0 }
 0x420   : > { %2624 = vmatpush3.bf16.xpose.msra.mxu1 %v3843_v3 }
 0x421   : > { %2625 = vmatprep.subr.bf16.mxu1 %v3613_v0 }
 0x428   : > { %2626 = vmatpush3.bf16.xpose.msra.mxu1 %v3849_v4 }
 0x429   : > { %2627 = vmatprep.subr.bf16.mxu1 %v3613_v0 }
 0x430   : > { %2628 = vmatpush3.bf16.xpose.msra.mxu1 %v3855_v5 }
 0x431   : > { %2629 = vmatprep.subr.bf16.mxu1 %v3613_v0 }
 0x438   : > { %2630 = vmatpush3.bf16.xpose.msra.mxu1 %v3861_v6 }
 0x439   : > { %2631 = vmatprep.subr.bf16.mxu1 %v3613_v0 }
 0x440   : > { %2632 = vmatpush3.bf16.xpose.msra.mxu1 %v3867_v7 }
 0x441   : > { %2633 = vmatprep.subr.bf16.mxu1 %v3613_v0 }
 0x448   : > { %2634 = vmatpush3.bf16.xpose.msra.mxu1 %v3873_v8 }
 0x449   : > { %2679 = vmatprep.subr.bf16.mxu1 %v3613_v0 }
 0x4e2   : > { %v509_v40 = vpop.f32.mrb[8].mxu1 }
 0x4e3   : > { %v510_v41 = vadd.f32 1e-08, %v509_v40  ;;  %v2617_v42 = vpop.f32.mrb[9].mxu1 }
 0x4e4   : > { %v512_v43 = vpop.f32.mrb[10].mxu1 }
 0x4e5   : > { %3397 = vrcp.f32 %v510_v41  ;;  %v2618_v44 = vpop.f32.mrb[11].mxu1 }
 0x4ef   : > { %v3398_v45 = vpop.eup %3397 }
 0x4f0   : > { %v516_v46 = vpack.c.bf16 %v3398_v45, %v3398_v45 }
 0x4f2   : > { %v517_v47 = vmul.bf16 %v516_v46, %v3903_v17 }
 0x4f4   : > { %2636 = vmatmul.mubr.bf16.vlgmr.msra.gmra.mrb[12].mxu1 %v517_v47 }
 0x4f5   : > { %2680 = vmatpush3.bf16.msra.mxu1 %v3835_v1  ;;  %2695 = vmatprep.mubr.msk.bf16.mxu1 %vm3614_vm0, %v3613_v0 }
 0x4f6   : > { %2681 = vmatprep.subr.bf16.mxu1 %v3613_v0 }
 0x4f9   : > { %2682 = vmatpush3.bf16.msra.mxu1 %v3837_v2 }
 0x4fa   : > { %2683 = vmatprep.subr.bf16.mxu1 %v3613_v0 }
 0x4fd   : > { %2684 = vmatpush3.bf16.msra.mxu1 %v3843_v3 }
 0x4fe   : > { %2685 = vmatprep.subr.bf16.mxu1 %v3613_v0 }
 0x501   : > { %2686 = vmatpush3.bf16.msra.mxu1 %v3849_v4 }
 0x502   : > { %2687 = vmatprep.subr.bf16.mxu1 %v3613_v0 }
 0x505   : > { %2688 = vmatpush3.bf16.msra.mxu1 %v3855_v5 }
 0x506   : > { %2689 = vmatprep.subr.bf16.mxu1 %v3613_v0 }
 0x509   : > { %2690 = vmatpush3.bf16.msra.mxu1 %v3861_v6 }
 0x50a   : > { %2691 = vmatprep.subr.bf16.mxu1 %v3613_v0 }
 0x50d   : > { %2692 = vmatpush3.bf16.msra.mxu1 %v3867_v7 }
 0x50e   : > { %2693 = vmatprep.subr.bf16.mxu1 %v3613_v0 }
 0x511   : > { %2694 = vmatpush3.bf16.msra.mxu1 %v3873_v8 }
 0x512   : > { %2699 = vmatprep.subr.bf16.mxu1 %v3613_v0 }
 0x5c7   : > { %v552_v48 = vpop.f32.mrb[12].mxu1 }
 0x5c8   : > { %v558_v49 = vmul.f32 %v552_v48, %v473_v35  ;;  %v2637_v50 = vpop.f32.mrb[13].mxu1 }
 0x5c9   : > { %v555_v51 = vpop.f32.mrb[14].mxu1 }
 0x5ca   : > { %v559_v52 = vpack.c.bf16 %v558_v49, %v558_v49  ;;  %v2638_v53 = vpop.f32.mrb[15].mxu1 }
 0x5cc   : > { %2656 = vmatmul.mubr.bf16.vlgmr.msra.gmra.mrb[8].mxu0 %v559_v52 }
 0x5cd   : > { %2660 = vmatpush3.bf16.xpose.msra.mxu0 %v3835_v1  ;;  %2675 = vmatprep.mubr.msk.bf16.mxu0 %vm3614_vm0, %v3613_v0 }
 0x5ce   : > { %2661 = vmatprep.subr.bf16.mxu0 %v3613_v0 }
 0x5d5   : > { %2662 = vmatpush3.bf16.xpose.msra.mxu0 %v3837_v2 }
 0x5d6   : > { %2663 = vmatprep.subr.bf16.mxu0 %v3613_v0 }
 0x5dd   : > { %2664 = vmatpush3.bf16.xpose.msra.mxu0 %v3843_v3 }
 0x5de   : > { %2665 = vmatprep.subr.bf16.mxu0 %v3613_v0 }
 0x5e5   : > { %2666 = vmatpush3.bf16.xpose.msra.mxu0 %v3849_v4 }
 0x5e6   : > { %2667 = vmatprep.subr.bf16.mxu0 %v3613_v0 }
 0x5ed   : > { %2668 = vmatpush3.bf16.xpose.msra.mxu0 %v3855_v5 }
 0x5ee   : > { %2669 = vmatprep.subr.bf16.mxu0 %v3613_v0 }
 0x5f5   : > { %2670 = vmatpush3.bf16.xpose.msra.mxu0 %v3861_v6 }
 0x5f6   : > { %2671 = vmatprep.subr.bf16.mxu0 %v3613_v0 }
 0x5fd   : > { %2672 = vmatpush3.bf16.xpose.msra.mxu0 %v3867_v7 }
 0x5fe   : > { %2673 = vmatprep.subr.bf16.mxu0 %v3613_v0 }
 0x605   : > { %2674 = vmatpush3.bf16.xpose.msra.mxu0 %v3873_v8 }
 0x606   : > { %2719 = vmatprep.subr.bf16.mxu0 %v3613_v0 }
 0x69f   : > { %v594_v54 = vpop.f32.mrb[8].mxu0 }
 0x6a0   : > { %v595_v55 = vadd.f32 1e-08, %v594_v54  ;;  %v2657_v56 = vpop.f32.mrb[9].mxu0 }
 0x6a1   : > { %v597_v57 = vpop.f32.mrb[10].mxu0 }
 0x6a2   : > { %3399 = vrcp.f32 %v595_v55  ;;  %v2658_v58 = vpop.f32.mrb[11].mxu0 }
 0x6ac   : > { %v3400_v59 = vpop.eup %3399 }
 0x6ad   : > { %v601_v60 = vpack.c.bf16 %v3400_v59, %v3400_v59 }
 0x6af   : > { %v602_v61 = vmul.bf16 %v601_v60, %v3903_v17 }
 0x6b1   : > { %2676 = vmatmul.mubr.bf16.vlgmr.msra.gmra.mrb[12].mxu0 %v602_v61 }
 0x6b2   : > { %2720 = vmatpush3.bf16.msra.mxu0 %v3835_v1  ;;  %2735 = vmatprep.mubr.msk.bf16.mxu0 %vm3614_vm0, %v3613_v0 }
 0x6b3   : > { %2721 = vmatprep.subr.bf16.mxu0 %v3613_v0 }
 0x6b6   : > { %2722 = vmatpush3.bf16.msra.mxu0 %v3837_v2 }
 0x6b7   : > { %2723 = vmatprep.subr.bf16.mxu0 %v3613_v0 }
 0x6ba   : > { %2724 = vmatpush3.bf16.msra.mxu0 %v3843_v3 }
 0x6bb   : > { %2725 = vmatprep.subr.bf16.mxu0 %v3613_v0 }
 0x6be   : > { %2726 = vmatpush3.bf16.msra.mxu0 %v3849_v4 }
 0x6bf   : > { %2727 = vmatprep.subr.bf16.mxu0 %v3613_v0 }
 0x6c2   : > { %2728 = vmatpush3.bf16.msra.mxu0 %v3855_v5 }
 0x6c3   : > { %2729 = vmatprep.subr.bf16.mxu0 %v3613_v0 }
 0x6c6   : > { %2730 = vmatpush3.bf16.msra.mxu0 %v3861_v6 }
 0x6c7   : > { %2731 = vmatprep.subr.bf16.mxu0 %v3613_v0 }
 0x6ca   : > { %2732 = vmatpush3.bf16.msra.mxu0 %v3867_v7 }
 0x6cb   : > { %2733 = vmatprep.subr.bf16.mxu0 %v3613_v0 }
 0x6ce   : > { %2734 = vmatpush3.bf16.msra.mxu0 %v3873_v8 }
 0x6cf   : > { %2739 = vmatprep.subr.bf16.mxu0 %v3613_v0 }
 0x784   : > { %v637_v62 = vpop.f32.mrb[12].mxu0 }
 0x785   : > { %v643_v63 = vmul.f32 %v637_v62, %v558_v49  ;;  %v2677_v9 = vpop.f32.mrb[13].mxu0 }
 0x786   : > { %v640_v10 = vpop.f32.mrb[14].mxu0 }
 0x787   : > { %v644_v11 = vpack.c.bf16 %v643_v63, %v643_v63  ;;  %v2678_v12 = vpop.f32.mrb[15].mxu0 }
 0x789   : > { %2696 = vmatmul.mubr.bf16.vlgmr.msra.gmra.mrb[16].mxu1 %v644_v11 }
 0x78a   : > { %2700 = vmatpush3.bf16.xpose.msra.mxu1 %v3835_v1  ;;  %2715 = vmatprep.mubr.msk.bf16.mxu1 %vm3614_vm0, %v3613_v0 }
 0x78b   : > { %2701 = vmatprep.subr.bf16.mxu1 %v3613_v0 }
 0x792   : > { %2702 = vmatpush3.bf16.xpose.msra.mxu1 %v3837_v2 }
 0x793   : > { %2703 = vmatprep.subr.bf16.mxu1 %v3613_v0 }
 0x79a   : > { %2704 = vmatpush3.bf16.xpose.msra.mxu1 %v3843_v3 }
 0x79b   : > { %2705 = vmatprep.subr.bf16.mxu1 %v3613_v0 }
 0x7a2   : > { %2706 = vmatpush3.bf16.xpose.msra.mxu1 %v3849_v4 }
 0x7a3   : > { %2707 = vmatprep.subr.bf16.mxu1 %v3613_v0 }
 0x7aa   : > { %2708 = vmatpush3.bf16.xpose.msra.mxu1 %v3855_v5 }
 0x7ab   : > { %2709 = vmatprep.subr.bf16.mxu1 %v3613_v0 }
 0x7b2   : > { %2710 = vmatpush3.bf16.xpose.msra.mxu1 %v3861_v6 }
 0x7b3   : > { %2711 = vmatprep.subr.bf16.mxu1 %v3613_v0 }
 0x7ba   : > { %2712 = vmatpush3.bf16.xpose.msra.mxu1 %v3867_v7 }
 0x7bb   : > { %2713 = vmatprep.subr.bf16.mxu1 %v3613_v0 }
 0x7c2   : > { %2714 = vmatpush3.bf16.xpose.msra.mxu1 %v3873_v8 }
 0x7c3   : > { %2759 = vmatprep.subr.bf16.mxu1 %v3613_v0 }
 0x85c   : > { %v679_v13 = vpop.f32.mrb[16].mxu1 }
 0x85d   : > { %v680_v14 = vadd.f32 1e-08, %v679_v13  ;;  %v2697_v15 = vpop.f32.mrb[17].mxu1 }
 0x85e   : > { %v682_v16 = vpop.f32.mrb[18].mxu1 }
 0x85f   : > { %3401 = vrcp.f32 %v680_v14  ;;  %v2698_v18 = vpop.f32.mrb[19].mxu1 }
 0x869   : > { %v3402_v19 = vpop.eup %3401 }
 0x86a   : > { %v686_v20 = vpack.c.bf16 %v3402_v19, %v3402_v19 }
 0x86c   : > { %v687_v21 = vmul.bf16 %v686_v20, %v3903_v17 }
 0x86e   : > { %2716 = vmatmul.mubr.bf16.vlgmr.msra.gmra.mrb[20].mxu1 %v687_v21 }
 0x86f   : > { %2760 = vmatpush3.bf16.msra.mxu1 %v3835_v1  ;;  %2775 = vmatprep.mubr.msk.bf16.mxu1 %vm3614_vm0, %v3613_v0 }
 0x870   : > { %2761 = vmatprep.subr.bf16.mxu1 %v3613_v0 }
 0x873   : > { %2762 = vmatpush3.bf16.msra.mxu1 %v3837_v2 }
 0x874   : > { %2763 = vmatprep.subr.bf16.mxu1 %v3613_v0 }
 0x877   : > { %2764 = vmatpush3.bf16.msra.mxu1 %v3843_v3 }
 0x878   : > { %2765 = vmatprep.subr.bf16.mxu1 %v3613_v0 }
 0x87b   : > { %2766 = vmatpush3.bf16.msra.mxu1 %v3849_v4 }
 0x87c   : > { %2767 = vmatprep.subr.bf16.mxu1 %v3613_v0 }
 0x87f   : > { %2768 = vmatpush3.bf16.msra.mxu1 %v3855_v5 }
 0x880   : > { %2769 = vmatprep.subr.bf16.mxu1 %v3613_v0 }
 0x883   : > { %2770 = vmatpush3.bf16.msra.mxu1 %v3861_v6 }
 0x884   : > { %2771 = vmatprep.subr.bf16.mxu1 %v3613_v0 }
 0x887   : > { %2772 = vmatpush3.bf16.msra.mxu1 %v3867_v7 }
 0x888   : > { %2773 = vmatprep.subr.bf16.mxu1 %v3613_v0 }
 0x88b   : > { %2774 = vmatpush3.bf16.msra.mxu1 %v3873_v8 }
 0x88c   : > { %2779 = vmatprep.subr.bf16.mxu1 %v3613_v0 }
 0x941   : > { %v722_v22 = vpop.f32.mrb[20].mxu1 }
 0x942   : > { %v728_v23 = vmul.f32 %v722_v22, %v643_v63  ;;  %v2717_v24 = vpop.f32.mrb[21].mxu1 }
 0x943   : > { %v725_v25 = vpop.f32.mrb[22].mxu1 }
 0x944   : > { %v729_v26 = vpack.c.bf16 %v728_v23, %v728_v23  ;;  %v2718_v27 = vpop.f32.mrb[23].mxu1 }
 0x946   : > { %2736 = vmatmul.mubr.bf16.vlgmr.msra.gmra.mrb[16].mxu0 %v729_v26 }
 0x947   : > { %2740 = vmatpush3.bf16.xpose.msra.mxu0 %v3835_v1  ;;  %2755 = vmatprep.mubr.msk.bf16.mxu0 %vm3614_vm0, %v3613_v0 }
 0x948   : > { %2741 = vmatprep.subr.bf16.mxu0 %v3613_v0 }
 0x94f   : > { %2742 = vmatpush3.bf16.xpose.msra.mxu0 %v3837_v2 }
 0x950   : > { %2743 = vmatprep.subr.bf16.mxu0 %v3613_v0 }
 0x957   : > { %2744 = vmatpush3.bf16.xpose.msra.mxu0 %v3843_v3 }
 0x958   : > { %2745 = vmatprep.subr.bf16.mxu0 %v3613_v0 }
 0x95f   : > { %2746 = vmatpush3.bf16.xpose.msra.mxu0 %v3849_v4 }
 0x960   : > { %2747 = vmatprep.subr.bf16.mxu0 %v3613_v0 }
 0x967   : > { %2748 = vmatpush3.bf16.xpose.msra.mxu0 %v3855_v5 }
 0x968   : > { %2749 = vmatprep.subr.bf16.mxu0 %v3613_v0 }
 0x96f   : > { %2750 = vmatpush3.bf16.xpose.msra.mxu0 %v3861_v6 }
 0x970   : > { %2751 = vmatprep.subr.bf16.mxu0 %v3613_v0 }
 0x977   : > { %2752 = vmatpush3.bf16.xpose.msra.mxu0 %v3867_v7 }
 0x978   : > { %2753 = vmatprep.subr.bf16.mxu0 %v3613_v0 }
 0x97f   : > { %2754 = vmatpush3.bf16.xpose.msra.mxu0 %v3873_v8 }
 0x980   : > { %2799 = vmatprep.subr.bf16.mxu0 %v3613_v0 }
 0xa19   : > { %v764_v28 = vpop.f32.mrb[16].mxu0 }
 0xa1a   : > { %v765_v29 = vadd.f32 1e-08, %v764_v28  ;;  %v2737_v30 = vpop.f32.mrb[17].mxu0 }
 0xa1b   : > { %v767_v31 = vpop.f32.mrb[18].mxu0 }
 0xa1c   : > { %3403 = vrcp.f32 %v765_v29  ;;  %v2738_v32 = vpop.f32.mrb[19].mxu0 }
 0xa1d   : > { %v4239_v32 = vld [vmem:[#allocation7] sm:$0xff]  }
 0xa26   : > { %v3404_v33 = vpop.eup %3403 }
 0xa27   : > { %v771_v34 = vpack.c.bf16 %v3404_v33, %v3404_v33  ;;  %v4257_v33 = vld [vmem:[#allocation7 + $0x20] sm:$0xff]  }
 0xa29   : > { %v772_v35 = vmul.bf16 %v771_v34, %v3903_v17  ;;  %v4261_v34 = vld [vmem:[#allocation7 + $0x28] sm:$0xff]  }
 0xa2b   : > { %2756 = vmatmul.mubr.bf16.vlgmr.msra.gmra.mrb[20].mxu0 %v772_v35  ;;  %v4265_v35 = vld [vmem:[#allocation7 + $0x30] sm:$0xff]  }
 0xa2c   : > { %2800 = vmatpush3.bf16.msra.mxu0 %v3835_v1  ;;  %2815 = vmatprep.mubr.msk.bf16.mxu0 %vm3614_vm0, %v3613_v0 }
 0xa2d   : > { %2801 = vmatprep.subr.bf16.mxu0 %v3613_v0 }
 0xa30   : > { %2802 = vmatpush3.bf16.msra.mxu0 %v3837_v2 }
 0xa31   : > { %2803 = vmatprep.subr.bf16.mxu0 %v3613_v0 }
 0xa34   : > { %2804 = vmatpush3.bf16.msra.mxu0 %v3843_v3 }
 0xa35   : > { %2805 = vmatprep.subr.bf16.mxu0 %v3613_v0 }
 0xa38   : > { %2806 = vmatpush3.bf16.msra.mxu0 %v3849_v4 }
 0xa39   : > { %2807 = vmatprep.subr.bf16.mxu0 %v3613_v0 }
 0xa3c   : > { %2808 = vmatpush3.bf16.msra.mxu0 %v3855_v5 }
 0xa3d   : > { %2809 = vmatprep.subr.bf16.mxu0 %v3613_v0 }
 0xa40   : > { %2810 = vmatpush3.bf16.msra.mxu0 %v3861_v6 }
 0xa41   : > { %2811 = vmatprep.subr.bf16.mxu0 %v3613_v0 }
 0xa44   : > { %2812 = vmatpush3.bf16.msra.mxu0 %v3867_v7 }
 0xa45   : > { %2813 = vmatprep.subr.bf16.mxu0 %v3613_v0 }
 0xa48   : > { %2814 = vmatpush3.bf16.msra.mxu0 %v3873_v8 }
 0xa49   : > { %2819 = vmatprep.subr.bf16.mxu0 %v3613_v0 }
 0xafe   : > { %v807_v36 = vpop.f32.mrb[20].mxu0 }
 0xaff   : > { %v813_v37 = vmul.f32 %v807_v36, %v728_v23  ;;  %v2757_v38 = vpop.f32.mrb[21].mxu0  ;;  %v4269_v36 = vld [vmem:[#allocation7 + $0x38] sm:$0xff]  }
 0xb00   : > { %v810_v39 = vpop.f32.mrb[22].mxu0 }
 0xb01   : > { %v814_v40 = vpack.c.bf16 %v813_v37, %v813_v37  ;;  %v2758_v41 = vpop.f32.mrb[23].mxu0 }
 0xb03   : > { %2776 = vmatmul.mubr.bf16.vlgmr.msra.gmra.mrb[24].mxu1 %v814_v40 }
 0xb04   : > { %2780 = vmatpush3.bf16.xpose.msra.mxu1 %v3835_v1  ;;  %2795 = vmatprep.mubr.msk.bf16.mxu1 %vm3614_vm0, %v3613_v0 }
 0xb05   : > { %2781 = vmatprep.subr.bf16.mxu1 %v3613_v0 }
 0xb0c   : > { %2782 = vmatpush3.bf16.xpose.msra.mxu1 %v3837_v2 }
 0xb0d   : > { %2783 = vmatprep.subr.bf16.mxu1 %v3613_v0 }
 0xb14   : > { %2784 = vmatpush3.bf16.xpose.msra.mxu1 %v3843_v3 }
 0xb15   : > { %2785 = vmatprep.subr.bf16.mxu1 %v3613_v0 }
 0xb1c   : > { %2786 = vmatpush3.bf16.xpose.msra.mxu1 %v3849_v4 }
 0xb1d   : > { %2787 = vmatprep.subr.bf16.mxu1 %v3613_v0 }
 0xb24   : > { %2788 = vmatpush3.bf16.xpose.msra.mxu1 %v3855_v5 }
 0xb25   : > { %2789 = vmatprep.subr.bf16.mxu1 %v3613_v0 }
 0xb2c   : > { %2790 = vmatpush3.bf16.xpose.msra.mxu1 %v3861_v6 }
 0xb2d   : > { %2791 = vmatprep.subr.bf16.mxu1 %v3613_v0 }
 0xb34   : > { %2792 = vmatpush3.bf16.xpose.msra.mxu1 %v3867_v7 }
 0xb35   : > { %2793 = vmatprep.subr.bf16.mxu1 %v3613_v0 }
 0xb3c   : > { %2794 = vmatpush3.bf16.xpose.msra.mxu1 %v3873_v8 }
 0xb3d   : > { %2839 = vmatprep.subr.bf16.mxu1 %v3613_v0 }
 0xbd6   : > { %v849_v42 = vpop.f32.mrb[24].mxu1 }
 0xbd7   : > { %v850_v43 = vadd.f32 1e-08, %v849_v42  ;;  %v2777_v44 = vpop.f32.mrb[25].mxu1 }
 0xbd8   : > { %v852_v45 = vpop.f32.mrb[26].mxu1 }
 0xbd9   : > { %3405 = vrcp.f32 %v850_v43  ;;  %v2778_v46 = vpop.f32.mrb[27].mxu1 }
 0xbe3   : > { %v3406_v47 = vpop.eup %3405 }
 0xbe4   : > { %v856_v48 = vpack.c.bf16 %v3406_v47, %v3406_v47 }
 0xbe6   : > { %v857_v49 = vmul.bf16 %v856_v48, %v3903_v17 }
 0xbe8   : > { %2796 = vmatmul.mubr.bf16.vlgmr.msra.gmra.mrb[28].mxu1 %v857_v49 }
 0xbe9   : > { %2840 = vmatpush3.bf16.msra.mxu1 %v3835_v1  ;;  %2855 = vmatprep.mubr.msk.bf16.mxu1 %vm3614_vm0, %v3613_v0 }
 0xbea   : > { %2841 = vmatprep.subr.bf16.mxu1 %v3613_v0 }
 0xbed   : > { %2842 = vmatpush3.bf16.msra.mxu1 %v3837_v2 }
 0xbee   : > { %2843 = vmatprep.subr.bf16.mxu1 %v3613_v0 }
 0xbf1   : > { %2844 = vmatpush3.bf16.msra.mxu1 %v3843_v3 }
 0xbf2   : > { %2845 = vmatprep.subr.bf16.mxu1 %v3613_v0 }
 0xbf5   : > { %2846 = vmatpush3.bf16.msra.mxu1 %v3849_v4 }
 0xbf6   : > { %2847 = vmatprep.subr.bf16.mxu1 %v3613_v0 }
 0xbf9   : > { %2848 = vmatpush3.bf16.msra.mxu1 %v3855_v5 }
 0xbfa   : > { %2849 = vmatprep.subr.bf16.mxu1 %v3613_v0 }
 0xbfd   : > { %2850 = vmatpush3.bf16.msra.mxu1 %v3861_v6 }
 0xbfe   : > { %2851 = vmatprep.subr.bf16.mxu1 %v3613_v0 }
 0xc01   : > { %2852 = vmatpush3.bf16.msra.mxu1 %v3867_v7 }
 0xc02   : > { %2853 = vmatprep.subr.bf16.mxu1 %v3613_v0 }
 0xc05   : > { %2854 = vmatpush3.bf16.msra.mxu1 %v3873_v8 }
 0xc06   : > { %2859 = vmatprep.subr.bf16.mxu1 %v3613_v0 }
 0xcbb   : > { %v892_v50 = vpop.f32.mrb[28].mxu1 }
 0xcbc   : > { %v898_v51 = vmul.f32 %v892_v50, %v813_v37  ;;  %v2797_v52 = vpop.f32.mrb[29].mxu1  ;;  %v4292_v50 = vld [vmem:[%s3809_s27] sm:$0xf] }
 0xcbd   : > { %v895_v53 = vpop.f32.mrb[30].mxu1 }
 0xcbe   : > { %v899_v54 = vpack.c.bf16 %v898_v51, %v898_v51  ;;  %v2798_v55 = vpop.f32.mrb[31].mxu1 }
 0xcc0   : > { %2816 = vmatmul.mubr.bf16.vlgmr.msra.gmra.mrb[24].mxu0 %v899_v54 }
 0xcc1   : > { %2820 = vmatpush3.bf16.xpose.msra.mxu0 %v3835_v1  ;;  %2835 = vmatprep.mubr.msk.bf16.mxu0 %vm3614_vm0, %v3613_v0 }
 0xcc2   : > { %2821 = vmatprep.subr.bf16.mxu0 %v3613_v0 }
 0xcc9   : > { %2822 = vmatpush3.bf16.xpose.msra.mxu0 %v3837_v2 }
 0xcca   : > { %2823 = vmatprep.subr.bf16.mxu0 %v3613_v0 }
 0xcd1   : > { %2824 = vmatpush3.bf16.xpose.msra.mxu0 %v3843_v3 }
 0xcd2   : > { %2825 = vmatprep.subr.bf16.mxu0 %v3613_v0 }
 0xcd9   : > { %2826 = vmatpush3.bf16.xpose.msra.mxu0 %v3849_v4 }
 0xcda   : > { %2827 = vmatprep.subr.bf16.mxu0 %v3613_v0 }
 0xce1   : > { %2828 = vmatpush3.bf16.xpose.msra.mxu0 %v3855_v5 }
 0xce2   : > { %2829 = vmatprep.subr.bf16.mxu0 %v3613_v0 }
 0xce9   : > { %2830 = vmatpush3.bf16.xpose.msra.mxu0 %v3861_v6 }
 0xcea   : > { %2831 = vmatprep.subr.bf16.mxu0 %v3613_v0 }
 0xcf1   : > { %2832 = vmatpush3.bf16.xpose.msra.mxu0 %v3867_v7 }
 0xcf2   : > { %2833 = vmatprep.subr.bf16.mxu0 %v3613_v0 }
 0xcf9   : > { %2834 = vmatpush3.bf16.xpose.msra.mxu0 %v3873_v8 }
 0xcfa   : > { %2879 = vmatprep.subr.bf16.mxu0 %v3613_v0 }
 0xd93   : > { %v934_v56 = vpop.f32.mrb[24].mxu0 }
 0xd94   : > { %v935_v57 = vadd.f32 1e-08, %v934_v56  ;;  %v2817_v58 = vpop.f32.mrb[25].mxu0 }
 0xd95   : > { %v937_v59 = vpop.f32.mrb[26].mxu0 }
 0xd96   : > { %3407 = vrcp.f32 %v935_v57  ;;  %v2818_v60 = vpop.f32.mrb[27].mxu0 }
 0xda0   : > { %v3408_v61 = vpop.eup %3407 }
 0xda1   : > { %v941_v62 = vpack.c.bf16 %v3408_v61, %v3408_v61 }
 0xda3   : > { %v942_v63 = vmul.bf16 %v941_v62, %v3903_v17 }
 0xda5   : > { %2836 = vmatmul.mubr.bf16.vlgmr.msra.gmra.mrb[28].mxu0 %v942_v63 }
 0xda6   : > { %2880 = vmatpush3.bf16.msra.mxu0 %v3835_v1  ;;  %2895 = vmatprep.mubr.msk.bf16.mxu0 %vm3614_vm0, %v3613_v0 }
 0xda7   : > { %2881 = vmatprep.subr.bf16.mxu0 %v3613_v0 }
 0xdaa   : > { %2882 = vmatpush3.bf16.msra.mxu0 %v3837_v2 }
 0xdab   : > { %2883 = vmatprep.subr.bf16.mxu0 %v3613_v0 }
 0xdae   : > { %2884 = vmatpush3.bf16.msra.mxu0 %v3843_v3 }
 0xdaf   : > { %2885 = vmatprep.subr.bf16.mxu0 %v3613_v0 }
 0xdb2   : > { %2886 = vmatpush3.bf16.msra.mxu0 %v3849_v4 }
 0xdb3   : > { %2887 = vmatprep.subr.bf16.mxu0 %v3613_v0 }
 0xdb6   : > { %2888 = vmatpush3.bf16.msra.mxu0 %v3855_v5 }
 0xdb7   : > { %2889 = vmatprep.subr.bf16.mxu0 %v3613_v0 }
 0xdba   : > { %2890 = vmatpush3.bf16.msra.mxu0 %v3861_v6 }
 0xdbb   : > { %2891 = vmatprep.subr.bf16.mxu0 %v3613_v0 }
 0xdbe   : > { %2892 = vmatpush3.bf16.msra.mxu0 %v3867_v7 }
 0xdbf   : > { %2893 = vmatprep.subr.bf16.mxu0 %v3613_v0 }
 0xdc2   : > { %2894 = vmatpush3.bf16.msra.mxu0 %v3873_v8 }
 0xdc3   : > { %2899 = vmatprep.subr.bf16.mxu0 %v3613_v0 }
 0xe78   : > { %v977_v9 = vpop.f32.mrb[28].mxu0 }
 0xe79   : > { %v983_v10 = vmul.f32 %v977_v9, %v898_v51  ;;  %v2837_v11 = vpop.f32.mrb[29].mxu0 }
 0xe7a   : > { %v980_v12 = vpop.f32.mrb[30].mxu0 }
 0xe7b   : > { %v984_v13 = vpack.c.bf16 %v983_v10, %v983_v10  ;;  %v2838_v14 = vpop.f32.mrb[31].mxu0 }
 0xe7d   : > { %2856 = vmatmul.mubr.bf16.vlgmr.msra.gmra.mrb[32].mxu1 %v984_v13 }
 0xe7e   : > { %2860 = vmatpush3.bf16.xpose.msra.mxu1 %v3835_v1  ;;  %2875 = vmatprep.mubr.msk.bf16.mxu1 %vm3614_vm0, %v3613_v0 }
 0xe7f   : > { %2861 = vmatprep.subr.bf16.mxu1 %v3613_v0 }
 0xe86   : > { %2862 = vmatpush3.bf16.xpose.msra.mxu1 %v3837_v2 }
 0xe87   : > { %2863 = vmatprep.subr.bf16.mxu1 %v3613_v0 }
 0xe8e   : > { %2864 = vmatpush3.bf16.xpose.msra.mxu1 %v3843_v3 }
 0xe8f   : > { %2865 = vmatprep.subr.bf16.mxu1 %v3613_v0 }
 0xe96   : > { %2866 = vmatpush3.bf16.xpose.msra.mxu1 %v3849_v4 }
 0xe97   : > { %2867 = vmatprep.subr.bf16.mxu1 %v3613_v0 }
 0xe9e   : > { %2868 = vmatpush3.bf16.xpose.msra.mxu1 %v3855_v5 }
 0xe9f   : > { %2869 = vmatprep.subr.bf16.mxu1 %v3613_v0 }
 0xea6   : > { %2870 = vmatpush3.bf16.xpose.msra.mxu1 %v3861_v6 }
 0xea7   : > { %2871 = vmatprep.subr.bf16.mxu1 %v3613_v0 }
 0xeae   : > { %2872 = vmatpush3.bf16.xpose.msra.mxu1 %v3867_v7 }
 0xeaf   : > { %2873 = vmatprep.subr.bf16.mxu1 %v3613_v0 }
 0xeb6   : > { %2874 = vmatpush3.bf16.xpose.msra.mxu1 %v3873_v8 }
 0xeb7   : > { %2919 = vmatprep.subr.bf16.mxu1 %v3613_v0 }
 0xf50   : > { %v1019_v15 = vpop.f32.mrb[32].mxu1 }
 0xf51   : > { %v1020_v16 = vadd.f32 1e-08, %v1019_v15  ;;  %v2857_v18 = vpop.f32.mrb[33].mxu1 }
 0xf52   : > { %v1022_v19 = vpop.f32.mrb[34].mxu1 }
 0xf53   : > { %3409 = vrcp.f32 %v1020_v16  ;;  %v2858_v20 = vpop.f32.mrb[35].mxu1 }
 0xf5d   : > { %v3410_v21 = vpop.eup %3409 }
 0xf5e   : > { %v1026_v22 = vpack.c.bf16 %v3410_v21, %v3410_v21 }
 0xf60   : > { %v1027_v23 = vmul.bf16 %v1026_v22, %v3903_v17 }
 0xf62   : > { %2876 = vmatmul.mubr.bf16.vlgmr.msra.gmra.mrb[36].mxu1 %v1027_v23 }
 0xf63   : > { %2920 = vmatpush3.bf16.msra.mxu1 %v3835_v1  ;;  %2935 = vmatprep.mubr.msk.bf16.mxu1 %vm3614_vm0, %v3613_v0 }
 0xf64   : > { %2921 = vmatprep.subr.bf16.mxu1 %v3613_v0 }
 0xf67   : > { %2922 = vmatpush3.bf16.msra.mxu1 %v3837_v2 }
 0xf68   : > { %2923 = vmatprep.subr.bf16.mxu1 %v3613_v0 }
 0xf6b   : > { %2924 = vmatpush3.bf16.msra.mxu1 %v3843_v3 }
 0xf6c   : > { %2925 = vmatprep.subr.bf16.mxu1 %v3613_v0 }
 0xf6f   : > { %2926 = vmatpush3.bf16.msra.mxu1 %v3849_v4 }
 0xf70   : > { %2927 = vmatprep.subr.bf16.mxu1 %v3613_v0 }
 0xf73   : > { %2928 = vmatpush3.bf16.msra.mxu1 %v3855_v5 }
 0xf74   : > { %2929 = vmatprep.subr.bf16.mxu1 %v3613_v0 }
 0xf77   : > { %2930 = vmatpush3.bf16.msra.mxu1 %v3861_v6 }
 0xf78   : > { %2931 = vmatprep.subr.bf16.mxu1 %v3613_v0 }
 0xf7b   : > { %2932 = vmatpush3.bf16.msra.mxu1 %v3867_v7 }
 0xf7c   : > { %2933 = vmatprep.subr.bf16.mxu1 %v3613_v0 }
 0xf7f   : > { %2934 = vmatpush3.bf16.msra.mxu1 %v3873_v8 }
 0xf80   : > { %2939 = vmatprep.subr.bf16.mxu1 %v3613_v0 }
0x1035   : > { %v1062_v24 = vpop.f32.mrb[36].mxu1 }
0x1036   : > { %v1068_v25 = vmul.f32 %v1062_v24, %v983_v10  ;;  %v2877_v26 = vpop.f32.mrb[37].mxu1 }
0x1037   : > { %v1065_v27 = vpop.f32.mrb[38].mxu1 }
0x1038   : > { %v1069_v28 = vpack.c.bf16 %v1068_v25, %v1068_v25  ;;  %v2878_v29 = vpop.f32.mrb[39].mxu1 }
0x103a   : > { %2896 = vmatmul.mubr.bf16.vlgmr.msra.gmra.mrb[32].mxu0 %v1069_v28 }
0x103b   : > { %2900 = vmatpush3.bf16.xpose.msra.mxu0 %v3835_v1  ;;  %2915 = vmatprep.mubr.msk.bf16.mxu0 %vm3614_vm0, %v3613_v0 }
0x103c   : > { %2901 = vmatprep.subr.bf16.mxu0 %v3613_v0 }
0x1043   : > { %2902 = vmatpush3.bf16.xpose.msra.mxu0 %v3837_v2 }
0x1044   : > { %2903 = vmatprep.subr.bf16.mxu0 %v3613_v0 }
0x104b   : > { %2904 = vmatpush3.bf16.xpose.msra.mxu0 %v3843_v3 }
0x104c   : > { %2905 = vmatprep.subr.bf16.mxu0 %v3613_v0 }
0x1053   : > { %2906 = vmatpush3.bf16.xpose.msra.mxu0 %v3849_v4 }
0x1054   : > { %2907 = vmatprep.subr.bf16.mxu0 %v3613_v0 }
0x105b   : > { %2908 = vmatpush3.bf16.xpose.msra.mxu0 %v3855_v5 }
0x105c   : > { %2909 = vmatprep.subr.bf16.mxu0 %v3613_v0 }
0x1063   : > { %2910 = vmatpush3.bf16.xpose.msra.mxu0 %v3861_v6 }
0x1064   : > { %2911 = vmatprep.subr.bf16.mxu0 %v3613_v0 }
0x106b   : > { %2912 = vmatpush3.bf16.xpose.msra.mxu0 %v3867_v7  ;;  %v4245_v7 = vld [vmem:[#allocation7 + $0x8] sm:$0xff]  }
0x106c   : > { %2913 = vmatprep.subr.bf16.mxu0 %v3613_v0 }
0x1073   : > { %2914 = vmatpush3.bf16.xpose.msra.mxu0 %v3873_v8  ;;  %v4249_v8 = vld [vmem:[#allocation7 + $0x10] sm:$0xff]  }
0x1074   : > { %2959 = vmatprep.subr.bf16.mxu0 %v3613_v0 }
0x110d   : > { %v1104_v1 = vpop.f32.mrb[32].mxu0 }
0x110e   : > { %v1105_v2 = vadd.f32 1e-08, %v1104_v1  ;;  %v2897_v3 = vpop.f32.mrb[33].mxu0 }
0x110f   : > { %v1107_v4 = vpop.f32.mrb[34].mxu0 }
0x1110   : > { %3411 = vrcp.f32 %v1105_v2  ;;  %v2898_v5 = vpop.f32.mrb[35].mxu0 }
0x111a   : > { %v3412_v30 = vpop.eup %3411 }
0x111b   : > { %v1111_v31 = vpack.c.bf16 %v3412_v30, %v3412_v30 }
0x111d   : > { %v1112_v6 = vmul.bf16 %v1111_v31, %v3903_v17  ;;  %v4253_v17 = vld [vmem:[#allocation7 + $0x18] sm:$0xff]  }
0x111f   : > { %2916 = vmatmul.mubr.bf16.vlgmr.msra.gmra.mrb[36].mxu0 %v1112_v6 }
0x1120   : > { %2960 = vmatpush3.bf16.msra.mxu0 %v4239_v32  ;;  %2975 = vmatprep.mubr.msk.bf16.mxu0 %vm3614_vm0, %v3613_v0 }
0x1121   : > { %2961 = vmatprep.subr.bf16.mxu0 %v3613_v0 }
0x1124   : > { %2962 = vmatpush3.bf16.msra.mxu0 %v4245_v7 }
0x1125   : > { %2963 = vmatprep.subr.bf16.mxu0 %v3613_v0 }
0x1128   : > { %2964 = vmatpush3.bf16.msra.mxu0 %v4249_v8 }
0x1129   : > { %2965 = vmatprep.subr.bf16.mxu0 %v3613_v0 }
0x112c   : > { %2966 = vmatpush3.bf16.msra.mxu0 %v4253_v17 }
0x112d   : > { %2967 = vmatprep.subr.bf16.mxu0 %v3613_v0 }
0x1130   : > { %2968 = vmatpush3.bf16.msra.mxu0 %v4257_v33 }
0x1131   : > { %2969 = vmatprep.subr.bf16.mxu0 %v3613_v0 }
0x1134   : > { %2970 = vmatpush3.bf16.msra.mxu0 %v4261_v34 }
0x1135   : > { %2971 = vmatprep.subr.bf16.mxu0 %v3613_v0 }
0x1138   : > { %2972 = vmatpush3.bf16.msra.mxu0 %v4265_v35 }
0x1139   : > { %2973 = vmatprep.subr.bf16.mxu0 %v3613_v0 }
0x113c   : > { %2974 = vmatpush3.bf16.msra.mxu0 %v4269_v36 }
0x113d   : > { %2979 = vmatprep.subr.bf16.mxu0 %v3613_v0 }
0x11f2   : > { %v1147_v37 = vpop.f32.mrb[36].mxu0 }
0x11f3   : > { %v1153_v38 = vmul.f32 %v1147_v37, %v1068_v25  ;;  %v2917_v39 = vpop.f32.mrb[37].mxu0 }
0x11f4   : > { %v1150_v40 = vpop.f32.mrb[38].mxu0 }
0x11f5   : > { %v1154_v41 = vpack.c.bf16 %v1153_v38, %v1153_v38  ;;  %v2918_v42 = vpop.f32.mrb[39].mxu0 }
0x11f7   : > { %2936 = vmatmul.mubr.bf16.vlgmr.msra.gmra.mrb[40].mxu1 %v1154_v41 }
0x11f8   : > { %2940 = vmatpush3.bf16.xpose.msra.mxu1 %v4239_v32  ;;  %2955 = vmatprep.mubr.msk.bf16.mxu1 %vm3614_vm0, %v3613_v0 }
0x11f9   : > { %2941 = vmatprep.subr.bf16.mxu1 %v3613_v0 }
0x1200   : > { %2942 = vmatpush3.bf16.xpose.msra.mxu1 %v4245_v7 }
0x1201   : > { %2943 = vmatprep.subr.bf16.mxu1 %v3613_v0 }
0x1208   : > { %2944 = vmatpush3.bf16.xpose.msra.mxu1 %v4249_v8 }
0x1209   : > { %2945 = vmatprep.subr.bf16.mxu1 %v3613_v0 }
0x1210   : > { %2946 = vmatpush3.bf16.xpose.msra.mxu1 %v4253_v17 }
0x1211   : > { %2947 = vmatprep.subr.bf16.mxu1 %v3613_v0 }
0x1218   : > { %2948 = vmatpush3.bf16.xpose.msra.mxu1 %v4257_v33 }
0x1219   : > { %2949 = vmatprep.subr.bf16.mxu1 %v3613_v0 }
0x1220   : > { %2950 = vmatpush3.bf16.xpose.msra.mxu1 %v4261_v34 }
0x1221   : > { %2951 = vmatprep.subr.bf16.mxu1 %v3613_v0 }
0x1228   : > { %2952 = vmatpush3.bf16.xpose.msra.mxu1 %v4265_v35 }
0x1229   : > { %2953 = vmatprep.subr.bf16.mxu1 %v3613_v0 }
0x1230   : > { %2954 = vmatpush3.bf16.xpose.msra.mxu1 %v4269_v36 }
0x1231   : > { %2999 = vmatprep.subr.bf16.mxu1 %v3613_v0 }
0x12ca   : > { %v1189_v43 = vpop.f32.mrb[40].mxu1 }
0x12cb   : > { %v1190_v44 = vadd.f32 1e-08, %v1189_v43  ;;  %v2937_v45 = vpop.f32.mrb[41].mxu1 }
0x12cc   : > { %v1192_v46 = vpop.f32.mrb[42].mxu1 }
0x12cd   : > { %3413 = vrcp.f32 %v1190_v44  ;;  %v2938_v47 = vpop.f32.mrb[43].mxu1 }
0x12d7   : > { %v3414_v48 = vpop.eup %3413 }
0x12d8   : > { %v1196_v49 = vpack.c.bf16 %v3414_v48, %v3414_v48 }
0x12da   : > { %v1197_v51 = vmul.bf16 %v4292_v50, %v1196_v49 }
0x12dc   : > { %2956 = vmatmul.mubr.bf16.vlgmr.msra.gmra.mrb[44].mxu1 %v1197_v51 }
0x12dd   : > { %3000 = vmatpush3.bf16.msra.mxu1 %v4239_v32  ;;  %3015 = vmatprep.mubr.msk.bf16.mxu1 %vm3614_vm0, %v3613_v0 }
0x12de   : > { %3001 = vmatprep.subr.bf16.mxu1 %v3613_v0 }
0x12e1   : > { %3002 = vmatpush3.bf16.msra.mxu1 %v4245_v7 }
0x12e2   : > { %3003 = vmatprep.subr.bf16.mxu1 %v3613_v0 }
0x12e5   : > { %3004 = vmatpush3.bf16.msra.mxu1 %v4249_v8 }
0x12e6   : > { %3005 = vmatprep.subr.bf16.mxu1 %v3613_v0 }
0x12e9   : > { %3006 = vmatpush3.bf16.msra.mxu1 %v4253_v17 }
0x12ea   : > { %3007 = vmatprep.subr.bf16.mxu1 %v3613_v0 }
0x12ed   : > { %3008 = vmatpush3.bf16.msra.mxu1 %v4257_v33 }
0x12ee   : > { %3009 = vmatprep.subr.bf16.mxu1 %v3613_v0 }
0x12f1   : > { %3010 = vmatpush3.bf16.msra.mxu1 %v4261_v34 }
0x12f2   : > { %3011 = vmatprep.subr.bf16.mxu1 %v3613_v0 }
0x12f5   : > { %3012 = vmatpush3.bf16.msra.mxu1 %v4265_v35 }
0x12f6   : > { %3013 = vmatprep.subr.bf16.mxu1 %v3613_v0 }
0x12f9   : > { %3014 = vmatpush3.bf16.msra.mxu1 %v4269_v36 }
0x12fa   : > { %3019 = vmatprep.subr.bf16.mxu1 %v3613_v0 }
0x13af   : > { %v1232_v52 = vpop.f32.mrb[44].mxu1 }
0x13b0   : > { %v1238_v53 = vmul.f32 %v1232_v52, %v1153_v38  ;;  %v2957_v54 = vpop.f32.mrb[45].mxu1 }
0x13b1   : > { %v1235_v55 = vpop.f32.mrb[46].mxu1 }
0x13b2   : > { %v1239_v56 = vpack.c.bf16 %v1238_v53, %v1238_v53  ;;  %v2958_v57 = vpop.f32.mrb[47].mxu1 }
0x13b4   : > { %2976 = vmatmul.mubr.bf16.vlgmr.msra.gmra.mrb[40].mxu0 %v1239_v56 }
0x13b5   : > { %2980 = vmatpush3.bf16.xpose.msra.mxu0 %v4239_v32  ;;  %2995 = vmatprep.mubr.msk.bf16.mxu0 %vm3614_vm0, %v3613_v0 }
0x13b6   : > { %2981 = vmatprep.subr.bf16.mxu0 %v3613_v0 }
0x13bd   : > { %2982 = vmatpush3.bf16.xpose.msra.mxu0 %v4245_v7 }
0x13be   : > { %2983 = vmatprep.subr.bf16.mxu0 %v3613_v0 }
0x13c5   : > { %2984 = vmatpush3.bf16.xpose.msra.mxu0 %v4249_v8 }
0x13c6   : > { %2985 = vmatprep.subr.bf16.mxu0 %v3613_v0 }
0x13cd   : > { %2986 = vmatpush3.bf16.xpose.msra.mxu0 %v4253_v17 }
0x13ce   : > { %2987 = vmatprep.subr.bf16.mxu0 %v3613_v0 }
0x13d5   : > { %2988 = vmatpush3.bf16.xpose.msra.mxu0 %v4257_v33 }
0x13d6   : > { %2989 = vmatprep.subr.bf16.mxu0 %v3613_v0 }
0x13dd   : > { %2990 = vmatpush3.bf16.xpose.msra.mxu0 %v4261_v34 }
0x13de   : > { %2991 = vmatprep.subr.bf16.mxu0 %v3613_v0 }
0x13e5   : > { %2992 = vmatpush3.bf16.xpose.msra.mxu0 %v4265_v35 }
0x13e6   : > { %2993 = vmatprep.subr.bf16.mxu0 %v3613_v0 }
0x13ed   : > { %2994 = vmatpush3.bf16.xpose.msra.mxu0 %v4269_v36 }
0x13ee   : > { %3039 = vmatprep.subr.bf16.mxu0 %v3613_v0 }
0x1487   : > { %v1274_v58 = vpop.f32.mrb[40].mxu0 }
0x1488   : > { %v1275_v59 = vadd.f32 1e-08, %v1274_v58  ;;  %v2977_v60 = vpop.f32.mrb[41].mxu0 }
0x1489   : > { %v1277_v61 = vpop.f32.mrb[42].mxu0 }
0x148a   : > { %3415 = vrcp.f32 %v1275_v59  ;;  %v2978_v62 = vpop.f32.mrb[43].mxu0 }
0x1494   : > { %v3416_v63 = vpop.eup %3415 }
0x1495   : > { %v1281_v9 = vpack.c.bf16 %v3416_v63, %v3416_v63 }
0x1497   : > { %v1282_v10 = vmul.bf16 %v4292_v50, %v1281_v9 }
0x1499   : > { %2996 = vmatmul.mubr.bf16.vlgmr.msra.gmra.mrb[44].mxu0 %v1282_v10 }
0x149a   : > { %3040 = vmatpush3.bf16.msra.mxu0 %v4239_v32  ;;  %3055 = vmatprep.mubr.msk.bf16.mxu0 %vm3614_vm0, %v3613_v0 }
0x149b   : > { %3041 = vmatprep.subr.bf16.mxu0 %v3613_v0 }
0x149e   : > { %3042 = vmatpush3.bf16.msra.mxu0 %v4245_v7 }
0x149f   : > { %3043 = vmatprep.subr.bf16.mxu0 %v3613_v0 }
0x14a2   : > { %3044 = vmatpush3.bf16.msra.mxu0 %v4249_v8 }
0x14a3   : > { %3045 = vmatprep.subr.bf16.mxu0 %v3613_v0 }
0x14a6   : > { %3046 = vmatpush3.bf16.msra.mxu0 %v4253_v17 }
0x14a7   : > { %3047 = vmatprep.subr.bf16.mxu0 %v3613_v0 }
0x14aa   : > { %3048 = vmatpush3.bf16.msra.mxu0 %v4257_v33 }
0x14ab   : > { %3049 = vmatprep.subr.bf16.mxu0 %v3613_v0 }
0x14ae   : > { %3050 = vmatpush3.bf16.msra.mxu0 %v4261_v34 }
0x14af   : > { %3051 = vmatprep.subr.bf16.mxu0 %v3613_v0 }
0x14b2   : > { %3052 = vmatpush3.bf16.msra.mxu0 %v4265_v35 }
0x14b3   : > { %3053 = vmatprep.subr.bf16.mxu0 %v3613_v0 }
0x14b6   : > { %3054 = vmatpush3.bf16.msra.mxu0 %v4269_v36 }
0x14b7   : > { %3059 = vmatprep.subr.bf16.mxu0 %v3613_v0 }
0x156c   : > { %v1317_v11 = vpop.f32.mrb[44].mxu0 }
0x156d   : > { %v1323_v12 = vmul.f32 %v1317_v11, %v1238_v53  ;;  %v2997_v13 = vpop.f32.mrb[45].mxu0 }
0x156e   : > { %v1320_v14 = vpop.f32.mrb[46].mxu0 }
0x156f   : > { %v1324_v15 = vpack.c.bf16 %v1323_v12, %v1323_v12  ;;  %v2998_v16 = vpop.f32.mrb[47].mxu0 }
0x1571   : > { %3016 = vmatmul.mubr.bf16.vlgmr.msra.gmra.mrb[48].mxu1 %v1324_v15 }
0x1572   : > { %3020 = vmatpush3.bf16.xpose.msra.mxu1 %v4239_v32  ;;  %3035 = vmatprep.mubr.msk.bf16.mxu1 %vm3614_vm0, %v3613_v0 }
0x1573   : > { %3021 = vmatprep.subr.bf16.mxu1 %v3613_v0 }
0x157a   : > { %3022 = vmatpush3.bf16.xpose.msra.mxu1 %v4245_v7 }
0x157b   : > { %3023 = vmatprep.subr.bf16.mxu1 %v3613_v0 }
0x1582   : > { %3024 = vmatpush3.bf16.xpose.msra.mxu1 %v4249_v8 }
0x1583   : > { %3025 = vmatprep.subr.bf16.mxu1 %v3613_v0 }
0x158a   : > { %3026 = vmatpush3.bf16.xpose.msra.mxu1 %v4253_v17 }
0x158b   : > { %3027 = vmatprep.subr.bf16.mxu1 %v3613_v0 }
0x1592   : > { %3028 = vmatpush3.bf16.xpose.msra.mxu1 %v4257_v33 }
0x1593   : > { %3029 = vmatprep.subr.bf16.mxu1 %v3613_v0 }
0x159a   : > { %3030 = vmatpush3.bf16.xpose.msra.mxu1 %v4261_v34 }
0x159b   : > { %3031 = vmatprep.subr.bf16.mxu1 %v3613_v0 }
0x15a2   : > { %3032 = vmatpush3.bf16.xpose.msra.mxu1 %v4265_v35 }
0x15a3   : > { %3033 = vmatprep.subr.bf16.mxu1 %v3613_v0 }
0x15aa   : > { %3034 = vmatpush3.bf16.xpose.msra.mxu1 %v4269_v36 }
0x15ab   : > { %3079 = vmatprep.subr.bf16.mxu1 %v3613_v0 }
0x1644   : > { %v1359_v18 = vpop.f32.mrb[48].mxu1 }
0x1645   : > { %v1360_v19 = vadd.f32 1e-08, %v1359_v18  ;;  %v3017_v20 = vpop.f32.mrb[49].mxu1 }
0x1646   : > { %v1362_v21 = vpop.f32.mrb[50].mxu1 }
0x1647   : > { %3417 = vrcp.f32 %v1360_v19  ;;  %v3018_v22 = vpop.f32.mrb[51].mxu1 }
0x1651   : > { %v3418_v23 = vpop.eup %3417 }
0x1652   : > { %v1366_v24 = vpack.c.bf16 %v3418_v23, %v3418_v23 }
0x1654   : > { %v1367_v25 = vmul.bf16 %v4292_v50, %v1366_v24 }
0x1656   : > { %3036 = vmatmul.mubr.bf16.vlgmr.msra.gmra.mrb[52].mxu1 %v1367_v25 }
0x1657   : > { %3080 = vmatpush3.bf16.msra.mxu1 %v4239_v32  ;;  %3095 = vmatprep.mubr.msk.bf16.mxu1 %vm3614_vm0, %v3613_v0 }
0x1658   : > { %3081 = vmatprep.subr.bf16.mxu1 %v3613_v0 }
0x165b   : > { %3082 = vmatpush3.bf16.msra.mxu1 %v4245_v7 }
0x165c   : > { %3083 = vmatprep.subr.bf16.mxu1 %v3613_v0 }
0x165f   : > { %3084 = vmatpush3.bf16.msra.mxu1 %v4249_v8 }
0x1660   : > { %3085 = vmatprep.subr.bf16.mxu1 %v3613_v0 }
0x1663   : > { %3086 = vmatpush3.bf16.msra.mxu1 %v4253_v17 }
0x1664   : > { %3087 = vmatprep.subr.bf16.mxu1 %v3613_v0 }
0x1667   : > { %3088 = vmatpush3.bf16.msra.mxu1 %v4257_v33 }
0x1668   : > { %3089 = vmatprep.subr.bf16.mxu1 %v3613_v0 }
0x166b   : > { %3090 = vmatpush3.bf16.msra.mxu1 %v4261_v34 }
0x166c   : > { %3091 = vmatprep.subr.bf16.mxu1 %v3613_v0 }
0x166f   : > { %3092 = vmatpush3.bf16.msra.mxu1 %v4265_v35 }
0x1670   : > { %3093 = vmatprep.subr.bf16.mxu1 %v3613_v0 }
0x1673   : > { %3094 = vmatpush3.bf16.msra.mxu1 %v4269_v36 }
0x1674   : > { %3099 = vmatprep.subr.bf16.mxu1 %v3613_v0 }
0x1729   : > { %v1402_v26 = vpop.f32.mrb[52].mxu1 }
0x172a   : > { %v1408_v27 = vmul.f32 %v1402_v26, %v1323_v12  ;;  %v3037_v28 = vpop.f32.mrb[53].mxu1 }
0x172b   : > { %v1405_v29 = vpop.f32.mrb[54].mxu1 }
0x172c   : > { %v1409_v1 = vpack.c.bf16 %v1408_v27, %v1408_v27  ;;  %v3038_v2 = vpop.f32.mrb[55].mxu1 }
0x172e   : > { %3056 = vmatmul.mubr.bf16.vlgmr.msra.gmra.mrb[48].mxu0 %v1409_v1 }
0x172f   : > { %3060 = vmatpush3.bf16.xpose.msra.mxu0 %v4239_v32  ;;  %3075 = vmatprep.mubr.msk.bf16.mxu0 %vm3614_vm0, %v3613_v0 }
0x1730   : > { %3061 = vmatprep.subr.bf16.mxu0 %v3613_v0 }
0x1737   : > { %3062 = vmatpush3.bf16.xpose.msra.mxu0 %v4245_v7 }
0x1738   : > { %3063 = vmatprep.subr.bf16.mxu0 %v3613_v0 }
0x173f   : > { %3064 = vmatpush3.bf16.xpose.msra.mxu0 %v4249_v8 }
0x1740   : > { %3065 = vmatprep.subr.bf16.mxu0 %v3613_v0 }
0x1747   : > { %3066 = vmatpush3.bf16.xpose.msra.mxu0 %v4253_v17 }
0x1748   : > { %3067 = vmatprep.subr.bf16.mxu0 %v3613_v0 }
0x174f   : > { %3068 = vmatpush3.bf16.xpose.msra.mxu0 %v4257_v33 }
0x1750   : > { %3069 = vmatprep.subr.bf16.mxu0 %v3613_v0 }
0x1757   : > { %3070 = vmatpush3.bf16.xpose.msra.mxu0 %v4261_v34 }
0x1758   : > { %3071 = vmatprep.subr.bf16.mxu0 %v3613_v0 }
0x175f   : > { %3072 = vmatpush3.bf16.xpose.msra.mxu0 %v4265_v35 }
0x1760   : > { %3073 = vmatprep.subr.bf16.mxu0 %v3613_v0 }
0x1767   : > { %3074 = vmatpush3.bf16.xpose.msra.mxu0 %v4269_v36 }
0x1768   : > { %3119 = vmatprep.subr.bf16.mxu0 %v3613_v0 }
0x1801   : > { %v1444_v3 = vpop.f32.mrb[48].mxu0 }
0x1802   : > { %v1445_v4 = vadd.f32 1e-08, %v1444_v3  ;;  %v3057_v5 = vpop.f32.mrb[49].mxu0 }
0x1803   : > { %v1447_v30 = vpop.f32.mrb[50].mxu0 }
0x1804   : > { %3419 = vrcp.f32 %v1445_v4  ;;  %v3058_v31 = vpop.f32.mrb[51].mxu0 }
0x180e   : > { %v3420_v6 = vpop.eup %3419 }
0x180f   : > { %v1451_v37 = vpack.c.bf16 %v3420_v6, %v3420_v6 }
0x1811   : > { %v1452_v38 = vmul.bf16 %v4292_v50, %v1451_v37 }
0x1813   : > { %3076 = vmatmul.mubr.bf16.vlgmr.msra.gmra.mrb[52].mxu0 %v1452_v38 }
0x1814   : > { %3120 = vmatpush3.bf16.msra.mxu0 %v4239_v32  ;;  %3135 = vmatprep.mubr.msk.bf16.mxu0 %vm3614_vm0, %v3613_v0 }
0x1815   : > { %3121 = vmatprep.subr.bf16.mxu0 %v3613_v0 }
0x1818   : > { %3122 = vmatpush3.bf16.msra.mxu0 %v4245_v7 }
0x1819   : > { %3123 = vmatprep.subr.bf16.mxu0 %v3613_v0 }
0x181c   : > { %3124 = vmatpush3.bf16.msra.mxu0 %v4249_v8 }
0x181d   : > { %3125 = vmatprep.subr.bf16.mxu0 %v3613_v0 }
0x1820   : > { %3126 = vmatpush3.bf16.msra.mxu0 %v4253_v17 }
0x1821   : > { %3127 = vmatprep.subr.bf16.mxu0 %v3613_v0 }
0x1824   : > { %3128 = vmatpush3.bf16.msra.mxu0 %v4257_v33 }
0x1825   : > { %3129 = vmatprep.subr.bf16.mxu0 %v3613_v0 }
0x1828   : > { %3130 = vmatpush3.bf16.msra.mxu0 %v4261_v34 }
0x1829   : > { %3131 = vmatprep.subr.bf16.mxu0 %v3613_v0 }
0x182c   : > { %3132 = vmatpush3.bf16.msra.mxu0 %v4265_v35 }
0x182d   : > { %3133 = vmatprep.subr.bf16.mxu0 %v3613_v0 }
0x1830   : > { %3134 = vmatpush3.bf16.msra.mxu0 %v4269_v36 }
0x1831   : > { %3139 = vmatprep.subr.bf16.mxu0 %v3613_v0 }
0x18e6   : > { %v1487_v39 = vpop.f32.mrb[52].mxu0 }
0x18e7   : > { %v1493_v40 = vmul.f32 %v1487_v39, %v1408_v27  ;;  %v3077_v41 = vpop.f32.mrb[53].mxu0 }
0x18e8   : > { %v1490_v42 = vpop.f32.mrb[54].mxu0 }
0x18e9   : > { %v1494_v43 = vpack.c.bf16 %v1493_v40, %v1493_v40  ;;  %v3078_v44 = vpop.f32.mrb[55].mxu0 }
0x18eb   : > { %3096 = vmatmul.mubr.bf16.vlgmr.msra.gmra.mrb[56].mxu1 %v1494_v43 }
0x18ec   : > { %3100 = vmatpush3.bf16.xpose.msra.mxu1 %v4239_v32  ;;  %3115 = vmatprep.mubr.msk.bf16.mxu1 %vm3614_vm0, %v3613_v0 }
0x18ed   : > { %3101 = vmatprep.subr.bf16.mxu1 %v3613_v0 }
0x18f4   : > { %3102 = vmatpush3.bf16.xpose.msra.mxu1 %v4245_v7 }
0x18f5   : > { %3103 = vmatprep.subr.bf16.mxu1 %v3613_v0 }
0x18fc   : > { %3104 = vmatpush3.bf16.xpose.msra.mxu1 %v4249_v8 }
0x18fd   : > { %3105 = vmatprep.subr.bf16.mxu1 %v3613_v0 }
0x1904   : > { %3106 = vmatpush3.bf16.xpose.msra.mxu1 %v4253_v17 }
0x1905   : > { %3107 = vmatprep.subr.bf16.mxu1 %v3613_v0 }
0x190c   : > { %3108 = vmatpush3.bf16.xpose.msra.mxu1 %v4257_v33 }
0x190d   : > { %3109 = vmatprep.subr.bf16.mxu1 %v3613_v0 }
0x1914   : > { %3110 = vmatpush3.bf16.xpose.msra.mxu1 %v4261_v34 }
0x1915   : > { %3111 = vmatprep.subr.bf16.mxu1 %v3613_v0 }
0x191c   : > { %3112 = vmatpush3.bf16.xpose.msra.mxu1 %v4265_v35 }
0x191d   : > { %3113 = vmatprep.subr.bf16.mxu1 %v3613_v0 }
0x1924   : > { %3114 = vmatpush3.bf16.xpose.msra.mxu1 %v4269_v36 }
0x1925   : > { %3159 = vmatprep.subr.bf16.mxu1 %v3613_v0 }
0x19be   : > { %v1529_v45 = vpop.f32.mrb[56].mxu1 }
0x19bf   : > { %v1530_v46 = vadd.f32 1e-08, %v1529_v45  ;;  %v3097_v47 = vpop.f32.mrb[57].mxu1 }
0x19c0   : > { %v1532_v48 = vpop.f32.mrb[58].mxu1 }
0x19c1   : > { %3421 = vrcp.f32 %v1530_v46  ;;  %v3098_v49 = vpop.f32.mrb[59].mxu1 }
0x19cb   : > { %v3422_v51 = vpop.eup %3421 }
0x19cc   : > { %v1536_v52 = vpack.c.bf16 %v3422_v51, %v3422_v51 }
0x19ce   : > { %v1537_v53 = vmul.bf16 %v4292_v50, %v1536_v52 }
0x19d0   : > { %3116 = vmatmul.mubr.bf16.vlgmr.msra.gmra.mrb[60].mxu1 %v1537_v53 }
0x19d1   : > { %3160 = vmatpush3.bf16.msra.mxu1 %v4239_v32  ;;  %3175 = vmatprep.mubr.msk.bf16.mxu1 %vm3614_vm0, %v3613_v0 }
0x19d2   : > { %3161 = vmatprep.subr.bf16.mxu1 %v3613_v0 }
0x19d5   : > { %3162 = vmatpush3.bf16.msra.mxu1 %v4245_v7 }
0x19d6   : > { %3163 = vmatprep.subr.bf16.mxu1 %v3613_v0 }
0x19d9   : > { %3164 = vmatpush3.bf16.msra.mxu1 %v4249_v8 }
0x19da   : > { %3165 = vmatprep.subr.bf16.mxu1 %v3613_v0 }
0x19dd   : > { %3166 = vmatpush3.bf16.msra.mxu1 %v4253_v17 }
0x19de   : > { %3167 = vmatprep.subr.bf16.mxu1 %v3613_v0 }
0x19e1   : > { %3168 = vmatpush3.bf16.msra.mxu1 %v4257_v33 }
0x19e2   : > { %3169 = vmatprep.subr.bf16.mxu1 %v3613_v0 }
0x19e5   : > { %3170 = vmatpush3.bf16.msra.mxu1 %v4261_v34 }
0x19e6   : > { %3171 = vmatprep.subr.bf16.mxu1 %v3613_v0 }
0x19e9   : > { %3172 = vmatpush3.bf16.msra.mxu1 %v4265_v35 }
0x19ea   : > { %3173 = vmatprep.subr.bf16.mxu1 %v3613_v0 }
0x19ed   : > { %3174 = vmatpush3.bf16.msra.mxu1 %v4269_v36 }
0x19ee   : > { %3179 = vmatprep.subr.bf16.mxu1 %v3613_v0 }
0x1aa3   : > { %v1572_v54 = vpop.f32.mrb[60].mxu1 }
0x1aa4   : > { %v1578_v55 = vmul.f32 %v1572_v54, %v1493_v40  ;;  %v3117_v56 = vpop.f32.mrb[61].mxu1 }
0x1aa5   : > { %v1575_v57 = vpop.f32.mrb[62].mxu1 }
0x1aa6   : > { %v1579_v58 = vpack.c.bf16 %v1578_v55, %v1578_v55  ;;  %v3118_v59 = vpop.f32.mrb[63].mxu1 }
0x1aa8   : > { %3136 = vmatmul.mubr.bf16.vlgmr.msra.gmra.mrb[56].mxu0 %v1579_v58 }
0x1aa9   : > { %3140 = vmatpush3.bf16.xpose.msra.mxu0 %v4239_v32  ;;  %3155 = vmatprep.mubr.msk.bf16.mxu0 %vm3614_vm0, %v3613_v0 }
0x1aaa   : > { %3141 = vmatprep.subr.bf16.mxu0 %v3613_v0 }
0x1ab1   : > { %3142 = vmatpush3.bf16.xpose.msra.mxu0 %v4245_v7 }
0x1ab2   : > { %3143 = vmatprep.subr.bf16.mxu0 %v3613_v0 }
0x1ab9   : > { %3144 = vmatpush3.bf16.xpose.msra.mxu0 %v4249_v8 }
0x1aba   : > { %3145 = vmatprep.subr.bf16.mxu0 %v3613_v0 }
0x1ac1   : > { %3146 = vmatpush3.bf16.xpose.msra.mxu0 %v4253_v17 }
0x1ac2   : > { %3147 = vmatprep.subr.bf16.mxu0 %v3613_v0 }
0x1ac9   : > { %3148 = vmatpush3.bf16.xpose.msra.mxu0 %v4257_v33 }
0x1aca   : > { %3149 = vmatprep.subr.bf16.mxu0 %v3613_v0 }
0x1ad1   : > { %3150 = vmatpush3.bf16.xpose.msra.mxu0 %v4261_v34 }
0x1ad2   : > { %3151 = vmatprep.subr.bf16.mxu0 %v3613_v0 }
0x1ad9   : > { %3152 = vmatpush3.bf16.xpose.msra.mxu0 %v4265_v35 }
0x1ada   : > { %3153 = vmatprep.subr.bf16.mxu0 %v3613_v0 }
0x1ae1   : > { %3154 = vmatpush3.bf16.xpose.msra.mxu0 %v4269_v36 }
0x1ae2   : > { %3199 = vmatprep.subr.bf16.mxu0 %v3613_v0 }
0x1b7b   : > { %v1614_v60 = vpop.f32.mrb[56].mxu0 }
0x1b7c   : > { %v1615_v61 = vadd.f32 1e-08, %v1614_v60  ;;  %v3137_v62 = vpop.f32.mrb[57].mxu0 }
0x1b7d   : > { %v1617_v63 = vpop.f32.mrb[58].mxu0 }
0x1b7e   : > { %3423 = vrcp.f32 %v1615_v61  ;;  %v3138_v9 = vpop.f32.mrb[59].mxu0 }
0x1b88   : > { %v3424_v10 = vpop.eup %3423 }
0x1b89   : > { %v1621_v11 = vpack.c.bf16 %v3424_v10, %v3424_v10 }
0x1b8b   : > { %v1622_v12 = vmul.bf16 %v4292_v50, %v1621_v11 }
0x1b8d   : > { %3156 = vmatmul.mubr.bf16.vlgmr.msra.gmra.mrb[60].mxu0 %v1622_v12 }
0x1b8e   : > { %3200 = vmatpush3.bf16.msra.mxu0 %v4239_v32  ;;  %3215 = vmatprep.mubr.msk.bf16.mxu0 %vm3614_vm0, %v3613_v0 }
0x1b8f   : > { %3201 = vmatprep.subr.bf16.mxu0 %v3613_v0 }
0x1b92   : > { %3202 = vmatpush3.bf16.msra.mxu0 %v4245_v7 }
0x1b93   : > { %3203 = vmatprep.subr.bf16.mxu0 %v3613_v0 }
0x1b96   : > { %3204 = vmatpush3.bf16.msra.mxu0 %v4249_v8 }
0x1b97   : > { %3205 = vmatprep.subr.bf16.mxu0 %v3613_v0 }
0x1b9a   : > { %3206 = vmatpush3.bf16.msra.mxu0 %v4253_v17 }
0x1b9b   : > { %3207 = vmatprep.subr.bf16.mxu0 %v3613_v0 }
0x1b9e   : > { %3208 = vmatpush3.bf16.msra.mxu0 %v4257_v33 }
0x1b9f   : > { %3209 = vmatprep.subr.bf16.mxu0 %v3613_v0 }
0x1ba2   : > { %3210 = vmatpush3.bf16.msra.mxu0 %v4261_v34 }
0x1ba3   : > { %3211 = vmatprep.subr.bf16.mxu0 %v3613_v0 }
0x1ba6   : > { %3212 = vmatpush3.bf16.msra.mxu0 %v4265_v35 }
0x1ba7   : > { %3213 = vmatprep.subr.bf16.mxu0 %v3613_v0 }
0x1baa   : > { %3214 = vmatpush3.bf16.msra.mxu0 %v4269_v36 }
0x1bab   : > { %3219 = vmatprep.subr.bf16.mxu0 %v3613_v0 }
0x1c60   : > { %v1657_v13 = vpop.f32.mrb[60].mxu0 }
0x1c61   : > { %v1663_v14 = vmul.f32 %v1657_v13, %v1578_v55  ;;  %v3157_v15 = vpop.f32.mrb[61].mxu0 }
0x1c62   : > { %v1660_v16 = vpop.f32.mrb[62].mxu0 }
0x1c63   : > { %v1664_v18 = vpack.c.bf16 %v1663_v14, %v1663_v14  ;;  %v3158_v19 = vpop.f32.mrb[63].mxu0 }
0x1c65   : > { %3176 = vmatmul.mubr.bf16.vlgmr.msra.gmra.mrb[64].mxu1 %v1664_v18 }
0x1c66   : > { %3180 = vmatpush3.bf16.xpose.msra.mxu1 %v4239_v32  ;;  %3195 = vmatprep.mubr.msk.bf16.mxu1 %vm3614_vm0, %v3613_v0 }
0x1c67   : > { %3181 = vmatprep.subr.bf16.mxu1 %v3613_v0 }
0x1c6e   : > { %3182 = vmatpush3.bf16.xpose.msra.mxu1 %v4245_v7 }
0x1c6f   : > { %3183 = vmatprep.subr.bf16.mxu1 %v3613_v0 }
0x1c76   : > { %3184 = vmatpush3.bf16.xpose.msra.mxu1 %v4249_v8 }
0x1c77   : > { %3185 = vmatprep.subr.bf16.mxu1 %v3613_v0 }
0x1c7e   : > { %3186 = vmatpush3.bf16.xpose.msra.mxu1 %v4253_v17 }
0x1c7f   : > { %3187 = vmatprep.subr.bf16.mxu1 %v3613_v0 }
0x1c86   : > { %3188 = vmatpush3.bf16.xpose.msra.mxu1 %v4257_v33 }
0x1c87   : > { %3189 = vmatprep.subr.bf16.mxu1 %v3613_v0 }
0x1c8e   : > { %3190 = vmatpush3.bf16.xpose.msra.mxu1 %v4261_v34 }
0x1c8f   : > { %3191 = vmatprep.subr.bf16.mxu1 %v3613_v0 }
0x1c96   : > { %3192 = vmatpush3.bf16.xpose.msra.mxu1 %v4265_v35 }
0x1c97   : > { %3193 = vmatprep.subr.bf16.mxu1 %v3613_v0 }
0x1c9e   : > { %3194 = vmatpush3.bf16.xpose.msra.mxu1 %v4269_v36 }
0x1c9f   : > { %3239 = vmatprep.subr.bf16.mxu1 %v3613_v0 }
0x1d38   : > { %v1699_v20 = vpop.f32.mrb[64].mxu1 }
0x1d39   : > { %v1700_v21 = vadd.f32 1e-08, %v1699_v20  ;;  %v3177_v22 = vpop.f32.mrb[65].mxu1 }
0x1d3a   : > { %v1702_v23 = vpop.f32.mrb[66].mxu1 }
0x1d3b   : > { %3425 = vrcp.f32 %v1700_v21  ;;  %v3178_v24 = vpop.f32.mrb[67].mxu1 }
0x1d45   : > { %v3426_v25 = vpop.eup %3425 }
0x1d46   : > { %v1706_v26 = vpack.c.bf16 %v3426_v25, %v3426_v25 }
0x1d48   : > { %v1707_v27 = vmul.bf16 %v4292_v50, %v1706_v26 }
0x1d4a   : > { %3196 = vmatmul.mubr.bf16.vlgmr.msra.gmra.mrb[68].mxu1 %v1707_v27 }
0x1d4b   : > { %3240 = vmatpush3.bf16.msra.mxu1 %v4239_v32  ;;  %3255 = vmatprep.mubr.msk.bf16.mxu1 %vm3614_vm0, %v3613_v0 }
0x1d4c   : > { %3241 = vmatprep.subr.bf16.mxu1 %v3613_v0 }
0x1d4f   : > { %3242 = vmatpush3.bf16.msra.mxu1 %v4245_v7 }
0x1d50   : > { %3243 = vmatprep.subr.bf16.mxu1 %v3613_v0 }
0x1d53   : > { %3244 = vmatpush3.bf16.msra.mxu1 %v4249_v8 }
0x1d54   : > { %3245 = vmatprep.subr.bf16.mxu1 %v3613_v0 }
0x1d57   : > { %3246 = vmatpush3.bf16.msra.mxu1 %v4253_v17 }
0x1d58   : > { %3247 = vmatprep.subr.bf16.mxu1 %v3613_v0 }
0x1d5b   : > { %3248 = vmatpush3.bf16.msra.mxu1 %v4257_v33 }
0x1d5c   : > { %3249 = vmatprep.subr.bf16.mxu1 %v3613_v0 }
0x1d5f   : > { %3250 = vmatpush3.bf16.msra.mxu1 %v4261_v34 }
0x1d60   : > { %3251 = vmatprep.subr.bf16.mxu1 %v3613_v0 }
0x1d63   : > { %3252 = vmatpush3.bf16.msra.mxu1 %v4265_v35 }
0x1d64   : > { %3253 = vmatprep.subr.bf16.mxu1 %v3613_v0 }
0x1d67   : > { %3254 = vmatpush3.bf16.msra.mxu1 %v4269_v36 }
0x1d68   : > { %3259 = vmatprep.subr.bf16.mxu1 %v3613_v0 }
0x1e1d   : > { %v1742_v28 = vpop.f32.mrb[68].mxu1 }
0x1e1e   : > { %v1748_v29 = vmul.f32 %v1742_v28, %v1663_v14  ;;  %v3197_v1 = vpop.f32.mrb[69].mxu1  ;;  %v2009_v14 = vlaneseq }
0x1e1f   : > { %v1745_v2 = vpop.f32.mrb[70].mxu1 }
0x1e20   : > { %v1749_v3 = vpack.c.bf16 %v1748_v29, %v1748_v29  ;;  %v3198_v4 = vpop.f32.mrb[71].mxu1  ;;  %v2010_v15 = vand.u32 127, %v2009_v14 }
0x1e22   : > { %3216 = vmatmul.mubr.bf16.vlgmr.msra.gmra.mrb[64].mxu0 %v1749_v3  ;;  %vm2011_vm1 = vcmp.lt.s32.totalorder %v2010_v15, 16 }
0x1e23   : > { %3220 = vmatpush3.bf16.xpose.msra.mxu0 %v4239_v32  ;;  %3235 = vmatprep.mubr.msk.bf16.mxu0 %vm3614_vm0, %v3613_v0  ;;  %v2012_v16 = vsel %vm2011_vm1, 0.0625, %v3613_v0 }
0x1e24   : > { %3221 = vmatprep.subr.bf16.mxu0 %v3613_v0 }
0x1e2b   : > { %3222 = vmatpush3.bf16.xpose.msra.mxu0 %v4245_v7 }
0x1e2c   : > { %3223 = vmatprep.subr.bf16.mxu0 %v3613_v0 }
0x1e33   : > { %3224 = vmatpush3.bf16.xpose.msra.mxu0 %v4249_v8 }
0x1e34   : > { %3225 = vmatprep.subr.bf16.mxu0 %v3613_v0 }
0x1e3b   : > { %3226 = vmatpush3.bf16.xpose.msra.mxu0 %v4253_v17 }
0x1e3c   : > { %3227 = vmatprep.subr.bf16.mxu0 %v3613_v0 }
0x1e43   : > { %3228 = vmatpush3.bf16.xpose.msra.mxu0 %v4257_v33 }
0x1e44   : > { %3229 = vmatprep.subr.bf16.mxu0 %v3613_v0 }
0x1e4b   : > { %3230 = vmatpush3.bf16.xpose.msra.mxu0 %v4261_v34 }
0x1e4c   : > { %3231 = vmatprep.subr.bf16.mxu0 %v3613_v0 }
0x1e53   : > { %3232 = vmatpush3.bf16.xpose.msra.mxu0 %v4265_v35 }
0x1e54   : > { %3233 = vmatprep.subr.bf16.mxu0 %v3613_v0 }
0x1e5b   : > { %3234 = vmatpush3.bf16.xpose.msra.mxu0 %v4269_v36 }
0x1e5c   : > { %3279 = vmatprep.subr.bf16.mxu0 %v3613_v0 }
0x1ef5   : > { %v1784_v5 = vpop.f32.mrb[64].mxu0 }
0x1ef6   : > { %v1785_v30 = vadd.f32 1e-08, %v1784_v5  ;;  %v3217_v31 = vpop.f32.mrb[65].mxu0 }
0x1ef7   : > { %v1787_v6 = vpop.f32.mrb[66].mxu0 }
0x1ef8   : > { %3427 = vrcp.f32 %v1785_v30  ;;  %v3218_v37 = vpop.f32.mrb[67].mxu0 }
0x1f02   : > { %v3428_v38 = vpop.eup %3427 }
0x1f03   : > { %v1791_v39 = vpack.c.bf16 %v3428_v38, %v3428_v38 }
0x1f05   : > { %v1792_v40 = vmul.bf16 %v4292_v50, %v1791_v39 }
0x1f07   : > { %3236 = vmatmul.mubr.bf16.vlgmr.msra.gmra.mrb[68].mxu0 %v1792_v40 }
0x1f08   : > { %3280 = vmatpush3.bf16.msra.mxu0 %v4239_v32  ;;  %3295 = vmatprep.mubr.msk.bf16.mxu0 %vm3614_vm0, %v3613_v0 }
0x1f09   : > { %3281 = vmatprep.subr.bf16.mxu0 %v3613_v0 }
0x1f0c   : > { %3282 = vmatpush3.bf16.msra.mxu0 %v4245_v7 }
0x1f0d   : > { %3283 = vmatprep.subr.bf16.mxu0 %v3613_v0 }
0x1f10   : > { %3284 = vmatpush3.bf16.msra.mxu0 %v4249_v8 }
0x1f11   : > { %3285 = vmatprep.subr.bf16.mxu0 %v3613_v0 }
0x1f14   : > { %3286 = vmatpush3.bf16.msra.mxu0 %v4253_v17 }
0x1f15   : > { %3287 = vmatprep.subr.bf16.mxu0 %v3613_v0 }
0x1f18   : > { %3288 = vmatpush3.bf16.msra.mxu0 %v4257_v33 }
0x1f19   : > { %3289 = vmatprep.subr.bf16.mxu0 %v3613_v0 }
0x1f1c   : > { %3290 = vmatpush3.bf16.msra.mxu0 %v4261_v34 }
0x1f1d   : > { %3291 = vmatprep.subr.bf16.mxu0 %v3613_v0 }
0x1f20   : > { %3292 = vmatpush3.bf16.msra.mxu0 %v4265_v35 }
0x1f21   : > { %3293 = vmatprep.subr.bf16.mxu0 %v3613_v0 }
0x1f24   : > { %3294 = vmatpush3.bf16.msra.mxu0 %v4269_v36 }
0x1f25   : > { %3299 = vmatprep.subr.bf16.mxu0 %v3613_v0 }
0x1fda   : > { %v1827_v41 = vpop.f32.mrb[68].mxu0 }
0x1fdb   : > { %v1833_v42 = vmul.f32 %v1827_v41, %v1748_v29  ;;  %v3237_v43 = vpop.f32.mrb[69].mxu0 }
0x1fdc   : > { %v1830_v44 = vpop.f32.mrb[70].mxu0 }
0x1fdd   : > { %v1834_v45 = vpack.c.bf16 %v1833_v42, %v1833_v42  ;;  %v3238_v46 = vpop.f32.mrb[71].mxu0 }
0x1fdf   : > { %3256 = vmatmul.mubr.bf16.vlgmr.msra.gmra.mrb[72].mxu1 %v1834_v45 }
0x1fe0   : > { %3260 = vmatpush3.bf16.xpose.msra.mxu1 %v4239_v32  ;;  %3275 = vmatprep.mubr.msk.bf16.mxu1 %vm3614_vm0, %v3613_v0 }
0x1fe1   : > { %3261 = vmatprep.subr.bf16.mxu1 %v3613_v0 }
0x1fe8   : > { %3262 = vmatpush3.bf16.xpose.msra.mxu1 %v4245_v7 }
0x1fe9   : > { %3263 = vmatprep.subr.bf16.mxu1 %v3613_v0 }
0x1ff0   : > { %3264 = vmatpush3.bf16.xpose.msra.mxu1 %v4249_v8 }
0x1ff1   : > { %3265 = vmatprep.subr.bf16.mxu1 %v3613_v0 }
0x1ff8   : > { %3266 = vmatpush3.bf16.xpose.msra.mxu1 %v4253_v17 }
0x1ff9   : > { %3267 = vmatprep.subr.bf16.mxu1 %v3613_v0 }
0x2000   : > { %3268 = vmatpush3.bf16.xpose.msra.mxu1 %v4257_v33 }
0x2001   : > { %3269 = vmatprep.subr.bf16.mxu1 %v3613_v0 }
0x2008   : > { %3270 = vmatpush3.bf16.xpose.msra.mxu1 %v4261_v34 }
0x2009   : > { %3271 = vmatprep.subr.bf16.mxu1 %v3613_v0 }
0x2010   : > { %3272 = vmatpush3.bf16.xpose.msra.mxu1 %v4265_v35 }
0x2011   : > { %3273 = vmatprep.subr.bf16.mxu1 %v3613_v0 }
0x2018   : > { %3274 = vmatpush3.bf16.xpose.msra.mxu1 %v4269_v36 }
0x20b2   : > { %v1869_v47 = vpop.f32.mrb[72].mxu1 }
0x20b3   : > { %v1870_v48 = vadd.f32 1e-08, %v1869_v47  ;;  %v3257_v49 = vpop.f32.mrb[73].mxu1 }
0x20b4   : > { %v1872_v51 = vpop.f32.mrb[74].mxu1 }
0x20b5   : > { %3429 = vrcp.f32 %v1870_v48  ;;  %v3258_v52 = vpop.f32.mrb[75].mxu1 }
0x20bf   : > { %v3430_v53 = vpop.eup %3429 }
0x20c0   : > { %v1876_v54 = vpack.c.bf16 %v3430_v53, %v3430_v53 }
0x20c2   : > { %v1877_v55 = vmul.bf16 %v4292_v50, %v1876_v54 }
0x20c4   : > { %3276 = vmatmul.mubr.bf16.vlgmr.msra.gmra.mrb[76].mxu1 %v1877_v55 }
0x2197   : > { %v1912_v56 = vpop.f32.mrb[76].mxu1 }
0x2198   : > { %v1918_v57 = vmul.f32 %v1912_v56, %v1833_v42  ;;  %v3277_v58 = vpop.f32.mrb[77].mxu1 }
0x2199   : > { %v1915_v59 = vpop.f32.mrb[78].mxu1 }
0x219a   : > { %v1919_v60 = vpack.c.bf16 %v1918_v57, %v1918_v57  ;;  %v3278_v61 = vpop.f32.mrb[79].mxu1 }
0x219c   : > { %3296 = vmatmul.mubr.bf16.vlgmr.msra.gmra.mrb[72].mxu0 %v1919_v60 }
0x219d   : > { %3300 = vmatpush3.bf16.xpose.msra.mxu0 %v4239_v32  ;;  %3315 = vmatprep.mubr.msk.bf16.mxu0 %vm3614_vm0, %v3613_v0 }
0x219e   : > { %3301 = vmatprep.subr.bf16.mxu0 %v3613_v0 }
0x21a5   : > { %3302 = vmatpush3.bf16.xpose.msra.mxu0 %v4245_v7 }
0x21a6   : > { %3303 = vmatprep.subr.bf16.mxu0 %v3613_v0 }
0x21ad   : > { %3304 = vmatpush3.bf16.xpose.msra.mxu0 %v4249_v8 }
0x21ae   : > { %3305 = vmatprep.subr.bf16.mxu0 %v3613_v0 }
0x21b5   : > { %3306 = vmatpush3.bf16.xpose.msra.mxu0 %v4253_v17 }
0x21b6   : > { %3307 = vmatprep.subr.bf16.mxu0 %v3613_v0 }
0x21bd   : > { %3308 = vmatpush3.bf16.xpose.msra.mxu0 %v4257_v33 }
0x21be   : > { %3309 = vmatprep.subr.bf16.mxu0 %v3613_v0 }
0x21c5   : > { %3310 = vmatpush3.bf16.xpose.msra.mxu0 %v4261_v34 }
0x21c6   : > { %3311 = vmatprep.subr.bf16.mxu0 %v3613_v0 }
0x21cd   : > { %3312 = vmatpush3.bf16.xpose.msra.mxu0 %v4265_v35 }
0x21ce   : > { %3313 = vmatprep.subr.bf16.mxu0 %v3613_v0 }
0x21d5   : > { %3314 = vmatpush3.bf16.xpose.msra.mxu0 %v4269_v36 }
0x226f   : > { %v1954_v32 = vpop.f32.mrb[72].mxu0 }
0x2270   : > { %v1955_v7 = vadd.f32 1e-08, %v1954_v32  ;;  %v3297_v8 = vpop.f32.mrb[73].mxu0 }
0x2271   : > { %v1957_v17 = vpop.f32.mrb[74].mxu0 }
0x2272   : > { %3431 = vrcp.f32 %v1955_v7  ;;  %v3298_v62 = vpop.f32.mrb[75].mxu0 }
0x227c   : > { %v3432_v63 = vpop.eup %3431 }
0x227d   : > { %v1961_v33 = vpack.c.bf16 %v3432_v63, %v3432_v63 }
0x227f   : > { %v1962_v34 = vmul.bf16 %v4292_v50, %v1961_v33 }
0x2281   : > { %3316 = vmatmul.mubr.bf16.vlgmr.msra.gmra.mrb[76].mxu0 %v1962_v34 }
0x2354   : > { %v1997_v9 = vpop.f32.mrb[76].mxu0 }
0x2355   : > { %v2003_v10 = vmul.f32 %v1997_v9, %v1918_v57  ;;  %v3317_v35 = vpop.f32.mrb[77].mxu0 }
0x2356   : > { %v2000_v11 = vpop.f32.mrb[78].mxu0 }
0x2357   : > { %v3318_v12 = vpop.f32.mrb[79].mxu0  ;;  %2004 = vadd.xlane.f32.xlu0 %v2003_v10 }
0x23e4   : > { %v2005_v36 = vpop.xlane.xlu0 %2004 }
0x23e5   : > { %v2006_v13 = vadd.f32 1e-08, %v2005_v36  ;;  %vm2013_vm2 = vcmp.gt.f32.partialorder %v2005_v36, 1e-08 }
0x23e7   : > { %3433 = vrcp.f32 %v2006_v13 }
0x23f1   : > { %v3434_v50 = vpop.eup %3433 }
0x23f2   : > { %v2008_v18 = vmul.f32 %v3434_v50, %v2003_v10 }
0x23f4   : > { %v2016_v19 = vsel %vm2013_vm2, %v2008_v18, %v2012_v16 }
0x23f5   : > { %2017 = vst [vmem:[%s236_s22] sm:$0xff] %v2016_v19 }
0x23f6   : > { %3545 = shalt.err (!%p3542_p2)
}
0x23f7   : > { %s3546_s10 = scalar_lea.hbm %s4615_s25, 128  ;;  %s3550_s27 = scalar_lea.hbm %s4662_s3, 256 }
0x23f8   : > { %p3547_p6 = scmp.ne.s32.totalorder %s4615_s25, %s3546_s10  ;;  %p3551_p12 = scmp.lt.u32.totalorder %s4615_s25, %s4662_s3 }
0x23f9   : > { %p3552_p11 = scmp.lt.u32.totalorder %s3550_s27, %s3546_s10  ;;  %p3554_p10 = scmp.lt.u32.totalorder %s3546_s10, %s4615_s25 }
0x23fa   : > { %p3548_p8 = pnand %p3547_p6, %p4678_p13 }
0x23fb   : > { %p3553_p0 = por %p3552_p11, %p3551_p12 }
0x23fc   : > { %p3549_p4 = pneg %p3548_p8 }
0x23fd   : > { %p3555_p3 = por %p3554_p10, %p3553_p0 }
0x23ff   : > { %p3556_p7 = pnand %p3555_p3, %p3549_p4 }
0x2401   : > { %3559 = shalt.err (!%p3556_p7)
}
0x2402   : > { %3327 = dma.vmem_to_hbm [thread:$0]  (%p4678_p13), %s4617_s26, 128, %s4615_s25, %s2019_s16  }
0x2403 PF: > { %s2044_s11 = sand.u32 1, %s3594_s12   ;;  %p4679_p9 = scmp.ne.s32.totalorder %s4668_s19, 0 }
0x2404   : > { %p4680_p1 = scmp.ge.s32.totalorder %s3606_s15, 2  ;;  %s2045_s28 = scalar_lea.sflag [#allocation4], %s2044_s11 }
0x2406   : > { %p3341_p5 = pnand %p4680_p1, %p4679_p9 }
0x2408   : > { %3589 = dma.done.wait (!%p3341_p5), %s2045_s28, 128  }
0x2409   : > { %3591 = vsyncadd (!%p3341_p5), %s2045_s28, 4294967168  ;;  %p19_p2 = scmp.ge.s32.totalorder %s3692_s24, 4   ;;  %s4681_s12 = smov %s3598_s13 }
0x240a   : > { %s4682_s13 = smov %s3602_s14  ;;  %s4683_s14 = smov %s3723_s17 }
0x240b   : > { %s4684_s15 = smov %s3692_s24  ;;  %21 = sbr.rel (!%p19_p2) target bundleno = 7 (0x7), region = 94 }
0x2412   :  { %2050 = vsyncpa [#allocation3], 1 }
0x2413   :  { %2052 = vsyncpa [#allocation3 + $0x1], 1 }
0x2414   :  { %2053 = vsyncpa [#allocation6], 1 }
0x2415   :  { %2055 = vsyncpa [#allocation6 + $0x1], 1 }
0x2416   :  { %2056 = vsyncpa [#allocation4], 1 }
0x2417   :  { %2058 = vsyncpa [#allocation4 + $0x1], 1 }

// kernel: tpu_custom_call.1
= control target key start
LH: loop header
LB: loop body
LE: loop exit
PB: predicated region body
PF: predicated region fallthrough
CT: control target
= control target key end

     0   :  { %8 = vsyncpa [#allocation3], 0  ;;  %s4659_s0 = inlined_call_operand.hbm [shape: bf16[16,128], index: 0, kind: input, shape index: {}]   ;;  %s4660_s1 = inlined_call_operand.hbm [shape: f32[16,128], index: 1, kind: input, shape index: {}]   ;;  %s4661_s2 = inlined_call_operand.hbm [shape: bf16[128,128], index: 2, kind: input, shape index: {}]   ;;  %s4662_s3 = inlined_call_operand.hbm [shape: f32[16,128], index: 3, kind: output, shape index: {}]  }
   0x1   :  { %10 = vsyncpa [#allocation3 + $0x1], 0 }
   0x2   :  { %11 = vsyncpa [#allocation6], 0 }
   0x3   :  { %13 = vsyncpa [#allocation6 + $0x1], 0 }
   0x4   :  { %14 = vsyncpa [#allocation4], 0 }
   0x5   :  { %16 = vsyncpa [#allocation4 + $0x1], 0  ;;  %s3636_s12 = smov 0   ;;  %s3638_s13 = smov 0  }
   0x6   :  { %s3640_s14 = smov 0   ;;  %s3642_s15 = smov 0  }
   0x7 LB: > { %s3657_s16 = sadd.s32 4294967295, %s3606_s15   ;;  %s2134_s17 = sadd.s32 4294967294, %s3606_s15   ;;  %s3606_s15 = sphi %s3642_s15, %s4684_s15   ;;  %s3602_s14 = sphi %s3640_s14, %s4683_s14   ;;  %s3598_s13 = sphi %s3638_s13, %s4682_s13   ;;  %s3594_s12 = sphi %s3636_s12, %s4681_s12  }
   0x8   : > { %p42_p0 = scmp.ne.s32.totalorder %s3598_s13, %s3594_s12  ;;  %p4663_p1 = scmp.eq.s32.totalorder %s3657_s16, 0 }
   0x9   : > { %p119_p3 = scmp.eq.s32.totalorder %s2134_s17, 1  ;;  %p2135_p5 = scmp.ge.s32.totalorder %s3606_s15, 1 }
   0xa   : > { %p3666_p4 = por %p4663_p1, %p42_p0  ;;  %p126_p7 = scmp.lt.s32.totalorder %s3606_s15, 3 }
   0xb   : > { %p3671_p6 = por %p119_p3, %p42_p0  ;;  %s3608_s21 = smov [#allocation7]  }
   0xc   : > { %s4667_s18 = scalar_select %p3666_p4, 1, 0 }
   0xd   : > { %s4668_s19 = scalar_select %p3671_p6, 1, 0 }
   0xe   : > { %p3676_p8 = pnand %p2135_p5, %p126_p7  ;;  %s138_s22 = sshll.u32 %s3608_s21, 4  ;;  %s3680_s22 = int_to_ptr.vmem [resolvable:$true] %s138_s22 }
   0xf   : > { %s3692_s24 = sadd.s32 1, %s3606_s15   ;;  %s29_s25 = sadd.s32 1, %s3602_s14 }
  0x10   : > { %s4669_s20 = scalar_select %p3676_p8, 1, 0 }
  0x11   : > { %p3329_p9 = pneg %p3676_p8  ;;  %s26_s26 = ssub.s32 %s3606_s15, %s3692_s24 }
  0x12   : > { %s3444_s29 = scalar_lea.hbm %s4661_s2, 1024 }
  0x13   : > { %p3687_p11 = pnand %p3329_p9, %p4663_p1  ;;  %p3445_p12 = scmp.ne.s32.totalorder %s4661_s2, %s3444_s29 }
  0x14   : > { %p3451_p5 = scmp.lt.u32.totalorder %s3444_s29, %s4661_s2 }
  0x15   : > { %p3446_p13 = pneg %p3687_p11 }
  0x17   : > { %p3447_p0 = pnand %p3446_p13, %p3445_p12 }
  0x19   : > { %p3448_p3 = pneg %p3447_p0 }
  0x1b   : > { %p3453_p7 = pnand %p3451_p5, %p3448_p3 }
  0x1d   : > { %3456 = shalt.err (!%p3453_p7)
}
  0x1e   : > { %s3457_s7 = scalar_lea.vmem %s3680_s22, 1024  ;;  %p3465_p2 = scmp.lt.s32.totalorder %s3680_s22, %s3680_s22 }
  0x1f   : > { %p3458_p9 = scmp.ne.s32.totalorder %s3680_s22, %s3457_s7  ;;  %p3466_p6 = scmp.lt.s32.totalorder %s3457_s7, %s3457_s7 }
  0x21   : > { %p3460_p10 = pnand %p3458_p9, %p3446_p13  ;;  %p3467_p4 = por %p3466_p6, %p3465_p2 }
  0x23   : > { %p3461_p1 = pneg %p3460_p10 }
  0x25   : > { %p3468_p8 = pnand %p3467_p4, %p3461_p1 }
  0x27   : > { %3471 = shalt.err (!%p3468_p8)
}
  0x28   : > { %s3609_s8 = smov 64   ;;  %s3610_s9 = smov 4  }
  0x29   : > { %3332 = dma.hbm_to_vmem [thread:$0]  (!%p3687_p11), %s4661_s2, 1024, %s3680_s22, [#allocation6], %s3609_s8, %s3609_s8, %s3610_s9  }
  0x2a   : > { %p27_p1 = scmp.eq.s32.totalorder %s26_s26, 0  ;;  %p36_p2 = scmp.ne.s32.totalorder %s3602_s14, %s3598_s13 }
  0x2b   : > { %p37_p4 = scmp.eq.s32.totalorder %s3606_s15, 0  ;;  %p3345_p6 = scmp.lt.s32.totalorder %s3606_s15, 2 }
  0x2c   : > { %s3723_s17 = scalar_select %p27_p1, %s3602_s14, %s29_s25  }
  0x2d   : > { %p38_p8 = por %p37_p4, %p36_p2  ;;  %p4671_p10 = scmp.eq.s32.totalorder %s3657_s16, 1 }
  0x2e   : > { %s3732_s27 = sand.u32 1, %s3602_s14   ;;  %s2139_s23 = sshll.u32 %s3606_s15, 6 }
  0x2f   : > { %p3727_p12 = por %p4671_p10, %p36_p2  ;;  %s2138_s28 = sshll.u32 %s3732_s27, 2 }
  0x30   : > { %s3739_s26 = scalar_lea.hbm %s4659_s0, %s2139_s23  ;;  %s156_s25 = scalar_lea.vmem [#allocation2], %s2138_s28 }
  0x31   : > { %s4672_s21 = scalar_select %p3727_p12, 1, 0 }
  0x32   : > { %s163_s30 = sshll.u32 %s156_s25, 4  ;;  %p3741_p11 = pnand %p3345_p6, %p38_p8  ;;  %s3745_s30 = int_to_ptr.vmem [resolvable:$true] %s163_s30 }
  0x33   : > { %s170_s5 = sand.u32 1, %s3606_s15   ;;  %s153_s6 = scalar_lea.sflag [#allocation3], %s3732_s27 }
  0x34   : > { %s3472_s7 = scalar_lea.hbm %s3739_s26, 64  ;;  %p3474_p0 = pneg %p3741_p11 }
  0x35   : > { %p3473_p13 = scmp.ne.s32.totalorder %s3739_s26, %s3472_s7  ;;  %s3477_s10 = scalar_lea.hbm %s4659_s0, 128 }
  0x36   : > { %p3478_p7 = scmp.lt.u32.totalorder %s3739_s26, %s4659_s0  ;;  %p3479_p9 = scmp.lt.u32.totalorder %s3477_s10, %s3472_s7 }
  0x37   : > { %p3475_p3 = pnand %p3474_p0, %p3473_p13  ;;  %p3481_p2 = scmp.lt.u32.totalorder %s3472_s7, %s3739_s26 }
  0x38   : > { %p3480_p1 = por %p3479_p9, %p3478_p7 }
  0x39   : > { %p3476_p5 = pneg %p3475_p3 }
  0x3a   : > { %p3482_p4 = por %p3481_p2, %p3480_p1 }
  0x3c   : > { %p3483_p6 = pnand %p3482_p4, %p3476_p5 }
  0x3e   : > { %3486 = shalt.err (!%p3483_p6)
}
  0x3f   : > { %s3487_s28 = scalar_lea.vmem %s3745_s30, 64  ;;  %s3611_s22 = smov [#allocation2]  }
  0x40   : > { %p3488_p8 = scmp.ne.s32.totalorder %s3745_s30, %s3487_s28  ;;  %s3492_s29 = sshll.u32 %s3611_s22, 4  ;;  %s3493_s29 = int_to_ptr.vmem [resolvable:$false] %s3492_s29 }
  0x41   : > { %s3494_s25 = scalar_lea.vmem %s3493_s29, 128  ;;  %p3495_p3 = scmp.lt.s32.totalorder %s3745_s30, %s3493_s29 }
  0x42   : > { %p3490_p10 = pnand %p3488_p8, %p3474_p0  ;;  %p3496_p7 = scmp.lt.s32.totalorder %s3494_s25, %s3487_s28 }
  0x44   : > { %p3491_p13 = pneg %p3490_p10  ;;  %p3497_p9 = por %p3496_p7, %p3495_p3 }
  0x46   : > { %p3498_p1 = pnand %p3497_p9, %p3491_p13 }
  0x48   : > { %3501 = shalt.err (!%p3498_p1)
}
  0x49   : > { %3336 = dma.hbm_to_vmem [thread:$0]  (!%p3741_p11), %s3739_s26, 64, %s3745_s30, %s153_s6  }
  0x4a   : > { %s2140_s7 = sshll.u32 %s3732_s27, 3  ;;  %s2141_s8 = sshll.u32 %s3606_s15, 7 }
  0x4b   : > { %s3779_s11 = scalar_lea.hbm %s4660_s1, %s2141_s8  ;;  %s174_s23 = scalar_lea.vmem [#allocation5], %s2140_s7 }
  0x4c   : > { %s181_s28 = sshll.u32 %s174_s23, 4  ;;  %s171_s22 = scalar_lea.sflag [#allocation6], %s170_s5  ;;  %s182_s28 = int_to_ptr.vmem [resolvable:$true] %s181_s28 }
  0x4d   : > { %s3502_s29 = scalar_lea.hbm %s3779_s11, 128  ;;  %s3507_s30 = scalar_lea.hbm %s4660_s1, 256 }
  0x4e   : > { %p3503_p5 = scmp.ne.s32.totalorder %s3779_s11, %s3502_s29  ;;  %p3508_p6 = scmp.lt.u32.totalorder %s3779_s11, %s4660_s1 }
  0x4f   : > { %p3509_p8 = scmp.lt.u32.totalorder %s3507_s30, %s3502_s29  ;;  %p3511_p13 = scmp.lt.u32.totalorder %s3502_s29, %s3779_s11 }
  0x50   : > { %p3505_p2 = pnand %p3503_p5, %p3474_p0 }
  0x51   : > { %p3510_p10 = por %p3509_p8, %p3508_p6 }
  0x52   : > { %p3506_p4 = pneg %p3505_p2 }
  0x53   : > { %p3512_p3 = por %p3511_p13, %p3510_p10 }
  0x55   : > { %p3513_p7 = pnand %p3512_p3, %p3506_p4 }
  0x57   : > { %3516 = shalt.err (!%p3513_p7)
}
  0x58   : > { %s3517_s5 = scalar_lea.vmem %s182_s28, 128  ;;  %s3612_s7 = smov [#allocation5]  }
  0x59   : > { %p3518_p9 = scmp.ne.s32.totalorder %s182_s28, %s3517_s5  ;;  %s3522_s8 = sshll.u32 %s3612_s7, 4  ;;  %s3523_s8 = int_to_ptr.vmem [resolvable:$false] %s3522_s8 }
  0x5a   : > { %s3524_s9 = scalar_lea.vmem %s3523_s8, 256  ;;  %p3525_p2 = scmp.lt.s32.totalorder %s182_s28, %s3523_s8 }
  0x5b   : > { %p3520_p1 = pnand %p3518_p9, %p3474_p0  ;;  %p3526_p12 = scmp.lt.s32.totalorder %s3524_s9, %s3517_s5 }
  0x5d   : > { %p3521_p5 = pneg %p3520_p1  ;;  %p3527_p6 = por %p3526_p12, %p3525_p2 }
  0x5f   : > { %p3528_p8 = pnand %p3527_p6, %p3521_p5 }
  0x61   : > { %3531 = shalt.err (!%p3528_p8)
}
  0x62   : > { %3339 = dma.hbm_to_vmem [thread:$0]  (!%p3741_p11), %s3779_s11, 128, %s182_s28, %s171_s22  }
  0x63   : > { %p4674_p4 = scmp.ne.s32.totalorder %s4669_s20, 0 }
  0x64   : > { %s3805_s10 = sand.u32 (!%p4674_p4), 1, %s3598_s13   ;;  %p4675_p12 = scmp.ne.s32.totalorder (!%p4674_p4), %s4667_s18, 0 }
  0x65   : > { %190 = sbr.rel (%p4674_p4) target bundleno = 9219 (0x2403), region = 32  ;;  %s2143_s23 = sshll.u32 (!%p4674_p4), %s3805_s10, 2 }
  0x66   : > { %s193_s29 = scalar_lea.sflag (!%p4674_p4), [#allocation3], %s3805_s10  ;;  %s3809_s27 = scalar_lea.vmem (!%p4674_p4), [#allocation2], %s2143_s23 }
  0x6c   : > { %3577 = dma.done.wait (%p4675_p12), %s193_s29, 64  }
  0x6d   : > { %3579 = vsyncadd (%p4675_p12), %s193_s29, 4294967232  ;;  %s201_s20 = sand.u32 1, %s3657_s16   ;;  %s2144_s4 = sshll.u32 %s3805_s10, 3 }
  0x6e   : > { %s202_s11 = scalar_lea.sflag [#allocation6], %s201_s20  ;;  %s3819_s28 = scalar_lea.vmem [#allocation5], %s2144_s4 }
  0x6f   : > { %3581 = dma.done.wait (%p4675_p12), %s202_s11, 128  }
  0x70   : > { %3583 = vsyncadd (%p4675_p12), %s202_s11, 4294967168  ;;  %p4676_p11 = scmp.eq.s32.totalorder %s3657_s16, 0 }
  0x72   : > { %3585 = dma.done.wait (%p4676_p11), [#allocation6], 1024   ;;  %p4677_p0 = pmov %p4676_p11 }
  0x73   : > { %v3613_v0 = vmov 0.0   ;;  %vm3614_vm0 = vmmov 0   ;;  %v3835_v1 = vld [vmem:[#allocation7] sm:$0xff]   ;;  %v3837_v2 = vld [vmem:[#allocation7 + $0x8] sm:$0xff]   ;;  %v3843_v3 = vld [vmem:[#allocation7 + $0x10] sm:$0xff]   ;;  %s2156_s18 = sshll.u32 %s3657_s16, 7 }
  0x74   : > { %3587 = vsyncadd (%p4677_p0), [#allocation6], 4294966272  ;;  %2519 = vmatprep.subr.bf16.mxu1 %v3613_v0  ;;  %2535 = vmatprep.mubr.msk.bf16.mxu1 %vm3614_vm0, %v3613_v0  ;;  %v3849_v4 = vld [vmem:[#allocation7 + $0x18] sm:$0xff]   ;;  %v3855_v5 = vld [vmem:[#allocation7 + $0x20] sm:$0xff]   ;;  %s236_s22 = scalar_lea.vmem [#allocation8], %s2144_s4  ;;  %s4615_s25 = scalar_lea.hbm %s4662_s3, %s2156_s18 }
  0x75   : > { %2559 = vmatprep.subr.bf16.mxu0 %v3613_v0  ;;  %2575 = vmatprep.mubr.msk.bf16.mxu0 %vm3614_vm0, %v3613_v0  ;;  %v3861_v6 = vld [vmem:[#allocation7 + $0x28] sm:$0xff]   ;;  %v3867_v7 = vld [vmem:[#allocation7 + $0x30] sm:$0xff]   ;;  %v3873_v8 = vld [vmem:[#allocation7 + $0x38] sm:$0xff]   ;;  %s2032_s26 = sshll.u32 %s236_s22, 4  ;;  %s2019_s16 = scalar_lea.sflag [#allocation4], %s3805_s10  ;;  %s4617_s26 = int_to_ptr.vmem [resolvable:$true] %s2032_s26 }
  0x76   : > { %2520 = vmatpush3.bf16.msra.mxu1 %v3835_v1  ;;  %2560 = vmatpush3.bf16.msra.mxu0 %v3835_v1  ;;  %v238_v9 = vld [vmem:[%s3819_s28] sm:$0xff]  ;;  %v3903_v17 = vld [vmem:[%s3809_s27] sm:$0xf]  ;;  %s3532_s5 = scalar_lea.vmem %s4617_s26, 128  ;;  %p4678_p13 = scmp.ne.s32.totalorder %s4672_s21, 0 }
  0x77   : > { %2521 = vmatprep.subr.bf16.mxu1 %v3613_v0  ;;  %2561 = vmatprep.subr.bf16.mxu0 %v3613_v0  ;;  %v239_v10 = vpack.c.bf16 %v238_v9, %v238_v9  ;;  %p3533_p10 = scmp.ne.s32.totalorder %s4617_s26, %s3532_s5  ;;  %s3615_s7 = smov [#allocation8]  }
  0x78   : > { %s3536_s8 = sshll.u32 %s3615_s7, 4  ;;  %s3537_s8 = int_to_ptr.vmem [resolvable:$false] %s3536_s8 }
  0x79   : > { %p3534_p3 = pnand %p3533_p10, %p4678_p13  ;;  %s3538_s9 = scalar_lea.vmem %s3537_s8, 256 }
  0x7a   : > { %2522 = vmatpush3.bf16.msra.mxu1 %v3837_v2  ;;  %2562 = vmatpush3.bf16.msra.mxu0 %v3837_v2  ;;  %p3539_p9 = scmp.lt.s32.totalorder %s4617_s26, %s3537_s8  ;;  %p3540_p1 = scmp.lt.s32.totalorder %s3538_s9, %s3532_s5 }
  0x7b   : > { %2523 = vmatprep.subr.bf16.mxu1 %v3613_v0  ;;  %2563 = vmatprep.subr.bf16.mxu0 %v3613_v0  ;;  %p3535_p7 = pneg %p3534_p3 }
  0x7c   : > { %p3541_p5 = por %p3540_p1, %p3539_p9 }
  0x7e   : > { %2524 = vmatpush3.bf16.msra.mxu1 %v3843_v3  ;;  %2564 = vmatpush3.bf16.msra.mxu0 %v3843_v3  ;;  %p3542_p2 = pnand %p3541_p5, %p3535_p7 }
  0x7f   : > { %2525 = vmatprep.subr.bf16.mxu1 %v3613_v0  ;;  %2565 = vmatprep.subr.bf16.mxu0 %v3613_v0 }
  0x82   : > { %2526 = vmatpush3.bf16.msra.mxu1 %v3849_v4  ;;  %2566 = vmatpush3.bf16.msra.mxu0 %v3849_v4 }
  0x83   : > { %2527 = vmatprep.subr.bf16.mxu1 %v3613_v0  ;;  %2567 = vmatprep.subr.bf16.mxu0 %v3613_v0 }
  0x86   : > { %2528 = vmatpush3.bf16.msra.mxu1 %v3855_v5  ;;  %2568 = vmatpush3.bf16.msra.mxu0 %v3855_v5 }
  0x87   : > { %2529 = vmatprep.subr.bf16.mxu1 %v3613_v0  ;;  %2569 = vmatprep.subr.bf16.mxu0 %v3613_v0 }
  0x8a   : > { %2530 = vmatpush3.bf16.msra.mxu1 %v3861_v6  ;;  %2570 = vmatpush3.bf16.msra.mxu0 %v3861_v6 }
  0x8b   : > { %2531 = vmatprep.subr.bf16.mxu1 %v3613_v0  ;;  %2571 = vmatprep.subr.bf16.mxu0 %v3613_v0 }
  0x8e   : > { %2532 = vmatpush3.bf16.msra.mxu1 %v3867_v7  ;;  %2572 = vmatpush3.bf16.msra.mxu0 %v3867_v7 }
  0x8f   : > { %2533 = vmatprep.subr.bf16.mxu1 %v3613_v0  ;;  %2573 = vmatprep.subr.bf16.mxu0 %v3613_v0 }
  0x92   : > { %2534 = vmatpush3.bf16.msra.mxu1 %v3873_v8  ;;  %2574 = vmatpush3.bf16.msra.mxu0 %v3873_v8 }
  0x93   : > { %2539 = vmatprep.subr.bf16.mxu1 %v3613_v0  ;;  %2579 = vmatprep.subr.bf16.mxu0 %v3613_v0 }
  0x95   : > { %2536 = vmatmul.mubr.bf16.vlgmr.msra.gmra.mrb[0].mxu1 %v239_v10 }
  0x96   : > { %2555 = vmatprep.mubr.msk.bf16.mxu1 %vm3614_vm0, %v3613_v0 }
  0x9b   : > { %2540 = vmatpush3.bf16.xpose.msra.mxu1 %v3835_v1 }
  0x9c   : > { %2541 = vmatprep.subr.bf16.mxu1 %v3613_v0 }
  0xa3   : > { %2542 = vmatpush3.bf16.xpose.msra.mxu1 %v3837_v2 }
  0xa4   : > { %2543 = vmatprep.subr.bf16.mxu1 %v3613_v0 }
  0xab   : > { %2544 = vmatpush3.bf16.xpose.msra.mxu1 %v3843_v3 }
  0xac   : > { %2545 = vmatprep.subr.bf16.mxu1 %v3613_v0 }
  0xb3   : > { %2546 = vmatpush3.bf16.xpose.msra.mxu1 %v3849_v4 }
  0xb4   : > { %2547 = vmatprep.subr.bf16.mxu1 %v3613_v0 }
  0xbb   : > { %2548 = vmatpush3.bf16.xpose.msra.mxu1 %v3855_v5 }
  0xbc   : > { %2549 = vmatprep.subr.bf16.mxu1 %v3613_v0 }
  0xc3   : > { %2550 = vmatpush3.bf16.xpose.msra.mxu1 %v3861_v6 }
  0xc4   : > { %2551 = vmatprep.subr.bf16.mxu1 %v3613_v0 }
  0xcb   : > { %2552 = vmatpush3.bf16.xpose.msra.mxu1 %v3867_v7 }
  0xcc   : > { %2553 = vmatprep.subr.bf16.mxu1 %v3613_v0 }
  0xd3   : > { %2554 = vmatpush3.bf16.xpose.msra.mxu1 %v3873_v8 }
  0xd4   : > { %2599 = vmatprep.subr.bf16.mxu1 %v3613_v0 }
 0x168   : > { %v339_v11 = vpop.f32.mrb[0].mxu1 }
 0x169   : > { %v340_v12 = vadd.f32 1e-08, %v339_v11  ;;  %v2537_v13 = vpop.f32.mrb[1].mxu1 }
 0x16a   : > { %v342_v14 = vpop.f32.mrb[2].mxu1 }
 0x16b   : > { %3393 = vrcp.f32 %v340_v12  ;;  %v2538_v15 = vpop.f32.mrb[3].mxu1 }
 0x175   : > { %v3394_v16 = vpop.eup %3393 }
 0x176   : > { %v346_v18 = vpack.c.bf16 %v3394_v16, %v3394_v16 }
 0x178   : > { %v347_v19 = vmul.bf16 %v346_v18, %v3903_v17 }
 0x17a   : > { %2556 = vmatmul.mubr.bf16.vlgmr.msra.gmra.mrb[4].mxu1 %v347_v19 }
 0x17b   : > { %2600 = vmatpush3.bf16.msra.mxu1 %v3835_v1  ;;  %2615 = vmatprep.mubr.msk.bf16.mxu1 %vm3614_vm0, %v3613_v0 }
 0x17c   : > { %2601 = vmatprep.subr.bf16.mxu1 %v3613_v0 }
 0x17f   : > { %2602 = vmatpush3.bf16.msra.mxu1 %v3837_v2 }
 0x180   : > { %2603 = vmatprep.subr.bf16.mxu1 %v3613_v0 }
 0x183   : > { %2604 = vmatpush3.bf16.msra.mxu1 %v3843_v3 }
 0x184   : > { %2605 = vmatprep.subr.bf16.mxu1 %v3613_v0 }
 0x187   : > { %2606 = vmatpush3.bf16.msra.mxu1 %v3849_v4 }
 0x188   : > { %2607 = vmatprep.subr.bf16.mxu1 %v3613_v0 }
 0x18b   : > { %2608 = vmatpush3.bf16.msra.mxu1 %v3855_v5 }
 0x18c   : > { %2609 = vmatprep.subr.bf16.mxu1 %v3613_v0 }
 0x18f   : > { %2610 = vmatpush3.bf16.msra.mxu1 %v3861_v6 }
 0x190   : > { %2611 = vmatprep.subr.bf16.mxu1 %v3613_v0 }
 0x193   : > { %2612 = vmatpush3.bf16.msra.mxu1 %v3867_v7 }
 0x194   : > { %2613 = vmatprep.subr.bf16.mxu1 %v3613_v0 }
 0x197   : > { %2614 = vmatpush3.bf16.msra.mxu1 %v3873_v8 }
 0x198   : > { %2619 = vmatprep.subr.bf16.mxu1 %v3613_v0 }
 0x24d   : > { %v382_v20 = vpop.f32.mrb[4].mxu1 }
 0x24e   : > { %v388_v21 = vmul.f32 %v382_v20, %v238_v9  ;;  %v2557_v22 = vpop.f32.mrb[5].mxu1 }
 0x24f   : > { %v385_v23 = vpop.f32.mrb[6].mxu1 }
 0x250   : > { %v389_v24 = vpack.c.bf16 %v388_v21, %v388_v21  ;;  %v2558_v25 = vpop.f32.mrb[7].mxu1 }
 0x252   : > { %2576 = vmatmul.mubr.bf16.vlgmr.msra.gmra.mrb[0].mxu0 %v389_v24 }
 0x253   : > { %2580 = vmatpush3.bf16.xpose.msra.mxu0 %v3835_v1  ;;  %2595 = vmatprep.mubr.msk.bf16.mxu0 %vm3614_vm0, %v3613_v0 }
 0x254   : > { %2581 = vmatprep.subr.bf16.mxu0 %v3613_v0 }
 0x25b   : > { %2582 = vmatpush3.bf16.xpose.msra.mxu0 %v3837_v2 }
 0x25c   : > { %2583 = vmatprep.subr.bf16.mxu0 %v3613_v0 }
 0x263   : > { %2584 = vmatpush3.bf16.xpose.msra.mxu0 %v3843_v3 }
 0x264   : > { %2585 = vmatprep.subr.bf16.mxu0 %v3613_v0 }
 0x26b   : > { %2586 = vmatpush3.bf16.xpose.msra.mxu0 %v3849_v4 }
 0x26c   : > { %2587 = vmatprep.subr.bf16.mxu0 %v3613_v0 }
 0x273   : > { %2588 = vmatpush3.bf16.xpose.msra.mxu0 %v3855_v5 }
 0x274   : > { %2589 = vmatprep.subr.bf16.mxu0 %v3613_v0 }
 0x27b   : > { %2590 = vmatpush3.bf16.xpose.msra.mxu0 %v3861_v6 }
 0x27c   : > { %2591 = vmatprep.subr.bf16.mxu0 %v3613_v0 }
 0x283   : > { %2592 = vmatpush3.bf16.xpose.msra.mxu0 %v3867_v7 }
 0x284   : > { %2593 = vmatprep.subr.bf16.mxu0 %v3613_v0 }
 0x28b   : > { %2594 = vmatpush3.bf16.xpose.msra.mxu0 %v3873_v8 }
 0x28c   : > { %2639 = vmatprep.subr.bf16.mxu0 %v3613_v0 }
 0x325   : > { %v424_v26 = vpop.f32.mrb[0].mxu0 }
 0x326   : > { %v425_v27 = vadd.f32 1e-08, %v424_v26  ;;  %v2577_v28 = vpop.f32.mrb[1].mxu0 }
 0x327   : > { %v427_v29 = vpop.f32.mrb[2].mxu0 }
 0x328   : > { %3395 = vrcp.f32 %v425_v27  ;;  %v2578_v30 = vpop.f32.mrb[3].mxu0 }
 0x332   : > { %v3396_v31 = vpop.eup %3395 }
 0x333   : > { %v431_v32 = vpack.c.bf16 %v3396_v31, %v3396_v31 }
 0x335   : > { %v432_v33 = vmul.bf16 %v431_v32, %v3903_v17 }
 0x337   : > { %2596 = vmatmul.mubr.bf16.vlgmr.msra.gmra.mrb[4].mxu0 %v432_v33 }
 0x338   : > { %2640 = vmatpush3.bf16.msra.mxu0 %v3835_v1  ;;  %2655 = vmatprep.mubr.msk.bf16.mxu0 %vm3614_vm0, %v3613_v0 }
 0x339   : > { %2641 = vmatprep.subr.bf16.mxu0 %v3613_v0 }
 0x33c   : > { %2642 = vmatpush3.bf16.msra.mxu0 %v3837_v2 }
 0x33d   : > { %2643 = vmatprep.subr.bf16.mxu0 %v3613_v0 }
 0x340   : > { %2644 = vmatpush3.bf16.msra.mxu0 %v3843_v3 }
 0x341   : > { %2645 = vmatprep.subr.bf16.mxu0 %v3613_v0 }
 0x344   : > { %2646 = vmatpush3.bf16.msra.mxu0 %v3849_v4 }
 0x345   : > { %2647 = vmatprep.subr.bf16.mxu0 %v3613_v0 }
 0x348   : > { %2648 = vmatpush3.bf16.msra.mxu0 %v3855_v5 }
 0x349   : > { %2649 = vmatprep.subr.bf16.mxu0 %v3613_v0 }
 0x34c   : > { %2650 = vmatpush3.bf16.msra.mxu0 %v3861_v6 }
 0x34d   : > { %2651 = vmatprep.subr.bf16.mxu0 %v3613_v0 }
 0x350   : > { %2652 = vmatpush3.bf16.msra.mxu0 %v3867_v7 }
 0x351   : > { %2653 = vmatprep.subr.bf16.mxu0 %v3613_v0 }
 0x354   : > { %2654 = vmatpush3.bf16.msra.mxu0 %v3873_v8 }
 0x355   : > { %2659 = vmatprep.subr.bf16.mxu0 %v3613_v0 }
 0x40a   : > { %v467_v34 = vpop.f32.mrb[4].mxu0 }
 0x40b   : > { %v473_v35 = vmul.f32 %v467_v34, %v388_v21  ;;  %v2597_v36 = vpop.f32.mrb[5].mxu0 }
 0x40c   : > { %v470_v37 = vpop.f32.mrb[6].mxu0 }
 0x40d   : > { %v474_v38 = vpack.c.bf16 %v473_v35, %v473_v35  ;;  %v2598_v39 = vpop.f32.mrb[7].mxu0 }
 0x40f   : > { %2616 = vmatmul.mubr.bf16.vlgmr.msra.gmra.mrb[8].mxu1 %v474_v38 }
 0x410   : > { %2620 = vmatpush3.bf16.xpose.msra.mxu1 %v3835_v1  ;;  %2635 = vmatprep.mubr.msk.bf16.mxu1 %vm3614_vm0, %v3613_v0 }
 0x411   : > { %2621 = vmatprep.subr.bf16.mxu1 %v3613_v0 }
 0x418   : > { %2622 = vmatpush3.bf16.xpose.msra.mxu1 %v3837_v2 }
 0x419   : > { %2623 = vmatprep.subr.bf16.mxu1 %v3613_v0 }
 0x420   : > { %2624 = vmatpush3.bf16.xpose.msra.mxu1 %v3843_v3 }
 0x421   : > { %2625 = vmatprep.subr.bf16.mxu1 %v3613_v0 }
 0x428   : > { %2626 = vmatpush3.bf16.xpose.msra.mxu1 %v3849_v4 }
 0x429   : > { %2627 = vmatprep.subr.bf16.mxu1 %v3613_v0 }
 0x430   : > { %2628 = vmatpush3.bf16.xpose.msra.mxu1 %v3855_v5 }
 0x431   : > { %2629 = vmatprep.subr.bf16.mxu1 %v3613_v0 }
 0x438   : > { %2630 = vmatpush3.bf16.xpose.msra.mxu1 %v3861_v6 }
 0x439   : > { %2631 = vmatprep.subr.bf16.mxu1 %v3613_v0 }
 0x440   : > { %2632 = vmatpush3.bf16.xpose.msra.mxu1 %v3867_v7 }
 0x441   : > { %2633 = vmatprep.subr.bf16.mxu1 %v3613_v0 }
 0x448   : > { %2634 = vmatpush3.bf16.xpose.msra.mxu1 %v3873_v8 }
 0x449   : > { %2679 = vmatprep.subr.bf16.mxu1 %v3613_v0 }
 0x4e2   : > { %v509_v40 = vpop.f32.mrb[8].mxu1 }
 0x4e3   : > { %v510_v41 = vadd.f32 1e-08, %v509_v40  ;;  %v2617_v42 = vpop.f32.mrb[9].mxu1 }
 0x4e4   : > { %v512_v43 = vpop.f32.mrb[10].mxu1 }
 0x4e5   : > { %3397 = vrcp.f32 %v510_v41  ;;  %v2618_v44 = vpop.f32.mrb[11].mxu1 }
 0x4ef   : > { %v3398_v45 = vpop.eup %3397 }
 0x4f0   : > { %v516_v46 = vpack.c.bf16 %v3398_v45, %v3398_v45 }
 0x4f2   : > { %v517_v47 = vmul.bf16 %v516_v46, %v3903_v17 }
 0x4f4   : > { %2636 = vmatmul.mubr.bf16.vlgmr.msra.gmra.mrb[12].mxu1 %v517_v47 }
 0x4f5   : > { %2680 = vmatpush3.bf16.msra.mxu1 %v3835_v1  ;;  %2695 = vmatprep.mubr.msk.bf16.mxu1 %vm3614_vm0, %v3613_v0 }
 0x4f6   : > { %2681 = vmatprep.subr.bf16.mxu1 %v3613_v0 }
 0x4f9   : > { %2682 = vmatpush3.bf16.msra.mxu1 %v3837_v2 }
 0x4fa   : > { %2683 = vmatprep.subr.bf16.mxu1 %v3613_v0 }
 0x4fd   : > { %2684 = vmatpush3.bf16.msra.mxu1 %v3843_v3 }
 0x4fe   : > { %2685 = vmatprep.subr.bf16.mxu1 %v3613_v0 }
 0x501   : > { %2686 = vmatpush3.bf16.msra.mxu1 %v3849_v4 }
 0x502   : > { %2687 = vmatprep.subr.bf16.mxu1 %v3613_v0 }
 0x505   : > { %2688 = vmatpush3.bf16.msra.mxu1 %v3855_v5 }
 0x506   : > { %2689 = vmatprep.subr.bf16.mxu1 %v3613_v0 }
 0x509   : > { %2690 = vmatpush3.bf16.msra.mxu1 %v3861_v6 }
 0x50a   : > { %2691 = vmatprep.subr.bf16.mxu1 %v3613_v0 }
 0x50d   : > { %2692 = vmatpush3.bf16.msra.mxu1 %v3867_v7 }
 0x50e   : > { %2693 = vmatprep.subr.bf16.mxu1 %v3613_v0 }
 0x511   : > { %2694 = vmatpush3.bf16.msra.mxu1 %v3873_v8 }
 0x512   : > { %2699 = vmatprep.subr.bf16.mxu1 %v3613_v0 }
 0x5c7   : > { %v552_v48 = vpop.f32.mrb[12].mxu1 }
 0x5c8   : > { %v558_v49 = vmul.f32 %v552_v48, %v473_v35  ;;  %v2637_v50 = vpop.f32.mrb[13].mxu1 }
 0x5c9   : > { %v555_v51 = vpop.f32.mrb[14].mxu1 }
 0x5ca   : > { %v559_v52 = vpack.c.bf16 %v558_v49, %v558_v49  ;;  %v2638_v53 = vpop.f32.mrb[15].mxu1 }
 0x5cc   : > { %2656 = vmatmul.mubr.bf16.vlgmr.msra.gmra.mrb[8].mxu0 %v559_v52 }
 0x5cd   : > { %2660 = vmatpush3.bf16.xpose.msra.mxu0 %v3835_v1  ;;  %2675 = vmatprep.mubr.msk.bf16.mxu0 %vm3614_vm0, %v3613_v0 }
 0x5ce   : > { %2661 = vmatprep.subr.bf16.mxu0 %v3613_v0 }
 0x5d5   : > { %2662 = vmatpush3.bf16.xpose.msra.mxu0 %v3837_v2 }
 0x5d6   : > { %2663 = vmatprep.subr.bf16.mxu0 %v3613_v0 }
 0x5dd   : > { %2664 = vmatpush3.bf16.xpose.msra.mxu0 %v3843_v3 }
 0x5de   : > { %2665 = vmatprep.subr.bf16.mxu0 %v3613_v0 }
 0x5e5   : > { %2666 = vmatpush3.bf16.xpose.msra.mxu0 %v3849_v4 }
 0x5e6   : > { %2667 = vmatprep.subr.bf16.mxu0 %v3613_v0 }
 0x5ed   : > { %2668 = vmatpush3.bf16.xpose.msra.mxu0 %v3855_v5 }
 0x5ee   : > { %2669 = vmatprep.subr.bf16.mxu0 %v3613_v0 }
 0x5f5   : > { %2670 = vmatpush3.bf16.xpose.msra.mxu0 %v3861_v6 }
 0x5f6   : > { %2671 = vmatprep.subr.bf16.mxu0 %v3613_v0 }
 0x5fd   : > { %2672 = vmatpush3.bf16.xpose.msra.mxu0 %v3867_v7 }
 0x5fe   : > { %2673 = vmatprep.subr.bf16.mxu0 %v3613_v0 }
 0x605   : > { %2674 = vmatpush3.bf16.xpose.msra.mxu0 %v3873_v8 }
 0x606   : > { %2719 = vmatprep.subr.bf16.mxu0 %v3613_v0 }
 0x69f   : > { %v594_v54 = vpop.f32.mrb[8].mxu0 }
 0x6a0   : > { %v595_v55 = vadd.f32 1e-08, %v594_v54  ;;  %v2657_v56 = vpop.f32.mrb[9].mxu0 }
 0x6a1   : > { %v597_v57 = vpop.f32.mrb[10].mxu0 }
 0x6a2   : > { %3399 = vrcp.f32 %v595_v55  ;;  %v2658_v58 = vpop.f32.mrb[11].mxu0 }
 0x6ac   : > { %v3400_v59 = vpop.eup %3399 }
 0x6ad   : > { %v601_v60 = vpack.c.bf16 %v3400_v59, %v3400_v59 }
 0x6af   : > { %v602_v61 = vmul.bf16 %v601_v60, %v3903_v17 }
 0x6b1   : > { %2676 = vmatmul.mubr.bf16.vlgmr.msra.gmra.mrb[12].mxu0 %v602_v61 }
 0x6b2   : > { %2720 = vmatpush3.bf16.msra.mxu0 %v3835_v1  ;;  %2735 = vmatprep.mubr.msk.bf16.mxu0 %vm3614_vm0, %v3613_v0 }
 0x6b3   : > { %2721 = vmatprep.subr.bf16.mxu0 %v3613_v0 }
 0x6b6   : > { %2722 = vmatpush3.bf16.msra.mxu0 %v3837_v2 }
 0x6b7   : > { %2723 = vmatprep.subr.bf16.mxu0 %v3613_v0 }
 0x6ba   : > { %2724 = vmatpush3.bf16.msra.mxu0 %v3843_v3 }
 0x6bb   : > { %2725 = vmatprep.subr.bf16.mxu0 %v3613_v0 }
 0x6be   : > { %2726 = vmatpush3.bf16.msra.mxu0 %v3849_v4 }
 0x6bf   : > { %2727 = vmatprep.subr.bf16.mxu0 %v3613_v0 }
 0x6c2   : > { %2728 = vmatpush3.bf16.msra.mxu0 %v3855_v5 }
 0x6c3   : > { %2729 = vmatprep.subr.bf16.mxu0 %v3613_v0 }
 0x6c6   : > { %2730 = vmatpush3.bf16.msra.mxu0 %v3861_v6 }
 0x6c7   : > { %2731 = vmatprep.subr.bf16.mxu0 %v3613_v0 }
 0x6ca   : > { %2732 = vmatpush3.bf16.msra.mxu0 %v3867_v7 }
 0x6cb   : > { %2733 = vmatprep.subr.bf16.mxu0 %v3613_v0 }
 0x6ce   : > { %2734 = vmatpush3.bf16.msra.mxu0 %v3873_v8 }
 0x6cf   : > { %2739 = vmatprep.subr.bf16.mxu0 %v3613_v0 }
 0x784   : > { %v637_v62 = vpop.f32.mrb[12].mxu0 }
 0x785   : > { %v643_v63 = vmul.f32 %v637_v62, %v558_v49  ;;  %v2677_v9 = vpop.f32.mrb[13].mxu0 }
 0x786   : > { %v640_v10 = vpop.f32.mrb[14].mxu0 }
 0x787   : > { %v644_v11 = vpack.c.bf16 %v643_v63, %v643_v63  ;;  %v2678_v12 = vpop.f32.mrb[15].mxu0 }
 0x789   : > { %2696 = vmatmul.mubr.bf16.vlgmr.msra.gmra.mrb[16].mxu1 %v644_v11 }
 0x78a   : > { %2700 = vmatpush3.bf16.xpose.msra.mxu1 %v3835_v1  ;;  %2715 = vmatprep.mubr.msk.bf16.mxu1 %vm3614_vm0, %v3613_v0 }
 0x78b   : > { %2701 = vmatprep.subr.bf16.mxu1 %v3613_v0 }
 0x792   : > { %2702 = vmatpush3.bf16.xpose.msra.mxu1 %v3837_v2 }
 0x793   : > { %2703 = vmatprep.subr.bf16.mxu1 %v3613_v0 }
 0x79a   : > { %2704 = vmatpush3.bf16.xpose.msra.mxu1 %v3843_v3 }
 0x79b   : > { %2705 = vmatprep.subr.bf16.mxu1 %v3613_v0 }
 0x7a2   : > { %2706 = vmatpush3.bf16.xpose.msra.mxu1 %v3849_v4 }
 0x7a3   : > { %2707 = vmatprep.subr.bf16.mxu1 %v3613_v0 }
 0x7aa   : > { %2708 = vmatpush3.bf16.xpose.msra.mxu1 %v3855_v5 }
 0x7ab   : > { %2709 = vmatprep.subr.bf16.mxu1 %v3613_v0 }
 0x7b2   : > { %2710 = vmatpush3.bf16.xpose.msra.mxu1 %v3861_v6 }
 0x7b3   : > { %2711 = vmatprep.subr.bf16.mxu1 %v3613_v0 }
 0x7ba   : > { %2712 = vmatpush3.bf16.xpose.msra.mxu1 %v3867_v7 }
 0x7bb   : > { %2713 = vmatprep.subr.bf16.mxu1 %v3613_v0 }
 0x7c2   : > { %2714 = vmatpush3.bf16.xpose.msra.mxu1 %v3873_v8 }
 0x7c3   : > { %2759 = vmatprep.subr.bf16.mxu1 %v3613_v0 }
 0x85c   : > { %v679_v13 = vpop.f32.mrb[16].mxu1 }
 0x85d   : > { %v680_v14 = vadd.f32 1e-08, %v679_v13  ;;  %v2697_v15 = vpop.f32.mrb[17].mxu1 }
 0x85e   : > { %v682_v16 = vpop.f32.mrb[18].mxu1 }
 0x85f   : > { %3401 = vrcp.f32 %v680_v14  ;;  %v2698_v18 = vpop.f32.mrb[19].mxu1 }
 0x869   : > { %v3402_v19 = vpop.eup %3401 }
 0x86a   : > { %v686_v20 = vpack.c.bf16 %v3402_v19, %v3402_v19 }
 0x86c   : > { %v687_v21 = vmul.bf16 %v686_v20, %v3903_v17 }
 0x86e   : > { %2716 = vmatmul.mubr.bf16.vlgmr.msra.gmra.mrb[20].mxu1 %v687_v21 }
 0x86f   : > { %2760 = vmatpush3.bf16.msra.mxu1 %v3835_v1  ;;  %2775 = vmatprep.mubr.msk.bf16.mxu1 %vm3614_vm0, %v3613_v0 }
 0x870   : > { %2761 = vmatprep.subr.bf16.mxu1 %v3613_v0 }
 0x873   : > { %2762 = vmatpush3.bf16.msra.mxu1 %v3837_v2 }
 0x874   : > { %2763 = vmatprep.subr.bf16.mxu1 %v3613_v0 }
 0x877   : > { %2764 = vmatpush3.bf16.msra.mxu1 %v3843_v3 }
 0x878   : > { %2765 = vmatprep.subr.bf16.mxu1 %v3613_v0 }
 0x87b   : > { %2766 = vmatpush3.bf16.msra.mxu1 %v3849_v4 }
 0x87c   : > { %2767 = vmatprep.subr.bf16.mxu1 %v3613_v0 }
 0x87f   : > { %2768 = vmatpush3.bf16.msra.mxu1 %v3855_v5 }
 0x880   : > { %2769 = vmatprep.subr.bf16.mxu1 %v3613_v0 }
 0x883   : > { %2770 = vmatpush3.bf16.msra.mxu1 %v3861_v6 }
 0x884   : > { %2771 = vmatprep.subr.bf16.mxu1 %v3613_v0 }
 0x887   : > { %2772 = vmatpush3.bf16.msra.mxu1 %v3867_v7 }
 0x888   : > { %2773 = vmatprep.subr.bf16.mxu1 %v3613_v0 }
 0x88b   : > { %2774 = vmatpush3.bf16.msra.mxu1 %v3873_v8 }
 0x88c   : > { %2779 = vmatprep.subr.bf16.mxu1 %v3613_v0 }
 0x941   : > { %v722_v22 = vpop.f32.mrb[20].mxu1 }
 0x942   : > { %v728_v23 = vmul.f32 %v722_v22, %v643_v63  ;;  %v2717_v24 = vpop.f32.mrb[21].mxu1 }
 0x943   : > { %v725_v25 = vpop.f32.mrb[22].mxu1 }
 0x944   : > { %v729_v26 = vpack.c.bf16 %v728_v23, %v728_v23  ;;  %v2718_v27 = vpop.f32.mrb[23].mxu1 }
 0x946   : > { %2736 = vmatmul.mubr.bf16.vlgmr.msra.gmra.mrb[16].mxu0 %v729_v26 }
 0x947   : > { %2740 = vmatpush3.bf16.xpose.msra.mxu0 %v3835_v1  ;;  %2755 = vmatprep.mubr.msk.bf16.mxu0 %vm3614_vm0, %v3613_v0 }
 0x948   : > { %2741 = vmatprep.subr.bf16.mxu0 %v3613_v0 }
 0x94f   : > { %2742 = vmatpush3.bf16.xpose.msra.mxu0 %v3837_v2 }
 0x950   : > { %2743 = vmatprep.subr.bf16.mxu0 %v3613_v0 }
 0x957   : > { %2744 = vmatpush3.bf16.xpose.msra.mxu0 %v3843_v3 }
 0x958   : > { %2745 = vmatprep.subr.bf16.mxu0 %v3613_v0 }
 0x95f   : > { %2746 = vmatpush3.bf16.xpose.msra.mxu0 %v3849_v4 }
 0x960   : > { %2747 = vmatprep.subr.bf16.mxu0 %v3613_v0 }
 0x967   : > { %2748 = vmatpush3.bf16.xpose.msra.mxu0 %v3855_v5 }
 0x968   : > { %2749 = vmatprep.subr.bf16.mxu0 %v3613_v0 }
 0x96f   : > { %2750 = vmatpush3.bf16.xpose.msra.mxu0 %v3861_v6 }
 0x970   : > { %2751 = vmatprep.subr.bf16.mxu0 %v3613_v0 }
 0x977   : > { %2752 = vmatpush3.bf16.xpose.msra.mxu0 %v3867_v7 }
 0x978   : > { %2753 = vmatprep.subr.bf16.mxu0 %v3613_v0 }
 0x97f   : > { %2754 = vmatpush3.bf16.xpose.msra.mxu0 %v3873_v8 }
 0x980   : > { %2799 = vmatprep.subr.bf16.mxu0 %v3613_v0 }
 0xa19   : > { %v764_v28 = vpop.f32.mrb[16].mxu0 }
 0xa1a   : > { %v765_v29 = vadd.f32 1e-08, %v764_v28  ;;  %v2737_v30 = vpop.f32.mrb[17].mxu0 }
 0xa1b   : > { %v767_v31 = vpop.f32.mrb[18].mxu0 }
 0xa1c   : > { %3403 = vrcp.f32 %v765_v29  ;;  %v2738_v32 = vpop.f32.mrb[19].mxu0 }
 0xa1d   : > { %v4239_v32 = vld [vmem:[#allocation7] sm:$0xff]  }
 0xa26   : > { %v3404_v33 = vpop.eup %3403 }
 0xa27   : > { %v771_v34 = vpack.c.bf16 %v3404_v33, %v3404_v33  ;;  %v4257_v33 = vld [vmem:[#allocation7 + $0x20] sm:$0xff]  }
 0xa29   : > { %v772_v35 = vmul.bf16 %v771_v34, %v3903_v17  ;;  %v4261_v34 = vld [vmem:[#allocation7 + $0x28] sm:$0xff]  }
 0xa2b   : > { %2756 = vmatmul.mubr.bf16.vlgmr.msra.gmra.mrb[20].mxu0 %v772_v35  ;;  %v4265_v35 = vld [vmem:[#allocation7 + $0x30] sm:$0xff]  }
 0xa2c   : > { %2800 = vmatpush3.bf16.msra.mxu0 %v3835_v1  ;;  %2815 = vmatprep.mubr.msk.bf16.mxu0 %vm3614_vm0, %v3613_v0 }
 0xa2d   : > { %2801 = vmatprep.subr.bf16.mxu0 %v3613_v0 }
 0xa30   : > { %2802 = vmatpush3.bf16.msra.mxu0 %v3837_v2 }
 0xa31   : > { %2803 = vmatprep.subr.bf16.mxu0 %v3613_v0 }
 0xa34   : > { %2804 = vmatpush3.bf16.msra.mxu0 %v3843_v3 }
 0xa35   : > { %2805 = vmatprep.subr.bf16.mxu0 %v3613_v0 }
 0xa38   : > { %2806 = vmatpush3.bf16.msra.mxu0 %v3849_v4 }
 0xa39   : > { %2807 = vmatprep.subr.bf16.mxu0 %v3613_v0 }
 0xa3c   : > { %2808 = vmatpush3.bf16.msra.mxu0 %v3855_v5 }
 0xa3d   : > { %2809 = vmatprep.subr.bf16.mxu0 %v3613_v0 }
 0xa40   : > { %2810 = vmatpush3.bf16.msra.mxu0 %v3861_v6 }
 0xa41   : > { %2811 = vmatprep.subr.bf16.mxu0 %v3613_v0 }
 0xa44   : > { %2812 = vmatpush3.bf16.msra.mxu0 %v3867_v7 }
 0xa45   : > { %2813 = vmatprep.subr.bf16.mxu0 %v3613_v0 }
 0xa48   : > { %2814 = vmatpush3.bf16.msra.mxu0 %v3873_v8 }
 0xa49   : > { %2819 = vmatprep.subr.bf16.mxu0 %v3613_v0 }
 0xafe   : > { %v807_v36 = vpop.f32.mrb[20].mxu0 }
 0xaff   : > { %v813_v37 = vmul.f32 %v807_v36, %v728_v23  ;;  %v2757_v38 = vpop.f32.mrb[21].mxu0  ;;  %v4269_v36 = vld [vmem:[#allocation7 + $0x38] sm:$0xff]  }
 0xb00   : > { %v810_v39 = vpop.f32.mrb[22].mxu0 }
 0xb01   : > { %v814_v40 = vpack.c.bf16 %v813_v37, %v813_v37  ;;  %v2758_v41 = vpop.f32.mrb[23].mxu0 }
 0xb03   : > { %2776 = vmatmul.mubr.bf16.vlgmr.msra.gmra.mrb[24].mxu1 %v814_v40 }
 0xb04   : > { %2780 = vmatpush3.bf16.xpose.msra.mxu1 %v3835_v1  ;;  %2795 = vmatprep.mubr.msk.bf16.mxu1 %vm3614_vm0, %v3613_v0 }
 0xb05   : > { %2781 = vmatprep.subr.bf16.mxu1 %v3613_v0 }
 0xb0c   : > { %2782 = vmatpush3.bf16.xpose.msra.mxu1 %v3837_v2 }
 0xb0d   : > { %2783 = vmatprep.subr.bf16.mxu1 %v3613_v0 }
 0xb14   : > { %2784 = vmatpush3.bf16.xpose.msra.mxu1 %v3843_v3 }
 0xb15   : > { %2785 = vmatprep.subr.bf16.mxu1 %v3613_v0 }
 0xb1c   : > { %2786 = vmatpush3.bf16.xpose.msra.mxu1 %v3849_v4 }
 0xb1d   : > { %2787 = vmatprep.subr.bf16.mxu1 %v3613_v0 }
 0xb24   : > { %2788 = vmatpush3.bf16.xpose.msra.mxu1 %v3855_v5 }
 0xb25   : > { %2789 = vmatprep.subr.bf16.mxu1 %v3613_v0 }
 0xb2c   : > { %2790 = vmatpush3.bf16.xpose.msra.mxu1 %v3861_v6 }
 0xb2d   : > { %2791 = vmatprep.subr.bf16.mxu1 %v3613_v0 }
 0xb34   : > { %2792 = vmatpush3.bf16.xpose.msra.mxu1 %v3867_v7 }
 0xb35   : > { %2793 = vmatprep.subr.bf16.mxu1 %v3613_v0 }
 0xb3c   : > { %2794 = vmatpush3.bf16.xpose.msra.mxu1 %v3873_v8 }
 0xb3d   : > { %2839 = vmatprep.subr.bf16.mxu1 %v3613_v0 }
 0xbd6   : > { %v849_v42 = vpop.f32.mrb[24].mxu1 }
 0xbd7   : > { %v850_v43 = vadd.f32 1e-08, %v849_v42  ;;  %v2777_v44 = vpop.f32.mrb[25].mxu1 }
 0xbd8   : > { %v852_v45 = vpop.f32.mrb[26].mxu1 }
 0xbd9   : > { %3405 = vrcp.f32 %v850_v43  ;;  %v2778_v46 = vpop.f32.mrb[27].mxu1 }
 0xbe3   : > { %v3406_v47 = vpop.eup %3405 }
 0xbe4   : > { %v856_v48 = vpack.c.bf16 %v3406_v47, %v3406_v47 }
 0xbe6   : > { %v857_v49 = vmul.bf16 %v856_v48, %v3903_v17 }
 0xbe8   : > { %2796 = vmatmul.mubr.bf16.vlgmr.msra.gmra.mrb[28].mxu1 %v857_v49 }
 0xbe9   : > { %2840 = vmatpush3.bf16.msra.mxu1 %v3835_v1  ;;  %2855 = vmatprep.mubr.msk.bf16.mxu1 %vm3614_vm0, %v3613_v0 }
 0xbea   : > { %2841 = vmatprep.subr.bf16.mxu1 %v3613_v0 }
 0xbed   : > { %2842 = vmatpush3.bf16.msra.mxu1 %v3837_v2 }
 0xbee   : > { %2843 = vmatprep.subr.bf16.mxu1 %v3613_v0 }
 0xbf1   : > { %2844 = vmatpush3.bf16.msra.mxu1 %v3843_v3 }
 0xbf2   : > { %2845 = vmatprep.subr.bf16.mxu1 %v3613_v0 }
 0xbf5   : > { %2846 = vmatpush3.bf16.msra.mxu1 %v3849_v4 }
 0xbf6   : > { %2847 = vmatprep.subr.bf16.mxu1 %v3613_v0 }
 0xbf9   : > { %2848 = vmatpush3.bf16.msra.mxu1 %v3855_v5 }
 0xbfa   : > { %2849 = vmatprep.subr.bf16.mxu1 %v3613_v0 }
 0xbfd   : > { %2850 = vmatpush3.bf16.msra.mxu1 %v3861_v6 }
 0xbfe   : > { %2851 = vmatprep.subr.bf16.mxu1 %v3613_v0 }
 0xc01   : > { %2852 = vmatpush3.bf16.msra.mxu1 %v3867_v7 }
 0xc02   : > { %2853 = vmatprep.subr.bf16.mxu1 %v3613_v0 }
 0xc05   : > { %2854 = vmatpush3.bf16.msra.mxu1 %v3873_v8 }
 0xc06   : > { %2859 = vmatprep.subr.bf16.mxu1 %v3613_v0 }
 0xcbb   : > { %v892_v50 = vpop.f32.mrb[28].mxu1 }
 0xcbc   : > { %v898_v51 = vmul.f32 %v892_v50, %v813_v37  ;;  %v2797_v52 = vpop.f32.mrb[29].mxu1  ;;  %v4292_v50 = vld [vmem:[%s3809_s27] sm:$0xf] }
 0xcbd   : > { %v895_v53 = vpop.f32.mrb[30].mxu1 }
 0xcbe   : > { %v899_v54 = vpack.c.bf16 %v898_v51, %v898_v51  ;;  %v2798_v55 = vpop.f32.mrb[31].mxu1 }
 0xcc0   : > { %2816 = vmatmul.mubr.bf16.vlgmr.msra.gmra.mrb[24].mxu0 %v899_v54 }
 0xcc1   : > { %2820 = vmatpush3.bf16.xpose.msra.mxu0 %v3835_v1  ;;  %2835 = vmatprep.mubr.msk.bf16.mxu0 %vm3614_vm0, %v3613_v0 }
 0xcc2   : > { %2821 = vmatprep.subr.bf16.mxu0 %v3613_v0 }
 0xcc9   : > { %2822 = vmatpush3.bf16.xpose.msra.mxu0 %v3837_v2 }
 0xcca   : > { %2823 = vmatprep.subr.bf16.mxu0 %v3613_v0 }
 0xcd1   : > { %2824 = vmatpush3.bf16.xpose.msra.mxu0 %v3843_v3 }
 0xcd2   : > { %2825 = vmatprep.subr.bf16.mxu0 %v3613_v0 }
 0xcd9   : > { %2826 = vmatpush3.bf16.xpose.msra.mxu0 %v3849_v4 }
 0xcda   : > { %2827 = vmatprep.subr.bf16.mxu0 %v3613_v0 }
 0xce1   : > { %2828 = vmatpush3.bf16.xpose.msra.mxu0 %v3855_v5 }
 0xce2   : > { %2829 = vmatprep.subr.bf16.mxu0 %v3613_v0 }
 0xce9   : > { %2830 = vmatpush3.bf16.xpose.msra.mxu0 %v3861_v6 }
 0xcea   : > { %2831 = vmatprep.subr.bf16.mxu0 %v3613_v0 }
 0xcf1   : > { %2832 = vmatpush3.bf16.xpose.msra.mxu0 %v3867_v7 }
 0xcf2   : > { %2833 = vmatprep.subr.bf16.mxu0 %v3613_v0 }
 0xcf9   : > { %2834 = vmatpush3.bf16.xpose.msra.mxu0 %v3873_v8 }
 0xcfa   : > { %2879 = vmatprep.subr.bf16.mxu0 %v3613_v0 }
 0xd93   : > { %v934_v56 = vpop.f32.mrb[24].mxu0 }
 0xd94   : > { %v935_v57 = vadd.f32 1e-08, %v934_v56  ;;  %v2817_v58 = vpop.f32.mrb[25].mxu0 }
 0xd95   : > { %v937_v59 = vpop.f32.mrb[26].mxu0 }
 0xd96   : > { %3407 = vrcp.f32 %v935_v57  ;;  %v2818_v60 = vpop.f32.mrb[27].mxu0 }
 0xda0   : > { %v3408_v61 = vpop.eup %3407 }
 0xda1   : > { %v941_v62 = vpack.c.bf16 %v3408_v61, %v3408_v61 }
 0xda3   : > { %v942_v63 = vmul.bf16 %v941_v62, %v3903_v17 }
 0xda5   : > { %2836 = vmatmul.mubr.bf16.vlgmr.msra.gmra.mrb[28].mxu0 %v942_v63 }
 0xda6   : > { %2880 = vmatpush3.bf16.msra.mxu0 %v3835_v1  ;;  %2895 = vmatprep.mubr.msk.bf16.mxu0 %vm3614_vm0, %v3613_v0 }
 0xda7   : > { %2881 = vmatprep.subr.bf16.mxu0 %v3613_v0 }
 0xdaa   : > { %2882 = vmatpush3.bf16.msra.mxu0 %v3837_v2 }
 0xdab   : > { %2883 = vmatprep.subr.bf16.mxu0 %v3613_v0 }
 0xdae   : > { %2884 = vmatpush3.bf16.msra.mxu0 %v3843_v3 }
 0xdaf   : > { %2885 = vmatprep.subr.bf16.mxu0 %v3613_v0 }
 0xdb2   : > { %2886 = vmatpush3.bf16.msra.mxu0 %v3849_v4 }
 0xdb3   : > { %2887 = vmatprep.subr.bf16.mxu0 %v3613_v0 }
 0xdb6   : > { %2888 = vmatpush3.bf16.msra.mxu0 %v3855_v5 }
 0xdb7   : > { %2889 = vmatprep.subr.bf16.mxu0 %v3613_v0 }
 0xdba   : > { %2890 = vmatpush3.bf16.msra.mxu0 %v3861_v6 }
 0xdbb   : > { %2891 = vmatprep.subr.bf16.mxu0 %v3613_v0 }
 0xdbe   : > { %2892 = vmatpush3.bf16.msra.mxu0 %v3867_v7 }
 0xdbf   : > { %2893 = vmatprep.subr.bf16.mxu0 %v3613_v0 }
 0xdc2   : > { %2894 = vmatpush3.bf16.msra.mxu0 %v3873_v8 }
 0xdc3   : > { %2899 = vmatprep.subr.bf16.mxu0 %v3613_v0 }
 0xe78   : > { %v977_v9 = vpop.f32.mrb[28].mxu0 }
 0xe79   : > { %v983_v10 = vmul.f32 %v977_v9, %v898_v51  ;;  %v2837_v11 = vpop.f32.mrb[29].mxu0 }
 0xe7a   : > { %v980_v12 = vpop.f32.mrb[30].mxu0 }
 0xe7b   : > { %v984_v13 = vpack.c.bf16 %v983_v10, %v983_v10  ;;  %v2838_v14 = vpop.f32.mrb[31].mxu0 }
 0xe7d   : > { %2856 = vmatmul.mubr.bf16.vlgmr.msra.gmra.mrb[32].mxu1 %v984_v13 }
 0xe7e   : > { %2860 = vmatpush3.bf16.xpose.msra.mxu1 %v3835_v1  ;;  %2875 = vmatprep.mubr.msk.bf16.mxu1 %vm3614_vm0, %v3613_v0 }
 0xe7f   : > { %2861 = vmatprep.subr.bf16.mxu1 %v3613_v0 }
 0xe86   : > { %2862 = vmatpush3.bf16.xpose.msra.mxu1 %v3837_v2 }
 0xe87   : > { %2863 = vmatprep.subr.bf16.mxu1 %v3613_v0 }
 0xe8e   : > { %2864 = vmatpush3.bf16.xpose.msra.mxu1 %v3843_v3 }
 0xe8f   : > { %2865 = vmatprep.subr.bf16.mxu1 %v3613_v0 }
 0xe96   : > { %2866 = vmatpush3.bf16.xpose.msra.mxu1 %v3849_v4 }
 0xe97   : > { %2867 = vmatprep.subr.bf16.mxu1 %v3613_v0 }
 0xe9e   : > { %2868 = vmatpush3.bf16.xpose.msra.mxu1 %v3855_v5 }
 0xe9f   : > { %2869 = vmatprep.subr.bf16.mxu1 %v3613_v0 }
 0xea6   : > { %2870 = vmatpush3.bf16.xpose.msra.mxu1 %v3861_v6 }
 0xea7   : > { %2871 = vmatprep.subr.bf16.mxu1 %v3613_v0 }
 0xeae   : > { %2872 = vmatpush3.bf16.xpose.msra.mxu1 %v3867_v7 }
 0xeaf   : > { %2873 = vmatprep.subr.bf16.mxu1 %v3613_v0 }
 0xeb6   : > { %2874 = vmatpush3.bf16.xpose.msra.mxu1 %v3873_v8 }
 0xeb7   : > { %2919 = vmatprep.subr.bf16.mxu1 %v3613_v0 }
 0xf50   : > { %v1019_v15 = vpop.f32.mrb[32].mxu1 }
 0xf51   : > { %v1020_v16 = vadd.f32 1e-08, %v1019_v15  ;;  %v2857_v18 = vpop.f32.mrb[33].mxu1 }
 0xf52   : > { %v1022_v19 = vpop.f32.mrb[34].mxu1 }
 0xf53   : > { %3409 = vrcp.f32 %v1020_v16  ;;  %v2858_v20 = vpop.f32.mrb[35].mxu1 }
 0xf5d   : > { %v3410_v21 = vpop.eup %3409 }
 0xf5e   : > { %v1026_v22 = vpack.c.bf16 %v3410_v21, %v3410_v21 }
 0xf60   : > { %v1027_v23 = vmul.bf16 %v1026_v22, %v3903_v17 }
 0xf62   : > { %2876 = vmatmul.mubr.bf16.vlgmr.msra.gmra.mrb[36].mxu1 %v1027_v23 }
 0xf63   : > { %2920 = vmatpush3.bf16.msra.mxu1 %v3835_v1  ;;  %2935 = vmatprep.mubr.msk.bf16.mxu1 %vm3614_vm0, %v3613_v0 }
 0xf64   : > { %2921 = vmatprep.subr.bf16.mxu1 %v3613_v0 }
 0xf67   : > { %2922 = vmatpush3.bf16.msra.mxu1 %v3837_v2 }
 0xf68   : > { %2923 = vmatprep.subr.bf16.mxu1 %v3613_v0 }
 0xf6b   : > { %2924 = vmatpush3.bf16.msra.mxu1 %v3843_v3 }
 0xf6c   : > { %2925 = vmatprep.subr.bf16.mxu1 %v3613_v0 }
 0xf6f   : > { %2926 = vmatpush3.bf16.msra.mxu1 %v3849_v4 }
 0xf70   : > { %2927 = vmatprep.subr.bf16.mxu1 %v3613_v0 }
 0xf73   : > { %2928 = vmatpush3.bf16.msra.mxu1 %v3855_v5 }
 0xf74   : > { %2929 = vmatprep.subr.bf16.mxu1 %v3613_v0 }
 0xf77   : > { %2930 = vmatpush3.bf16.msra.mxu1 %v3861_v6 }
 0xf78   : > { %2931 = vmatprep.subr.bf16.mxu1 %v3613_v0 }
 0xf7b   : > { %2932 = vmatpush3.bf16.msra.mxu1 %v3867_v7 }
 0xf7c   : > { %2933 = vmatprep.subr.bf16.mxu1 %v3613_v0 }
 0xf7f   : > { %2934 = vmatpush3.bf16.msra.mxu1 %v3873_v8 }
 0xf80   : > { %2939 = vmatprep.subr.bf16.mxu1 %v3613_v0 }
0x1035   : > { %v1062_v24 = vpop.f32.mrb[36].mxu1 }
0x1036   : > { %v1068_v25 = vmul.f32 %v1062_v24, %v983_v10  ;;  %v2877_v26 = vpop.f32.mrb[37].mxu1 }
0x1037   : > { %v1065_v27 = vpop.f32.mrb[38].mxu1 }
0x1038   : > { %v1069_v28 = vpack.c.bf16 %v1068_v25, %v1068_v25  ;;  %v2878_v29 = vpop.f32.mrb[39].mxu1 }
0x103a   : > { %2896 = vmatmul.mubr.bf16.vlgmr.msra.gmra.mrb[32].mxu0 %v1069_v28 }
0x103b   : > { %2900 = vmatpush3.bf16.xpose.msra.mxu0 %v3835_v1  ;;  %2915 = vmatprep.mubr.msk.bf16.mxu0 %vm3614_vm0, %v3613_v0 }
0x103c   : > { %2901 = vmatprep.subr.bf16.mxu0 %v3613_v0 }
0x1043   : > { %2902 = vmatpush3.bf16.xpose.msra.mxu0 %v3837_v2 }
0x1044   : > { %2903 = vmatprep.subr.bf16.mxu0 %v3613_v0 }
0x104b   : > { %2904 = vmatpush3.bf16.xpose.msra.mxu0 %v3843_v3 }
0x104c   : > { %2905 = vmatprep.subr.bf16.mxu0 %v3613_v0 }
0x1053   : > { %2906 = vmatpush3.bf16.xpose.msra.mxu0 %v3849_v4 }
0x1054   : > { %2907 = vmatprep.subr.bf16.mxu0 %v3613_v0 }
0x105b   : > { %2908 = vmatpush3.bf16.xpose.msra.mxu0 %v3855_v5 }
0x105c   : > { %2909 = vmatprep.subr.bf16.mxu0 %v3613_v0 }
0x1063   : > { %2910 = vmatpush3.bf16.xpose.msra.mxu0 %v3861_v6 }
0x1064   : > { %2911 = vmatprep.subr.bf16.mxu0 %v3613_v0 }
0x106b   : > { %2912 = vmatpush3.bf16.xpose.msra.mxu0 %v3867_v7  ;;  %v4245_v7 = vld [vmem:[#allocation7 + $0x8] sm:$0xff]  }
0x106c   : > { %2913 = vmatprep.subr.bf16.mxu0 %v3613_v0 }
0x1073   : > { %2914 = vmatpush3.bf16.xpose.msra.mxu0 %v3873_v8  ;;  %v4249_v8 = vld [vmem:[#allocation7 + $0x10] sm:$0xff]  }
0x1074   : > { %2959 = vmatprep.subr.bf16.mxu0 %v3613_v0 }
0x110d   : > { %v1104_v1 = vpop.f32.mrb[32].mxu0 }
0x110e   : > { %v1105_v2 = vadd.f32 1e-08, %v1104_v1  ;;  %v2897_v3 = vpop.f32.mrb[33].mxu0 }
0x110f   : > { %v1107_v4 = vpop.f32.mrb[34].mxu0 }
0x1110   : > { %3411 = vrcp.f32 %v1105_v2  ;;  %v2898_v5 = vpop.f32.mrb[35].mxu0 }
0x111a   : > { %v3412_v30 = vpop.eup %3411 }
0x111b   : > { %v1111_v31 = vpack.c.bf16 %v3412_v30, %v3412_v30 }
0x111d   : > { %v1112_v6 = vmul.bf16 %v1111_v31, %v3903_v17  ;;  %v4253_v17 = vld [vmem:[#allocation7 + $0x18] sm:$0xff]  }
0x111f   : > { %2916 = vmatmul.mubr.bf16.vlgmr.msra.gmra.mrb[36].mxu0 %v1112_v6 }
0x1120   : > { %2960 = vmatpush3.bf16.msra.mxu0 %v4239_v32  ;;  %2975 = vmatprep.mubr.msk.bf16.mxu0 %vm3614_vm0, %v3613_v0 }
0x1121   : > { %2961 = vmatprep.subr.bf16.mxu0 %v3613_v0 }
0x1124   : > { %2962 = vmatpush3.bf16.msra.mxu0 %v4245_v7 }
0x1125   : > { %2963 = vmatprep.subr.bf16.mxu0 %v3613_v0 }
0x1128   : > { %2964 = vmatpush3.bf16.msra.mxu0 %v4249_v8 }
0x1129   : > { %2965 = vmatprep.subr.bf16.mxu0 %v3613_v0 }
0x112c   : > { %2966 = vmatpush3.bf16.msra.mxu0 %v4253_v17 }
0x112d   : > { %2967 = vmatprep.subr.bf16.mxu0 %v3613_v0 }
0x1130   : > { %2968 = vmatpush3.bf16.msra.mxu0 %v4257_v33 }
0x1131   : > { %2969 = vmatprep.subr.bf16.mxu0 %v3613_v0 }
0x1134   : > { %2970 = vmatpush3.bf16.msra.mxu0 %v4261_v34 }
0x1135   : > { %2971 = vmatprep.subr.bf16.mxu0 %v3613_v0 }
0x1138   : > { %2972 = vmatpush3.bf16.msra.mxu0 %v4265_v35 }
0x1139   : > { %2973 = vmatprep.subr.bf16.mxu0 %v3613_v0 }
0x113c   : > { %2974 = vmatpush3.bf16.msra.mxu0 %v4269_v36 }
0x113d   : > { %2979 = vmatprep.subr.bf16.mxu0 %v3613_v0 }
0x11f2   : > { %v1147_v37 = vpop.f32.mrb[36].mxu0 }
0x11f3   : > { %v1153_v38 = vmul.f32 %v1147_v37, %v1068_v25  ;;  %v2917_v39 = vpop.f32.mrb[37].mxu0 }
0x11f4   : > { %v1150_v40 = vpop.f32.mrb[38].mxu0 }
0x11f5   : > { %v1154_v41 = vpack.c.bf16 %v1153_v38, %v1153_v38  ;;  %v2918_v42 = vpop.f32.mrb[39].mxu0 }
0x11f7   : > { %2936 = vmatmul.mubr.bf16.vlgmr.msra.gmra.mrb[40].mxu1 %v1154_v41 }
0x11f8   : > { %2940 = vmatpush3.bf16.xpose.msra.mxu1 %v4239_v32  ;;  %2955 = vmatprep.mubr.msk.bf16.mxu1 %vm3614_vm0, %v3613_v0 }
0x11f9   : > { %2941 = vmatprep.subr.bf16.mxu1 %v3613_v0 }
0x1200   : > { %2942 = vmatpush3.bf16.xpose.msra.mxu1 %v4245_v7 }
0x1201   : > { %2943 = vmatprep.subr.bf16.mxu1 %v3613_v0 }
0x1208   : > { %2944 = vmatpush3.bf16.xpose.msra.mxu1 %v4249_v8 }
0x1209   : > { %2945 = vmatprep.subr.bf16.mxu1 %v3613_v0 }
0x1210   : > { %2946 = vmatpush3.bf16.xpose.msra.mxu1 %v4253_v17 }
0x1211   : > { %2947 = vmatprep.subr.bf16.mxu1 %v3613_v0 }
0x1218   : > { %2948 = vmatpush3.bf16.xpose.msra.mxu1 %v4257_v33 }
0x1219   : > { %2949 = vmatprep.subr.bf16.mxu1 %v3613_v0 }
0x1220   : > { %2950 = vmatpush3.bf16.xpose.msra.mxu1 %v4261_v34 }
0x1221   : > { %2951 = vmatprep.subr.bf16.mxu1 %v3613_v0 }
0x1228   : > { %2952 = vmatpush3.bf16.xpose.msra.mxu1 %v4265_v35 }
0x1229   : > { %2953 = vmatprep.subr.bf16.mxu1 %v3613_v0 }
0x1230   : > { %2954 = vmatpush3.bf16.xpose.msra.mxu1 %v4269_v36 }
0x1231   : > { %2999 = vmatprep.subr.bf16.mxu1 %v3613_v0 }
0x12ca   : > { %v1189_v43 = vpop.f32.mrb[40].mxu1 }
0x12cb   : > { %v1190_v44 = vadd.f32 1e-08, %v1189_v43  ;;  %v2937_v45 = vpop.f32.mrb[41].mxu1 }
0x12cc   : > { %v1192_v46 = vpop.f32.mrb[42].mxu1 }
0x12cd   : > { %3413 = vrcp.f32 %v1190_v44  ;;  %v2938_v47 = vpop.f32.mrb[43].mxu1 }
0x12d7   : > { %v3414_v48 = vpop.eup %3413 }
0x12d8   : > { %v1196_v49 = vpack.c.bf16 %v3414_v48, %v3414_v48 }
0x12da   : > { %v1197_v51 = vmul.bf16 %v4292_v50, %v1196_v49 }
0x12dc   : > { %2956 = vmatmul.mubr.bf16.vlgmr.msra.gmra.mrb[44].mxu1 %v1197_v51 }
0x12dd   : > { %3000 = vmatpush3.bf16.msra.mxu1 %v4239_v32  ;;  %3015 = vmatprep.mubr.msk.bf16.mxu1 %vm3614_vm0, %v3613_v0 }
0x12de   : > { %3001 = vmatprep.subr.bf16.mxu1 %v3613_v0 }
0x12e1   : > { %3002 = vmatpush3.bf16.msra.mxu1 %v4245_v7 }
0x12e2   : > { %3003 = vmatprep.subr.bf16.mxu1 %v3613_v0 }
0x12e5   : > { %3004 = vmatpush3.bf16.msra.mxu1 %v4249_v8 }
0x12e6   : > { %3005 = vmatprep.subr.bf16.mxu1 %v3613_v0 }
0x12e9   : > { %3006 = vmatpush3.bf16.msra.mxu1 %v4253_v17 }
0x12ea   : > { %3007 = vmatprep.subr.bf16.mxu1 %v3613_v0 }
0x12ed   : > { %3008 = vmatpush3.bf16.msra.mxu1 %v4257_v33 }
0x12ee   : > { %3009 = vmatprep.subr.bf16.mxu1 %v3613_v0 }
0x12f1   : > { %3010 = vmatpush3.bf16.msra.mxu1 %v4261_v34 }
0x12f2   : > { %3011 = vmatprep.subr.bf16.mxu1 %v3613_v0 }
0x12f5   : > { %3012 = vmatpush3.bf16.msra.mxu1 %v4265_v35 }
0x12f6   : > { %3013 = vmatprep.subr.bf16.mxu1 %v3613_v0 }
0x12f9   : > { %3014 = vmatpush3.bf16.msra.mxu1 %v4269_v36 }
0x12fa   : > { %3019 = vmatprep.subr.bf16.mxu1 %v3613_v0 }
0x13af   : > { %v1232_v52 = vpop.f32.mrb[44].mxu1 }
0x13b0   : > { %v1238_v53 = vmul.f32 %v1232_v52, %v1153_v38  ;;  %v2957_v54 = vpop.f32.mrb[45].mxu1 }
0x13b1   : > { %v1235_v55 = vpop.f32.mrb[46].mxu1 }
0x13b2   : > { %v1239_v56 = vpack.c.bf16 %v1238_v53, %v1238_v53  ;;  %v2958_v57 = vpop.f32.mrb[47].mxu1 }
0x13b4   : > { %2976 = vmatmul.mubr.bf16.vlgmr.msra.gmra.mrb[40].mxu0 %v1239_v56 }
0x13b5   : > { %2980 = vmatpush3.bf16.xpose.msra.mxu0 %v4239_v32  ;;  %2995 = vmatprep.mubr.msk.bf16.mxu0 %vm3614_vm0, %v3613_v0 }
0x13b6   : > { %2981 = vmatprep.subr.bf16.mxu0 %v3613_v0 }
0x13bd   : > { %2982 = vmatpush3.bf16.xpose.msra.mxu0 %v4245_v7 }
0x13be   : > { %2983 = vmatprep.subr.bf16.mxu0 %v3613_v0 }
0x13c5   : > { %2984 = vmatpush3.bf16.xpose.msra.mxu0 %v4249_v8 }
0x13c6   : > { %2985 = vmatprep.subr.bf16.mxu0 %v3613_v0 }
0x13cd   : > { %2986 = vmatpush3.bf16.xpose.msra.mxu0 %v4253_v17 }
0x13ce   : > { %2987 = vmatprep.subr.bf16.mxu0 %v3613_v0 }
0x13d5   : > { %2988 = vmatpush3.bf16.xpose.msra.mxu0 %v4257_v33 }
0x13d6   : > { %2989 = vmatprep.subr.bf16.mxu0 %v3613_v0 }
0x13dd   : > { %2990 = vmatpush3.bf16.xpose.msra.mxu0 %v4261_v34 }
0x13de   : > { %2991 = vmatprep.subr.bf16.mxu0 %v3613_v0 }
0x13e5   : > { %2992 = vmatpush3.bf16.xpose.msra.mxu0 %v4265_v35 }
0x13e6   : > { %2993 = vmatprep.subr.bf16.mxu0 %v3613_v0 }
0x13ed   : > { %2994 = vmatpush3.bf16.xpose.msra.mxu0 %v4269_v36 }
0x13ee   : > { %3039 = vmatprep.subr.bf16.mxu0 %v3613_v0 }
0x1487   : > { %v1274_v58 = vpop.f32.mrb[40].mxu0 }
0x1488   : > { %v1275_v59 = vadd.f32 1e-08, %v1274_v58  ;;  %v2977_v60 = vpop.f32.mrb[41].mxu0 }
0x1489   : > { %v1277_v61 = vpop.f32.mrb[42].mxu0 }
0x148a   : > { %3415 = vrcp.f32 %v1275_v59  ;;  %v2978_v62 = vpop.f32.mrb[43].mxu0 }
0x1494   : > { %v3416_v63 = vpop.eup %3415 }
0x1495   : > { %v1281_v9 = vpack.c.bf16 %v3416_v63, %v3416_v63 }
0x1497   : > { %v1282_v10 = vmul.bf16 %v4292_v50, %v1281_v9 }
0x1499   : > { %2996 = vmatmul.mubr.bf16.vlgmr.msra.gmra.mrb[44].mxu0 %v1282_v10 }
0x149a   : > { %3040 = vmatpush3.bf16.msra.mxu0 %v4239_v32  ;;  %3055 = vmatprep.mubr.msk.bf16.mxu0 %vm3614_vm0, %v3613_v0 }
0x149b   : > { %3041 = vmatprep.subr.bf16.mxu0 %v3613_v0 }
0x149e   : > { %3042 = vmatpush3.bf16.msra.mxu0 %v4245_v7 }
0x149f   : > { %3043 = vmatprep.subr.bf16.mxu0 %v3613_v0 }
0x14a2   : > { %3044 = vmatpush3.bf16.msra.mxu0 %v4249_v8 }
0x14a3   : > { %3045 = vmatprep.subr.bf16.mxu0 %v3613_v0 }
0x14a6   : > { %3046 = vmatpush3.bf16.msra.mxu0 %v4253_v17 }
0x14a7   : > { %3047 = vmatprep.subr.bf16.mxu0 %v3613_v0 }
0x14aa   : > { %3048 = vmatpush3.bf16.msra.mxu0 %v4257_v33 }
0x14ab   : > { %3049 = vmatprep.subr.bf16.mxu0 %v3613_v0 }
0x14ae   : > { %3050 = vmatpush3.bf16.msra.mxu0 %v4261_v34 }
0x14af   : > { %3051 = vmatprep.subr.bf16.mxu0 %v3613_v0 }
0x14b2   : > { %3052 = vmatpush3.bf16.msra.mxu0 %v4265_v35 }
0x14b3   : > { %3053 = vmatprep.subr.bf16.mxu0 %v3613_v0 }
0x14b6   : > { %3054 = vmatpush3.bf16.msra.mxu0 %v4269_v36 }
0x14b7   : > { %3059 = vmatprep.subr.bf16.mxu0 %v3613_v0 }
0x156c   : > { %v1317_v11 = vpop.f32.mrb[44].mxu0 }
0x156d   : > { %v1323_v12 = vmul.f32 %v1317_v11, %v1238_v53  ;;  %v2997_v13 = vpop.f32.mrb[45].mxu0 }
0x156e   : > { %v1320_v14 = vpop.f32.mrb[46].mxu0 }
0x156f   : > { %v1324_v15 = vpack.c.bf16 %v1323_v12, %v1323_v12  ;;  %v2998_v16 = vpop.f32.mrb[47].mxu0 }
0x1571   : > { %3016 = vmatmul.mubr.bf16.vlgmr.msra.gmra.mrb[48].mxu1 %v1324_v15 }
0x1572   : > { %3020 = vmatpush3.bf16.xpose.msra.mxu1 %v4239_v32  ;;  %3035 = vmatprep.mubr.msk.bf16.mxu1 %vm3614_vm0, %v3613_v0 }
0x1573   : > { %3021 = vmatprep.subr.bf16.mxu1 %v3613_v0 }
0x157a   : > { %3022 = vmatpush3.bf16.xpose.msra.mxu1 %v4245_v7 }
0x157b   : > { %3023 = vmatprep.subr.bf16.mxu1 %v3613_v0 }
0x1582   : > { %3024 = vmatpush3.bf16.xpose.msra.mxu1 %v4249_v8 }
0x1583   : > { %3025 = vmatprep.subr.bf16.mxu1 %v3613_v0 }
0x158a   : > { %3026 = vmatpush3.bf16.xpose.msra.mxu1 %v4253_v17 }
0x158b   : > { %3027 = vmatprep.subr.bf16.mxu1 %v3613_v0 }
0x1592   : > { %3028 = vmatpush3.bf16.xpose.msra.mxu1 %v4257_v33 }
0x1593   : > { %3029 = vmatprep.subr.bf16.mxu1 %v3613_v0 }
0x159a   : > { %3030 = vmatpush3.bf16.xpose.msra.mxu1 %v4261_v34 }
0x159b   : > { %3031 = vmatprep.subr.bf16.mxu1 %v3613_v0 }
0x15a2   : > { %3032 = vmatpush3.bf16.xpose.msra.mxu1 %v4265_v35 }
0x15a3   : > { %3033 = vmatprep.subr.bf16.mxu1 %v3613_v0 }
0x15aa   : > { %3034 = vmatpush3.bf16.xpose.msra.mxu1 %v4269_v36 }
0x15ab   : > { %3079 = vmatprep.subr.bf16.mxu1 %v3613_v0 }
0x1644   : > { %v1359_v18 = vpop.f32.mrb[48].mxu1 }
0x1645   : > { %v1360_v19 = vadd.f32 1e-08, %v1359_v18  ;;  %v3017_v20 = vpop.f32.mrb[49].mxu1 }
0x1646   : > { %v1362_v21 = vpop.f32.mrb[50].mxu1 }
0x1647   : > { %3417 = vrcp.f32 %v1360_v19  ;;  %v3018_v22 = vpop.f32.mrb[51].mxu1 }
0x1651   : > { %v3418_v23 = vpop.eup %3417 }
0x1652   : > { %v1366_v24 = vpack.c.bf16 %v3418_v23, %v3418_v23 }
0x1654   : > { %v1367_v25 = vmul.bf16 %v4292_v50, %v1366_v24 }
0x1656   : > { %3036 = vmatmul.mubr.bf16.vlgmr.msra.gmra.mrb[52].mxu1 %v1367_v25 }
0x1657   : > { %3080 = vmatpush3.bf16.msra.mxu1 %v4239_v32  ;;  %3095 = vmatprep.mubr.msk.bf16.mxu1 %vm3614_vm0, %v3613_v0 }
0x1658   : > { %3081 = vmatprep.subr.bf16.mxu1 %v3613_v0 }
0x165b   : > { %3082 = vmatpush3.bf16.msra.mxu1 %v4245_v7 }
0x165c   : > { %3083 = vmatprep.subr.bf16.mxu1 %v3613_v0 }
0x165f   : > { %3084 = vmatpush3.bf16.msra.mxu1 %v4249_v8 }
0x1660   : > { %3085 = vmatprep.subr.bf16.mxu1 %v3613_v0 }
0x1663   : > { %3086 = vmatpush3.bf16.msra.mxu1 %v4253_v17 }
0x1664   : > { %3087 = vmatprep.subr.bf16.mxu1 %v3613_v0 }
0x1667   : > { %3088 = vmatpush3.bf16.msra.mxu1 %v4257_v33 }
0x1668   : > { %3089 = vmatprep.subr.bf16.mxu1 %v3613_v0 }
0x166b   : > { %3090 = vmatpush3.bf16.msra.mxu1 %v4261_v34 }
0x166c   : > { %3091 = vmatprep.subr.bf16.mxu1 %v3613_v0 }
0x166f   : > { %3092 = vmatpush3.bf16.msra.mxu1 %v4265_v35 }
0x1670   : > { %3093 = vmatprep.subr.bf16.mxu1 %v3613_v0 }
0x1673   : > { %3094 = vmatpush3.bf16.msra.mxu1 %v4269_v36 }
0x1674   : > { %3099 = vmatprep.subr.bf16.mxu1 %v3613_v0 }
0x1729   : > { %v1402_v26 = vpop.f32.mrb[52].mxu1 }
0x172a   : > { %v1408_v27 = vmul.f32 %v1402_v26, %v1323_v12  ;;  %v3037_v28 = vpop.f32.mrb[53].mxu1 }
0x172b   : > { %v1405_v29 = vpop.f32.mrb[54].mxu1 }
0x172c   : > { %v1409_v1 = vpack.c.bf16 %v1408_v27, %v1408_v27  ;;  %v3038_v2 = vpop.f32.mrb[55].mxu1 }
0x172e   : > { %3056 = vmatmul.mubr.bf16.vlgmr.msra.gmra.mrb[48].mxu0 %v1409_v1 }
0x172f   : > { %3060 = vmatpush3.bf16.xpose.msra.mxu0 %v4239_v32  ;;  %3075 = vmatprep.mubr.msk.bf16.mxu0 %vm3614_vm0, %v3613_v0 }
0x1730   : > { %3061 = vmatprep.subr.bf16.mxu0 %v3613_v0 }
0x1737   : > { %3062 = vmatpush3.bf16.xpose.msra.mxu0 %v4245_v7 }
0x1738   : > { %3063 = vmatprep.subr.bf16.mxu0 %v3613_v0 }
0x173f   : > { %3064 = vmatpush3.bf16.xpose.msra.mxu0 %v4249_v8 }
0x1740   : > { %3065 = vmatprep.subr.bf16.mxu0 %v3613_v0 }
0x1747   : > { %3066 = vmatpush3.bf16.xpose.msra.mxu0 %v4253_v17 }
0x1748   : > { %3067 = vmatprep.subr.bf16.mxu0 %v3613_v0 }
0x174f   : > { %3068 = vmatpush3.bf16.xpose.msra.mxu0 %v4257_v33 }
0x1750   : > { %3069 = vmatprep.subr.bf16.mxu0 %v3613_v0 }
0x1757   : > { %3070 = vmatpush3.bf16.xpose.msra.mxu0 %v4261_v34 }
0x1758   : > { %3071 = vmatprep.subr.bf16.mxu0 %v3613_v0 }
0x175f   : > { %3072 = vmatpush3.bf16.xpose.msra.mxu0 %v4265_v35 }
0x1760   : > { %3073 = vmatprep.subr.bf16.mxu0 %v3613_v0 }
0x1767   : > { %3074 = vmatpush3.bf16.xpose.msra.mxu0 %v4269_v36 }
0x1768   : > { %3119 = vmatprep.subr.bf16.mxu0 %v3613_v0 }
0x1801   : > { %v1444_v3 = vpop.f32.mrb[48].mxu0 }
0x1802   : > { %v1445_v4 = vadd.f32 1e-08, %v1444_v3  ;;  %v3057_v5 = vpop.f32.mrb[49].mxu0 }
0x1803   : > { %v1447_v30 = vpop.f32.mrb[50].mxu0 }
0x1804   : > { %3419 = vrcp.f32 %v1445_v4  ;;  %v3058_v31 = vpop.f32.mrb[51].mxu0 }
0x180e   : > { %v3420_v6 = vpop.eup %3419 }
0x180f   : > { %v1451_v37 = vpack.c.bf16 %v3420_v6, %v3420_v6 }
0x1811   : > { %v1452_v38 = vmul.bf16 %v4292_v50, %v1451_v37 }
0x1813   : > { %3076 = vmatmul.mubr.bf16.vlgmr.msra.gmra.mrb[52].mxu0 %v1452_v38 }
0x1814   : > { %3120 = vmatpush3.bf16.msra.mxu0 %v4239_v32  ;;  %3135 = vmatprep.mubr.msk.bf16.mxu0 %vm3614_vm0, %v3613_v0 }
0x1815   : > { %3121 = vmatprep.subr.bf16.mxu0 %v3613_v0 }
0x1818   : > { %3122 = vmatpush3.bf16.msra.mxu0 %v4245_v7 }
0x1819   : > { %3123 = vmatprep.subr.bf16.mxu0 %v3613_v0 }
0x181c   : > { %3124 = vmatpush3.bf16.msra.mxu0 %v4249_v8 }
0x181d   : > { %3125 = vmatprep.subr.bf16.mxu0 %v3613_v0 }
0x1820   : > { %3126 = vmatpush3.bf16.msra.mxu0 %v4253_v17 }
0x1821   : > { %3127 = vmatprep.subr.bf16.mxu0 %v3613_v0 }
0x1824   : > { %3128 = vmatpush3.bf16.msra.mxu0 %v4257_v33 }
0x1825   : > { %3129 = vmatprep.subr.bf16.mxu0 %v3613_v0 }
0x1828   : > { %3130 = vmatpush3.bf16.msra.mxu0 %v4261_v34 }
0x1829   : > { %3131 = vmatprep.subr.bf16.mxu0 %v3613_v0 }
0x182c   : > { %3132 = vmatpush3.bf16.msra.mxu0 %v4265_v35 }
0x182d   : > { %3133 = vmatprep.subr.bf16.mxu0 %v3613_v0 }
0x1830   : > { %3134 = vmatpush3.bf16.msra.mxu0 %v4269_v36 }
0x1831   : > { %3139 = vmatprep.subr.bf16.mxu0 %v3613_v0 }
0x18e6   : > { %v1487_v39 = vpop.f32.mrb[52].mxu0 }
0x18e7   : > { %v1493_v40 = vmul.f32 %v1487_v39, %v1408_v27  ;;  %v3077_v41 = vpop.f32.mrb[53].mxu0 }
0x18e8   : > { %v1490_v42 = vpop.f32.mrb[54].mxu0 }
0x18e9   : > { %v1494_v43 = vpack.c.bf16 %v1493_v40, %v1493_v40  ;;  %v3078_v44 = vpop.f32.mrb[55].mxu0 }
0x18eb   : > { %3096 = vmatmul.mubr.bf16.vlgmr.msra.gmra.mrb[56].mxu1 %v1494_v43 }
0x18ec   : > { %3100 = vmatpush3.bf16.xpose.msra.mxu1 %v4239_v32  ;;  %3115 = vmatprep.mubr.msk.bf16.mxu1 %vm3614_vm0, %v3613_v0 }
0x18ed   : > { %3101 = vmatprep.subr.bf16.mxu1 %v3613_v0 }
0x18f4   : > { %3102 = vmatpush3.bf16.xpose.msra.mxu1 %v4245_v7 }
0x18f5   : > { %3103 = vmatprep.subr.bf16.mxu1 %v3613_v0 }
0x18fc   : > { %3104 = vmatpush3.bf16.xpose.msra.mxu1 %v4249_v8 }
0x18fd   : > { %3105 = vmatprep.subr.bf16.mxu1 %v3613_v0 }
0x1904   : > { %3106 = vmatpush3.bf16.xpose.msra.mxu1 %v4253_v17 }
0x1905   : > { %3107 = vmatprep.subr.bf16.mxu1 %v3613_v0 }
0x190c   : > { %3108 = vmatpush3.bf16.xpose.msra.mxu1 %v4257_v33 }
0x190d   : > { %3109 = vmatprep.subr.bf16.mxu1 %v3613_v0 }
0x1914   : > { %3110 = vmatpush3.bf16.xpose.msra.mxu1 %v4261_v34 }
0x1915   : > { %3111 = vmatprep.subr.bf16.mxu1 %v3613_v0 }
0x191c   : > { %3112 = vmatpush3.bf16.xpose.msra.mxu1 %v4265_v35 }
0x191d   : > { %3113 = vmatprep.subr.bf16.mxu1 %v3613_v0 }
0x1924   : > { %3114 = vmatpush3.bf16.xpose.msra.mxu1 %v4269_v36 }
0x1925   : > { %3159 = vmatprep.subr.bf16.mxu1 %v3613_v0 }
0x19be   : > { %v1529_v45 = vpop.f32.mrb[56].mxu1 }
0x19bf   : > { %v1530_v46 = vadd.f32 1e-08, %v1529_v45  ;;  %v3097_v47 = vpop.f32.mrb[57].mxu1 }
0x19c0   : > { %v1532_v48 = vpop.f32.mrb[58].mxu1 }
0x19c1   : > { %3421 = vrcp.f32 %v1530_v46  ;;  %v3098_v49 = vpop.f32.mrb[59].mxu1 }
0x19cb   : > { %v3422_v51 = vpop.eup %3421 }
0x19cc   : > { %v1536_v52 = vpack.c.bf16 %v3422_v51, %v3422_v51 }
0x19ce   : > { %v1537_v53 = vmul.bf16 %v4292_v50, %v1536_v52 }
0x19d0   : > { %3116 = vmatmul.mubr.bf16.vlgmr.msra.gmra.mrb[60].mxu1 %v1537_v53 }
0x19d1   : > { %3160 = vmatpush3.bf16.msra.mxu1 %v4239_v32  ;;  %3175 = vmatprep.mubr.msk.bf16.mxu1 %vm3614_vm0, %v3613_v0 }
0x19d2   : > { %3161 = vmatprep.subr.bf16.mxu1 %v3613_v0 }
0x19d5   : > { %3162 = vmatpush3.bf16.msra.mxu1 %v4245_v7 }
0x19d6   : > { %3163 = vmatprep.subr.bf16.mxu1 %v3613_v0 }
0x19d9   : > { %3164 = vmatpush3.bf16.msra.mxu1 %v4249_v8 }
0x19da   : > { %3165 = vmatprep.subr.bf16.mxu1 %v3613_v0 }
0x19dd   : > { %3166 = vmatpush3.bf16.msra.mxu1 %v4253_v17 }
0x19de   : > { %3167 = vmatprep.subr.bf16.mxu1 %v3613_v0 }
0x19e1   : > { %3168 = vmatpush3.bf16.msra.mxu1 %v4257_v33 }
0x19e2   : > { %3169 = vmatprep.subr.bf16.mxu1 %v3613_v0 }
0x19e5   : > { %3170 = vmatpush3.bf16.msra.mxu1 %v4261_v34 }
0x19e6   : > { %3171 = vmatprep.subr.bf16.mxu1 %v3613_v0 }
0x19e9   : > { %3172 = vmatpush3.bf16.msra.mxu1 %v4265_v35 }
0x19ea   : > { %3173 = vmatprep.subr.bf16.mxu1 %v3613_v0 }
0x19ed   : > { %3174 = vmatpush3.bf16.msra.mxu1 %v4269_v36 }
0x19ee   : > { %3179 = vmatprep.subr.bf16.mxu1 %v3613_v0 }
0x1aa3   : > { %v1572_v54 = vpop.f32.mrb[60].mxu1 }
0x1aa4   : > { %v1578_v55 = vmul.f32 %v1572_v54, %v1493_v40  ;;  %v3117_v56 = vpop.f32.mrb[61].mxu1 }
0x1aa5   : > { %v1575_v57 = vpop.f32.mrb[62].mxu1 }
0x1aa6   : > { %v1579_v58 = vpack.c.bf16 %v1578_v55, %v1578_v55  ;;  %v3118_v59 = vpop.f32.mrb[63].mxu1 }
0x1aa8   : > { %3136 = vmatmul.mubr.bf16.vlgmr.msra.gmra.mrb[56].mxu0 %v1579_v58 }
0x1aa9   : > { %3140 = vmatpush3.bf16.xpose.msra.mxu0 %v4239_v32  ;;  %3155 = vmatprep.mubr.msk.bf16.mxu0 %vm3614_vm0, %v3613_v0 }
0x1aaa   : > { %3141 = vmatprep.subr.bf16.mxu0 %v3613_v0 }
0x1ab1   : > { %3142 = vmatpush3.bf16.xpose.msra.mxu0 %v4245_v7 }
0x1ab2   : > { %3143 = vmatprep.subr.bf16.mxu0 %v3613_v0 }
0x1ab9   : > { %3144 = vmatpush3.bf16.xpose.msra.mxu0 %v4249_v8 }
0x1aba   : > { %3145 = vmatprep.subr.bf16.mxu0 %v3613_v0 }
0x1ac1   : > { %3146 = vmatpush3.bf16.xpose.msra.mxu0 %v4253_v17 }
0x1ac2   : > { %3147 = vmatprep.subr.bf16.mxu0 %v3613_v0 }
0x1ac9   : > { %3148 = vmatpush3.bf16.xpose.msra.mxu0 %v4257_v33 }
0x1aca   : > { %3149 = vmatprep.subr.bf16.mxu0 %v3613_v0 }
0x1ad1   : > { %3150 = vmatpush3.bf16.xpose.msra.mxu0 %v4261_v34 }
0x1ad2   : > { %3151 = vmatprep.subr.bf16.mxu0 %v3613_v0 }
0x1ad9   : > { %3152 = vmatpush3.bf16.xpose.msra.mxu0 %v4265_v35 }
0x1ada   : > { %3153 = vmatprep.subr.bf16.mxu0 %v3613_v0 }
0x1ae1   : > { %3154 = vmatpush3.bf16.xpose.msra.mxu0 %v4269_v36 }
0x1ae2   : > { %3199 = vmatprep.subr.bf16.mxu0 %v3613_v0 }
0x1b7b   : > { %v1614_v60 = vpop.f32.mrb[56].mxu0 }
0x1b7c   : > { %v1615_v61 = vadd.f32 1e-08, %v1614_v60  ;;  %v3137_v62 = vpop.f32.mrb[57].mxu0 }
0x1b7d   : > { %v1617_v63 = vpop.f32.mrb[58].mxu0 }
0x1b7e   : > { %3423 = vrcp.f32 %v1615_v61  ;;  %v3138_v9 = vpop.f32.mrb[59].mxu0 }
0x1b88   : > { %v3424_v10 = vpop.eup %3423 }
0x1b89   : > { %v1621_v11 = vpack.c.bf16 %v3424_v10, %v3424_v10 }
0x1b8b   : > { %v1622_v12 = vmul.bf16 %v4292_v50, %v1621_v11 }
0x1b8d   : > { %3156 = vmatmul.mubr.bf16.vlgmr.msra.gmra.mrb[60].mxu0 %v1622_v12 }
0x1b8e   : > { %3200 = vmatpush3.bf16.msra.mxu0 %v4239_v32  ;;  %3215 = vmatprep.mubr.msk.bf16.mxu0 %vm3614_vm0, %v3613_v0 }
0x1b8f   : > { %3201 = vmatprep.subr.bf16.mxu0 %v3613_v0 }
0x1b92   : > { %3202 = vmatpush3.bf16.msra.mxu0 %v4245_v7 }
0x1b93   : > { %3203 = vmatprep.subr.bf16.mxu0 %v3613_v0 }
0x1b96   : > { %3204 = vmatpush3.bf16.msra.mxu0 %v4249_v8 }
0x1b97   : > { %3205 = vmatprep.subr.bf16.mxu0 %v3613_v0 }
0x1b9a   : > { %3206 = vmatpush3.bf16.msra.mxu0 %v4253_v17 }
0x1b9b   : > { %3207 = vmatprep.subr.bf16.mxu0 %v3613_v0 }
0x1b9e   : > { %3208 = vmatpush3.bf16.msra.mxu0 %v4257_v33 }
0x1b9f   : > { %3209 = vmatprep.subr.bf16.mxu0 %v3613_v0 }
0x1ba2   : > { %3210 = vmatpush3.bf16.msra.mxu0 %v4261_v34 }
0x1ba3   : > { %3211 = vmatprep.subr.bf16.mxu0 %v3613_v0 }
0x1ba6   : > { %3212 = vmatpush3.bf16.msra.mxu0 %v4265_v35 }
0x1ba7   : > { %3213 = vmatprep.subr.bf16.mxu0 %v3613_v0 }
0x1baa   : > { %3214 = vmatpush3.bf16.msra.mxu0 %v4269_v36 }
0x1bab   : > { %3219 = vmatprep.subr.bf16.mxu0 %v3613_v0 }
0x1c60   : > { %v1657_v13 = vpop.f32.mrb[60].mxu0 }
0x1c61   : > { %v1663_v14 = vmul.f32 %v1657_v13, %v1578_v55  ;;  %v3157_v15 = vpop.f32.mrb[61].mxu0 }
0x1c62   : > { %v1660_v16 = vpop.f32.mrb[62].mxu0 }
0x1c63   : > { %v1664_v18 = vpack.c.bf16 %v1663_v14, %v1663_v14  ;;  %v3158_v19 = vpop.f32.mrb[63].mxu0 }
0x1c65   : > { %3176 = vmatmul.mubr.bf16.vlgmr.msra.gmra.mrb[64].mxu1 %v1664_v18 }
0x1c66   : > { %3180 = vmatpush3.bf16.xpose.msra.mxu1 %v4239_v32  ;;  %3195 = vmatprep.mubr.msk.bf16.mxu1 %vm3614_vm0, %v3613_v0 }
0x1c67   : > { %3181 = vmatprep.subr.bf16.mxu1 %v3613_v0 }
0x1c6e   : > { %3182 = vmatpush3.bf16.xpose.msra.mxu1 %v4245_v7 }
0x1c6f   : > { %3183 = vmatprep.subr.bf16.mxu1 %v3613_v0 }
0x1c76   : > { %3184 = vmatpush3.bf16.xpose.msra.mxu1 %v4249_v8 }
0x1c77   : > { %3185 = vmatprep.subr.bf16.mxu1 %v3613_v0 }
0x1c7e   : > { %3186 = vmatpush3.bf16.xpose.msra.mxu1 %v4253_v17 }
0x1c7f   : > { %3187 = vmatprep.subr.bf16.mxu1 %v3613_v0 }
0x1c86   : > { %3188 = vmatpush3.bf16.xpose.msra.mxu1 %v4257_v33 }
0x1c87   : > { %3189 = vmatprep.subr.bf16.mxu1 %v3613_v0 }
0x1c8e   : > { %3190 = vmatpush3.bf16.xpose.msra.mxu1 %v4261_v34 }
0x1c8f   : > { %3191 = vmatprep.subr.bf16.mxu1 %v3613_v0 }
0x1c96   : > { %3192 = vmatpush3.bf16.xpose.msra.mxu1 %v4265_v35 }
0x1c97   : > { %3193 = vmatprep.subr.bf16.mxu1 %v3613_v0 }
0x1c9e   : > { %3194 = vmatpush3.bf16.xpose.msra.mxu1 %v4269_v36 }
0x1c9f   : > { %3239 = vmatprep.subr.bf16.mxu1 %v3613_v0 }
0x1d38   : > { %v1699_v20 = vpop.f32.mrb[64].mxu1 }
0x1d39   : > { %v1700_v21 = vadd.f32 1e-08, %v1699_v20  ;;  %v3177_v22 = vpop.f32.mrb[65].mxu1 }
0x1d3a   : > { %v1702_v23 = vpop.f32.mrb[66].mxu1 }
0x1d3b   : > { %3425 = vrcp.f32 %v1700_v21  ;;  %v3178_v24 = vpop.f32.mrb[67].mxu1 }
0x1d45   : > { %v3426_v25 = vpop.eup %3425 }
0x1d46   : > { %v1706_v26 = vpack.c.bf16 %v3426_v25, %v3426_v25 }
0x1d48   : > { %v1707_v27 = vmul.bf16 %v4292_v50, %v1706_v26 }
0x1d4a   : > { %3196 = vmatmul.mubr.bf16.vlgmr.msra.gmra.mrb[68].mxu1 %v1707_v27 }
0x1d4b   : > { %3240 = vmatpush3.bf16.msra.mxu1 %v4239_v32  ;;  %3255 = vmatprep.mubr.msk.bf16.mxu1 %vm3614_vm0, %v3613_v0 }
0x1d4c   : > { %3241 = vmatprep.subr.bf16.mxu1 %v3613_v0 }
0x1d4f   : > { %3242 = vmatpush3.bf16.msra.mxu1 %v4245_v7 }
0x1d50   : > { %3243 = vmatprep.subr.bf16.mxu1 %v3613_v0 }
0x1d53   : > { %3244 = vmatpush3.bf16.msra.mxu1 %v4249_v8 }
0x1d54   : > { %3245 = vmatprep.subr.bf16.mxu1 %v3613_v0 }
0x1d57   : > { %3246 = vmatpush3.bf16.msra.mxu1 %v4253_v17 }
0x1d58   : > { %3247 = vmatprep.subr.bf16.mxu1 %v3613_v0 }
0x1d5b   : > { %3248 = vmatpush3.bf16.msra.mxu1 %v4257_v33 }
0x1d5c   : > { %3249 = vmatprep.subr.bf16.mxu1 %v3613_v0 }
0x1d5f   : > { %3250 = vmatpush3.bf16.msra.mxu1 %v4261_v34 }
0x1d60   : > { %3251 = vmatprep.subr.bf16.mxu1 %v3613_v0 }
0x1d63   : > { %3252 = vmatpush3.bf16.msra.mxu1 %v4265_v35 }
0x1d64   : > { %3253 = vmatprep.subr.bf16.mxu1 %v3613_v0 }
0x1d67   : > { %3254 = vmatpush3.bf16.msra.mxu1 %v4269_v36 }
0x1d68   : > { %3259 = vmatprep.subr.bf16.mxu1 %v3613_v0 }
0x1e1d   : > { %v1742_v28 = vpop.f32.mrb[68].mxu1 }
0x1e1e   : > { %v1748_v29 = vmul.f32 %v1742_v28, %v1663_v14  ;;  %v3197_v1 = vpop.f32.mrb[69].mxu1  ;;  %v2009_v14 = vlaneseq }
0x1e1f   : > { %v1745_v2 = vpop.f32.mrb[70].mxu1 }
0x1e20   : > { %v1749_v3 = vpack.c.bf16 %v1748_v29, %v1748_v29  ;;  %v3198_v4 = vpop.f32.mrb[71].mxu1  ;;  %v2010_v15 = vand.u32 127, %v2009_v14 }
0x1e22   : > { %3216 = vmatmul.mubr.bf16.vlgmr.msra.gmra.mrb[64].mxu0 %v1749_v3  ;;  %vm2011_vm1 = vcmp.lt.s32.totalorder %v2010_v15, 16 }
0x1e23   : > { %3220 = vmatpush3.bf16.xpose.msra.mxu0 %v4239_v32  ;;  %3235 = vmatprep.mubr.msk.bf16.mxu0 %vm3614_vm0, %v3613_v0  ;;  %v2012_v16 = vsel %vm2011_vm1, 0.0625, %v3613_v0 }
0x1e24   : > { %3221 = vmatprep.subr.bf16.mxu0 %v3613_v0 }
0x1e2b   : > { %3222 = vmatpush3.bf16.xpose.msra.mxu0 %v4245_v7 }
0x1e2c   : > { %3223 = vmatprep.subr.bf16.mxu0 %v3613_v0 }
0x1e33   : > { %3224 = vmatpush3.bf16.xpose.msra.mxu0 %v4249_v8 }
0x1e34   : > { %3225 = vmatprep.subr.bf16.mxu0 %v3613_v0 }
0x1e3b   : > { %3226 = vmatpush3.bf16.xpose.msra.mxu0 %v4253_v17 }
0x1e3c   : > { %3227 = vmatprep.subr.bf16.mxu0 %v3613_v0 }
0x1e43   : > { %3228 = vmatpush3.bf16.xpose.msra.mxu0 %v4257_v33 }
0x1e44   : > { %3229 = vmatprep.subr.bf16.mxu0 %v3613_v0 }
0x1e4b   : > { %3230 = vmatpush3.bf16.xpose.msra.mxu0 %v4261_v34 }
0x1e4c   : > { %3231 = vmatprep.subr.bf16.mxu0 %v3613_v0 }
0x1e53   : > { %3232 = vmatpush3.bf16.xpose.msra.mxu0 %v4265_v35 }
0x1e54   : > { %3233 = vmatprep.subr.bf16.mxu0 %v3613_v0 }
0x1e5b   : > { %3234 = vmatpush3.bf16.xpose.msra.mxu0 %v4269_v36 }
0x1e5c   : > { %3279 = vmatprep.subr.bf16.mxu0 %v3613_v0 }
0x1ef5   : > { %v1784_v5 = vpop.f32.mrb[64].mxu0 }
0x1ef6   : > { %v1785_v30 = vadd.f32 1e-08, %v1784_v5  ;;  %v3217_v31 = vpop.f32.mrb[65].mxu0 }
0x1ef7   : > { %v1787_v6 = vpop.f32.mrb[66].mxu0 }
0x1ef8   : > { %3427 = vrcp.f32 %v1785_v30  ;;  %v3218_v37 = vpop.f32.mrb[67].mxu0 }
0x1f02   : > { %v3428_v38 = vpop.eup %3427 }
0x1f03   : > { %v1791_v39 = vpack.c.bf16 %v3428_v38, %v3428_v38 }
0x1f05   : > { %v1792_v40 = vmul.bf16 %v4292_v50, %v1791_v39 }
0x1f07   : > { %3236 = vmatmul.mubr.bf16.vlgmr.msra.gmra.mrb[68].mxu0 %v1792_v40 }
0x1f08   : > { %3280 = vmatpush3.bf16.msra.mxu0 %v4239_v32  ;;  %3295 = vmatprep.mubr.msk.bf16.mxu0 %vm3614_vm0, %v3613_v0 }
0x1f09   : > { %3281 = vmatprep.subr.bf16.mxu0 %v3613_v0 }
0x1f0c   : > { %3282 = vmatpush3.bf16.msra.mxu0 %v4245_v7 }
0x1f0d   : > { %3283 = vmatprep.subr.bf16.mxu0 %v3613_v0 }
0x1f10   : > { %3284 = vmatpush3.bf16.msra.mxu0 %v4249_v8 }
0x1f11   : > { %3285 = vmatprep.subr.bf16.mxu0 %v3613_v0 }
0x1f14   : > { %3286 = vmatpush3.bf16.msra.mxu0 %v4253_v17 }
0x1f15   : > { %3287 = vmatprep.subr.bf16.mxu0 %v3613_v0 }
0x1f18   : > { %3288 = vmatpush3.bf16.msra.mxu0 %v4257_v33 }
0x1f19   : > { %3289 = vmatprep.subr.bf16.mxu0 %v3613_v0 }
0x1f1c   : > { %3290 = vmatpush3.bf16.msra.mxu0 %v4261_v34 }
0x1f1d   : > { %3291 = vmatprep.subr.bf16.mxu0 %v3613_v0 }
0x1f20   : > { %3292 = vmatpush3.bf16.msra.mxu0 %v4265_v35 }
0x1f21   : > { %3293 = vmatprep.subr.bf16.mxu0 %v3613_v0 }
0x1f24   : > { %3294 = vmatpush3.bf16.msra.mxu0 %v4269_v36 }
0x1f25   : > { %3299 = vmatprep.subr.bf16.mxu0 %v3613_v0 }
0x1fda   : > { %v1827_v41 = vpop.f32.mrb[68].mxu0 }
0x1fdb   : > { %v1833_v42 = vmul.f32 %v1827_v41, %v1748_v29  ;;  %v3237_v43 = vpop.f32.mrb[69].mxu0 }
0x1fdc   : > { %v1830_v44 = vpop.f32.mrb[70].mxu0 }
0x1fdd   : > { %v1834_v45 = vpack.c.bf16 %v1833_v42, %v1833_v42  ;;  %v3238_v46 = vpop.f32.mrb[71].mxu0 }
0x1fdf   : > { %3256 = vmatmul.mubr.bf16.vlgmr.msra.gmra.mrb[72].mxu1 %v1834_v45 }
0x1fe0   : > { %3260 = vmatpush3.bf16.xpose.msra.mxu1 %v4239_v32  ;;  %3275 = vmatprep.mubr.msk.bf16.mxu1 %vm3614_vm0, %v3613_v0 }
0x1fe1   : > { %3261 = vmatprep.subr.bf16.mxu1 %v3613_v0 }
0x1fe8   : > { %3262 = vmatpush3.bf16.xpose.msra.mxu1 %v4245_v7 }
0x1fe9   : > { %3263 = vmatprep.subr.bf16.mxu1 %v3613_v0 }
0x1ff0   : > { %3264 = vmatpush3.bf16.xpose.msra.mxu1 %v4249_v8 }
0x1ff1   : > { %3265 = vmatprep.subr.bf16.mxu1 %v3613_v0 }
0x1ff8   : > { %3266 = vmatpush3.bf16.xpose.msra.mxu1 %v4253_v17 }
0x1ff9   : > { %3267 = vmatprep.subr.bf16.mxu1 %v3613_v0 }
0x2000   : > { %3268 = vmatpush3.bf16.xpose.msra.mxu1 %v4257_v33 }
0x2001   : > { %3269 = vmatprep.subr.bf16.mxu1 %v3613_v0 }
0x2008   : > { %3270 = vmatpush3.bf16.xpose.msra.mxu1 %v4261_v34 }
0x2009   : > { %3271 = vmatprep.subr.bf16.mxu1 %v3613_v0 }
0x2010   : > { %3272 = vmatpush3.bf16.xpose.msra.mxu1 %v4265_v35 }
0x2011   : > { %3273 = vmatprep.subr.bf16.mxu1 %v3613_v0 }
0x2018   : > { %3274 = vmatpush3.bf16.xpose.msra.mxu1 %v4269_v36 }
0x20b2   : > { %v1869_v47 = vpop.f32.mrb[72].mxu1 }
0x20b3   : > { %v1870_v48 = vadd.f32 1e-08, %v1869_v47  ;;  %v3257_v49 = vpop.f32.mrb[73].mxu1 }
0x20b4   : > { %v1872_v51 = vpop.f32.mrb[74].mxu1 }
0x20b5   : > { %3429 = vrcp.f32 %v1870_v48  ;;  %v3258_v52 = vpop.f32.mrb[75].mxu1 }
0x20bf   : > { %v3430_v53 = vpop.eup %3429 }
0x20c0   : > { %v1876_v54 = vpack.c.bf16 %v3430_v53, %v3430_v53 }
0x20c2   : > { %v1877_v55 = vmul.bf16 %v4292_v50, %v1876_v54 }
0x20c4   : > { %3276 = vmatmul.mubr.bf16.vlgmr.msra.gmra.mrb[76].mxu1 %v1877_v55 }
0x2197   : > { %v1912_v56 = vpop.f32.mrb[76].mxu1 }
0x2198   : > { %v1918_v57 = vmul.f32 %v1912_v56, %v1833_v42  ;;  %v3277_v58 = vpop.f32.mrb[77].mxu1 }
0x2199   : > { %v1915_v59 = vpop.f32.mrb[78].mxu1 }
0x219a   : > { %v1919_v60 = vpack.c.bf16 %v1918_v57, %v1918_v57  ;;  %v3278_v61 = vpop.f32.mrb[79].mxu1 }
0x219c   : > { %3296 = vmatmul.mubr.bf16.vlgmr.msra.gmra.mrb[72].mxu0 %v1919_v60 }
0x219d   : > { %3300 = vmatpush3.bf16.xpose.msra.mxu0 %v4239_v32  ;;  %3315 = vmatprep.mubr.msk.bf16.mxu0 %vm3614_vm0, %v3613_v0 }
0x219e   : > { %3301 = vmatprep.subr.bf16.mxu0 %v3613_v0 }
0x21a5   : > { %3302 = vmatpush3.bf16.xpose.msra.mxu0 %v4245_v7 }
0x21a6   : > { %3303 = vmatprep.subr.bf16.mxu0 %v3613_v0 }
0x21ad   : > { %3304 = vmatpush3.bf16.xpose.msra.mxu0 %v4249_v8 }
0x21ae   : > { %3305 = vmatprep.subr.bf16.mxu0 %v3613_v0 }
0x21b5   : > { %3306 = vmatpush3.bf16.xpose.msra.mxu0 %v4253_v17 }
0x21b6   : > { %3307 = vmatprep.subr.bf16.mxu0 %v3613_v0 }
0x21bd   : > { %3308 = vmatpush3.bf16.xpose.msra.mxu0 %v4257_v33 }
0x21be   : > { %3309 = vmatprep.subr.bf16.mxu0 %v3613_v0 }
0x21c5   : > { %3310 = vmatpush3.bf16.xpose.msra.mxu0 %v4261_v34 }
0x21c6   : > { %3311 = vmatprep.subr.bf16.mxu0 %v3613_v0 }
0x21cd   : > { %3312 = vmatpush3.bf16.xpose.msra.mxu0 %v4265_v35 }
0x21ce   : > { %3313 = vmatprep.subr.bf16.mxu0 %v3613_v0 }
0x21d5   : > { %3314 = vmatpush3.bf16.xpose.msra.mxu0 %v4269_v36 }
0x226f   : > { %v1954_v32 = vpop.f32.mrb[72].mxu0 }
0x2270   : > { %v1955_v7 = vadd.f32 1e-08, %v1954_v32  ;;  %v3297_v8 = vpop.f32.mrb[73].mxu0 }
0x2271   : > { %v1957_v17 = vpop.f32.mrb[74].mxu0 }
0x2272   : > { %3431 = vrcp.f32 %v1955_v7  ;;  %v3298_v62 = vpop.f32.mrb[75].mxu0 }
0x227c   : > { %v3432_v63 = vpop.eup %3431 }
0x227d   : > { %v1961_v33 = vpack.c.bf16 %v3432_v63, %v3432_v63 }
0x227f   : > { %v1962_v34 = vmul.bf16 %v4292_v50, %v1961_v33 }
0x2281   : > { %3316 = vmatmul.mubr.bf16.vlgmr.msra.gmra.mrb[76].mxu0 %v1962_v34 }
0x2354   : > { %v1997_v9 = vpop.f32.mrb[76].mxu0 }
0x2355   : > { %v2003_v10 = vmul.f32 %v1997_v9, %v1918_v57  ;;  %v3317_v35 = vpop.f32.mrb[77].mxu0 }
0x2356   : > { %v2000_v11 = vpop.f32.mrb[78].mxu0 }
0x2357   : > { %v3318_v12 = vpop.f32.mrb[79].mxu0  ;;  %2004 = vadd.xlane.f32.xlu0 %v2003_v10 }
0x23e4   : > { %v2005_v36 = vpop.xlane.xlu0 %2004 }
0x23e5   : > { %v2006_v13 = vadd.f32 1e-08, %v2005_v36  ;;  %vm2013_vm2 = vcmp.gt.f32.partialorder %v2005_v36, 1e-08 }
0x23e7   : > { %3433 = vrcp.f32 %v2006_v13 }
0x23f1   : > { %v3434_v50 = vpop.eup %3433 }
0x23f2   : > { %v2008_v18 = vmul.f32 %v3434_v50, %v2003_v10 }
0x23f4   : > { %v2016_v19 = vsel %vm2013_vm2, %v2008_v18, %v2012_v16 }
0x23f5   : > { %2017 = vst [vmem:[%s236_s22] sm:$0xff] %v2016_v19 }
0x23f6   : > { %3545 = shalt.err (!%p3542_p2)
}
0x23f7   : > { %s3546_s10 = scalar_lea.hbm %s4615_s25, 128  ;;  %s3550_s27 = scalar_lea.hbm %s4662_s3, 256 }
0x23f8   : > { %p3547_p6 = scmp.ne.s32.totalorder %s4615_s25, %s3546_s10  ;;  %p3551_p12 = scmp.lt.u32.totalorder %s4615_s25, %s4662_s3 }
0x23f9   : > { %p3552_p11 = scmp.lt.u32.totalorder %s3550_s27, %s3546_s10  ;;  %p3554_p10 = scmp.lt.u32.totalorder %s3546_s10, %s4615_s25 }
0x23fa   : > { %p3548_p8 = pnand %p3547_p6, %p4678_p13 }
0x23fb   : > { %p3553_p0 = por %p3552_p11, %p3551_p12 }
0x23fc   : > { %p3549_p4 = pneg %p3548_p8 }
0x23fd   : > { %p3555_p3 = por %p3554_p10, %p3553_p0 }
0x23ff   : > { %p3556_p7 = pnand %p3555_p3, %p3549_p4 }
0x2401   : > { %3559 = shalt.err (!%p3556_p7)
}
0x2402   : > { %3327 = dma.vmem_to_hbm [thread:$0]  (%p4678_p13), %s4617_s26, 128, %s4615_s25, %s2019_s16  }
0x2403 PF: > { %s2044_s11 = sand.u32 1, %s3594_s12   ;;  %p4679_p9 = scmp.ne.s32.totalorder %s4668_s19, 0 }
0x2404   : > { %p4680_p1 = scmp.ge.s32.totalorder %s3606_s15, 2  ;;  %s2045_s28 = scalar_lea.sflag [#allocation4], %s2044_s11 }
0x2406   : > { %p3341_p5 = pnand %p4680_p1, %p4679_p9 }
0x2408   : > { %3589 = dma.done.wait (!%p3341_p5), %s2045_s28, 128  }
0x2409   : > { %3591 = vsyncadd (!%p3341_p5), %s2045_s28, 4294967168  ;;  %p19_p2 = scmp.ge.s32.totalorder %s3692_s24, 4   ;;  %s4681_s12 = smov %s3598_s13 }
0x240a   : > { %s4682_s13 = smov %s3602_s14  ;;  %s4683_s14 = smov %s3723_s17 }
0x240b   : > { %s4684_s15 = smov %s3692_s24  ;;  %21 = sbr.rel (!%p19_p2) target bundleno = 7 (0x7), region = 94 }
0x2412   :  { %2050 = vsyncpa [#allocation3], 1 }
0x2413   :  { %2052 = vsyncpa [#allocation3 + $0x1], 1 }
0x2414   :  { %2053 = vsyncpa [#allocation6], 1 }
0x2415   :  { %2055 = vsyncpa [#allocation6 + $0x1], 1 }
0x2416   :  { %2056 = vsyncpa [#allocation4], 1 }
0x2417   :  { %2058 = vsyncpa [#allocation4 + $0x1], 1 }

</bundles_post_ra>
